<compile_context>
chip_gen: v7x
topology: tpu7x:2x2x1
jax: 0.10.0
libtpu: 0.0.40
codegen_flags: <defaults>
</compile_context>

<pallas_src>
import jax
import jax.numpy as jnp
from jax.experimental import pallas as pl
from jax.experimental.pallas import tpu as pltpu

NUM_CLASSES = 10


# ---------------------------------------------------------------------------
# The fused Pallas kernel (one grid step == one image)
# ---------------------------------------------------------------------------
def _lenet_kernel(p1_ref, w1_ref, b1_ref, w2_ref, b2_ref,
                  fw1_ref, fb1_ref, fw2_ref, fb2_ref, fw3_ref, fb3_ref,
                  out_ref,
                  y1_scr, p2_scr, pool_scr, flat_scr):
    # ---- conv1: one wide dot over the 4 pool phases, then max+bias+ReLU ----
    # p1_ref[0]: [75, 1024] = 4 phase blocks of 256 lanes, parity-split order.
    y = jnp.dot(w1_ref[...], p1_ref[0],
                preferred_element_type=jnp.float32)            # [16, 1024]
    y = jnp.maximum(jnp.maximum(y[:, 0:256], y[:, 256:512]),
                    jnp.maximum(y[:, 512:768], y[:, 768:1024]))
    y1_scr[...] = jnp.maximum(y + b1_ref[...], 0.0)            # [16, 256]

    # ---- conv2 im2col (in-kernel): 100 contiguous VMEM window copies -------
    # p2 rows: k = (i*5 + j)*16 + ch ; p2 cols: q*64 + pr*8 + pc (25 valid/64)
    p2_scr[...] = jnp.zeros_like(p2_scr)
    for q in range(4):                       # 2x2 pool phase (dr, dc)
        dr, dc = q // 2, q % 2
        for i in range(5):
            for j in range(5):
                a, b = dr + i, dc + j
                base = ((a % 2) * 2 + (b % 2)) * 64 + (a // 2) * 8 + (b // 2)
                t = i * 5 + j
                p2_scr[t * 16:(t + 1) * 16, q * 64:q * 64 + 40] = (
                    y1_scr[:, base:base + 40])

    # ---- conv2: one dot over the 4 phases, then max+bias+ReLU ---------------
    y2 = jnp.dot(w2_ref[...], p2_scr[...],
                 preferred_element_type=jnp.float32)           # [32, 256]
    z = jnp.maximum(jnp.maximum(y2[:, 0:64], y2[:, 64:128]),
                    jnp.maximum(y2[:, 128:192], y2[:, 192:256]))
    pool_scr[:, 0:64] = jnp.maximum(z + b2_ref[...], 0.0)      # [32, 64]

    # ---- flatten for fc1: 32 sliced row copies (layout matches fc1 prep) ----
    for oc in range(32):
        flat_scr[0:1, oc * 40:(oc + 1) * 40] = pool_scr[oc:oc + 1, 0:40]

    # ---- fc1 -> fc2 -> fc3, intermediates never leave VMEM ------------------
    h = jnp.dot(flat_scr[...], fw1_ref[...],
                preferred_element_type=jnp.float32)            # [1, 128]
    h = jnp.maximum(h + fb1_ref[...], 0.0)
    h = jnp.dot(h, fw2_ref[...], preferred_element_type=jnp.float32)
    h = jnp.maximum(h + fb2_ref[...], 0.0)
    out_ref[0] = (jnp.dot(h, fw3_ref[...], preferred_element_type=jnp.float32)
                  + fb3_ref[...])


# ---------------------------------------------------------------------------
# Host-side glue
# ---------------------------------------------------------------------------
def _conv1_patches(x):
    """[N,3,32,32] -> [N, 75, 1024]: 4-phase im2col with parity-split columns.

    Lane layout: q*256 + ((r%2)*2 + (c%2))*64 + (r//2)*8 + (c//2), where
    q = dr*2+dc is the 2x2 pool phase and (r, c) the pooled-output position.
    Row k = ch*25 + i*5 + j matches conv1_w.reshape(16, 75).
    """
    n = x.shape[0]
    taps = []
    for i in range(5):
        for j in range(5):
            w = x[:, :, i:i + 28, j:j + 28].reshape(n, 3, 14, 2, 14, 2)
            taps.append(w)                            # [n, ch, r, dr, c, dc]
    t = jnp.stack(taps, axis=2)                       # [n, ch, t, r, dr, c, dc]
    t = jnp.transpose(t, (0, 4, 6, 1, 2, 3, 5))       # [n, dr, dc, ch, t, r, c]
    t = t.reshape(n, 4, 75, 14, 14)
    t = t.reshape(n, 4, 75, 7, 2, 7, 2)               # r->(rh,rp), c->(ch_,cp)
    t = jnp.transpose(t, (0, 1, 2, 4, 6, 3, 5))       # [n, q, k, rp, cp, rh, ch_]
    t = jnp.pad(t, ((0, 0),) * 5 + ((0, 1), (0, 1)))  # rh, ch_ : 7 -> 8
    t = t.reshape(n, 4, 75, 256)
    return jnp.transpose(t, (0, 2, 1, 3)).reshape(n, 75, 1024)


def lenet_pallas(p1, kp):
    """One fused pallas_call for the whole LeNet forward."""
    n = p1.shape[0]
    flops = 2 * n * (16 * 75 * 1024 + 32 * 400 * 256
                     + 1280 * 128 + 2 * 128 * 128)
    weight_elems = sum(int(kp[k].size) for k in
                       ("conv1_w", "conv1_b", "conv2_w", "conv2_b",
                        "fc1_w", "fc1_b", "fc2_w", "fc2_b", "fc3_w", "fc3_b"))
    bytes_accessed = 4 * (int(p1.size) + weight_elems + n * 128)

    full2d = lambda arr: pl.BlockSpec(arr.shape, lambda i: (0, 0))
    out = pl.pallas_call(
        _lenet_kernel,
        out_shape=jax.ShapeDtypeStruct((n, 1, 128), jnp.float32),
        grid=(n,),
        in_specs=[
            pl.BlockSpec((1, 75, 1024), lambda i: (i, 0, 0)),
            full2d(kp["conv1_w"]), full2d(kp["conv1_b"]),
            full2d(kp["conv2_w"]), full2d(kp["conv2_b"]),
            full2d(kp["fc1_w"]), full2d(kp["fc1_b"]),
            full2d(kp["fc2_w"]), full2d(kp["fc2_b"]),
            full2d(kp["fc3_w"]), full2d(kp["fc3_b"]),
        ],
        out_specs=pl.BlockSpec((1, 1, 128), lambda i: (i, 0, 0)),
        scratch_shapes=[
            pltpu.VMEM((16, 256), jnp.float32),    # conv1 pooled output
            pltpu.VMEM((400, 256), jnp.float32),   # conv2 patch matrix
            pltpu.VMEM((32, 128), jnp.float32),    # conv2 pooled output
            pltpu.VMEM((1, 1280), jnp.float32),    # flattened fc1 input
        ],
        compiler_params=pltpu.CompilerParams(
            dimension_semantics=("parallel",)),
        cost_estimate=pl.CostEstimate(
            flops=flops, transcendentals=0, bytes_accessed=bytes_accessed),
    )(p1, kp["conv1_w"], kp["conv1_b"], kp["conv2_w"], kp["conv2_b"],
      kp["fc1_w"], kp["fc1_b"], kp["fc2_w"], kp["fc2_b"],
      kp["fc3_w"], kp["fc3_b"])
    return out


# ---------------------------------------------------------------------------
# Parameters (PyTorch layout) + one-time kernel-friendly preparation
# ---------------------------------------------------------------------------
def init_lenet_params(key):
    ks = jax.random.split(key, 10)
    def w(k, shape, scale=0.05):
        return (scale * jax.random.normal(k, shape)).astype(jnp.float32)
    return {
        "conv1_w": w(ks[0], (16, 3, 5, 5)),
        "conv1_b": w(ks[1], (16,)),
        "conv2_w": w(ks[2], (32, 16, 5, 5)),
        "conv2_b": w(ks[3], (32,)),
        "fc1_w": w(ks[4], (120, 32 * 5 * 5)),   # PyTorch Linear: [out, in]
        "fc1_b": w(ks[5], (120,)),
        "fc2_w": w(ks[6], (84, 120)),
        "fc2_b": w(ks[7], (84,)),
        "fc3_w": w(ks[8], (10, 84)),
        "fc3_b": w(ks[9], (10,)),
    }


def prepare_params(p):
    """One-time re-layout so the kernel only does full-width dots/copies."""
    def pad2(a, rows, cols):
        r, c = a.shape
        return jnp.pad(a, ((0, rows - r), (0, cols - c)))
    # fc1 weight rows scattered to the kernel's flatten layout
    # lane = oc*40 + pr*8 + pc  (valid for pr, pc < 5; zero elsewhere).
    w1 = p["fc1_w"].reshape(120, 32, 5, 5)
    w1 = jnp.pad(w1, ((0, 0), (0, 0), (0, 0), (0, 3))).reshape(120, 1280)
    return {
        "conv1_w": p["conv1_w"].reshape(16, 75),                    # k=(ch,i,j)
        "conv1_b": p["conv1_b"].reshape(16, 1),
        # conv2 weight rows match the kernel's patch row order k=(i,j,ch):
        "conv2_w": jnp.transpose(p["conv2_w"], (0, 2, 3, 1)).reshape(32, 400),
        "conv2_b": p["conv2_b"].reshape(32, 1),
        "fc1_w": pad2(w1.T, 1280, 128),
        "fc1_b": pad2(p["fc1_b"].reshape(1, -1), 1, 128),
        "fc2_w": pad2(p["fc2_w"].T, 128, 128),
        "fc2_b": pad2(p["fc2_b"].reshape(1, -1), 1, 128),
        "fc3_w": pad2(p["fc3_w"].T, 128, 128),
        "fc3_b": pad2(p["fc3_b"].reshape(1, -1), 1, 128),
    }


# ---------------------------------------------------------------------------
# Forward passes
# ---------------------------------------------------------------------------
@jax.jit
def lenet_forward(x, kp):
    p1 = _conv1_patches(x)                       # [N, 75, 1024]
    out = lenet_pallas(p1, kp)                   # [N, 1, 128] (zero-padded)
    return out[:, 0, :NUM_CLASSES]               # [N, 10]


def lenet_reference(x, p):
    """Plain-JAX reference (PyTorch semantics) for the correctness check."""
    def conv(x, w, b):
        y = jax.lax.conv_general_dilated(
            x, w, (1, 1), "VALID", dimension_numbers=("NCHW", "OIHW", "NCHW"))
        return jax.nn.relu(y + b.reshape(1, -1, 1, 1))
    def pool(x):
        return jax.lax.reduce_window(x, -jnp.inf, jax.lax.max,
                                     (1, 1, 2, 2), (1, 1, 2, 2), "VALID")
    x = pool(conv(x, p["conv1_w"], p["conv1_b"]))
    x = pool(conv(x, p["conv2_w"], p["conv2_b"]))
    x = x.reshape(x.shape[0], -1)
    x = jax.nn.relu(x @ p["fc1_w"].T + p["fc1_b"])
    x = jax.nn.relu(x @ p["fc2_w"].T + p["fc2_b"])
    return x @ p["fc3_w"].T + p["fc3_b"]


if __name__ == "__main__":
    key = jax.random.PRNGKey(0)
    k_params, k_x = jax.random.split(key)
    params = init_lenet_params(k_params)
    kparams = prepare_params(params)
    # fc1 (32*5*5) pins the spatial size to 3x32x32; batch kept small.
    x = jax.random.normal(k_x, (2, 3, 32, 32), dtype=jnp.float32)
    out = lenet_forward(x, kparams)
    jax.block_until_ready(out)
    assert out.shape == (2, NUM_CLASSES), out.shape
    ref = lenet_reference(x, params)
    assert jnp.allclose(out, ref, atol=2e-3, rtol=2e-3), \
        float(jnp.max(jnp.abs(out - ref)))
    print("KERNEL_OK")
</pallas_src>

<mosaic_0001>
module attributes {stable_mosaic.version = 11 : i64} {
  func.func @_lenet_kernel(%arg0: i32, %arg1: memref<1x75x1024xf32, #tpu.memory_space<vmem>>, %arg2: memref<16x75xf32, #tpu.memory_space<vmem>>, %arg3: memref<16x1xf32, #tpu.memory_space<vmem>>, %arg4: memref<32x400xf32, #tpu.memory_space<vmem>>, %arg5: memref<32x1xf32, #tpu.memory_space<vmem>>, %arg6: memref<1280x128xf32, #tpu.memory_space<vmem>>, %arg7: memref<1x128xf32, #tpu.memory_space<vmem>>, %arg8: memref<128x128xf32, #tpu.memory_space<vmem>>, %arg9: memref<1x128xf32, #tpu.memory_space<vmem>>, %arg10: memref<128x128xf32, #tpu.memory_space<vmem>>, %arg11: memref<1x128xf32, #tpu.memory_space<vmem>>, %arg12: memref<1x1x128xf32, #tpu.memory_space<vmem>>, %arg13: memref<16x256xf32, #tpu.memory_space<vmem>>, %arg14: memref<400x256xf32, #tpu.memory_space<vmem>>, %arg15: memref<32x128xf32, #tpu.memory_space<vmem>>, %arg16: memref<1x1280xf32, #tpu.memory_space<vmem>>) attributes {dimension_semantics = [#tpu.dimension_semantics<parallel>], iteration_bounds = array<i64: 2>, scalar_prefetch = 0 : i64, scratch_operands = 4 : i64, tpu.core_type = #tpu.core_type<tc>, window_params = [{transform_indices = @transform_0, window_bounds = array<i64: 1, 75, 1024>}, {pipeline_mode = #tpu.pipeline_mode<synchronous>, transform_indices = @transform_1, window_bounds = array<i64: 16, 75>}, {pipeline_mode = #tpu.pipeline_mode<synchronous>, transform_indices = @transform_2, window_bounds = array<i64: 16, 1>}, {pipeline_mode = #tpu.pipeline_mode<synchronous>, transform_indices = @transform_3, window_bounds = array<i64: 32, 400>}, {pipeline_mode = #tpu.pipeline_mode<synchronous>, transform_indices = @transform_4, window_bounds = array<i64: 32, 1>}, {pipeline_mode = #tpu.pipeline_mode<synchronous>, transform_indices = @transform_5, window_bounds = array<i64: 1280, 128>}, {pipeline_mode = #tpu.pipeline_mode<synchronous>, transform_indices = @transform_6, window_bounds = array<i64: 1, 128>}, {pipeline_mode = #tpu.pipeline_mode<synchronous>, transform_indices = @transform_7, window_bounds = array<i64: 128, 128>}, {pipeline_mode = #tpu.pipeline_mode<synchronous>, transform_indices = @transform_8, window_bounds = array<i64: 1, 128>}, {pipeline_mode = #tpu.pipeline_mode<synchronous>, transform_indices = @transform_9, window_bounds = array<i64: 128, 128>}, {pipeline_mode = #tpu.pipeline_mode<synchronous>, transform_indices = @transform_10, window_bounds = array<i64: 1, 128>}, {transform_indices = @transform_11, window_bounds = array<i64: 1, 1, 128>}]} {
    %c0 = arith.constant 0 : index
    %c0_0 = arith.constant 0 : index
    %0 = vector.load %arg2[%c0, %c0_0] : memref<16x75xf32, #tpu.memory_space<vmem>>, vector<16x75xf32>
    %c0_1 = arith.constant 0 : index
    %c0_2 = arith.constant 0 : index
    %c0_3 = arith.constant 0 : index
    %1 = vector.load %arg1[%c0_1, %c0_2, %c0_3] : memref<1x75x1024xf32, #tpu.memory_space<vmem>>, vector<1x75x1024xf32>
    %2 = vector.shape_cast %1 : vector<1x75x1024xf32> to vector<75x1024xf32>
    %cst = arith.constant dense<0.000000e+00> : vector<16x1024xf32>
    %3 = tpu.matmul %0, %2, %cst {dimension_numbers = #tpu.dot_dimension_numbers<[1], [0], [0], [1], [0, 0, 1, 1], [], []>} : vector<16x75xf32>, vector<75x1024xf32>, vector<16x1024xf32> -> vector<16x1024xf32>
    %4 = vector.extract_strided_slice %3 {offsets = [0, 0], sizes = [16, 256], strides = [1, 1]} : vector<16x1024xf32> to vector<16x256xf32>
    %5 = vector.extract_strided_slice %3 {offsets = [0, 256], sizes = [16, 256], strides = [1, 1]} : vector<16x1024xf32> to vector<16x256xf32>
    %6 = arith.maximumf %4, %5 : vector<16x256xf32>
    %7 = vector.extract_strided_slice %3 {offsets = [0, 512], sizes = [16, 256], strides = [1, 1]} : vector<16x1024xf32> to vector<16x256xf32>
    %8 = vector.extract_strided_slice %3 {offsets = [0, 768], sizes = [16, 256], strides = [1, 1]} : vector<16x1024xf32> to vector<16x256xf32>
    %9 = arith.maximumf %7, %8 : vector<16x256xf32>
    %10 = arith.maximumf %6, %9 : vector<16x256xf32>
    %c0_4 = arith.constant 0 : index
    %c0_5 = arith.constant 0 : index
    %11 = vector.load %arg3[%c0_4, %c0_5] : memref<16x1xf32, #tpu.memory_space<vmem>>, vector<16x1xf32>
    %12 = vector.broadcast %11 : vector<16x1xf32> to vector<16x256xf32>
    %13 = arith.addf %10, %12 : vector<16x256xf32>
    %cst_6 = arith.constant 0.000000e+00 : f32
    %14 = vector.broadcast %cst_6 : f32 to vector<16x256xf32>
    %15 = arith.maximumf %13, %14 : vector<16x256xf32>
    %c0_7 = arith.constant 0 : index
    %c0_8 = arith.constant 0 : index
    %16 = vector.load %arg13[%c0_7, %c0_8] : memref<16x256xf32, #tpu.memory_space<vmem>>, vector<16x256xf32>
    tpu.vector_store %arg13[%c0_7, %c0_8], %15 {strides = array<i32>} : memref<16x256xf32, #tpu.memory_space<vmem>>, vector<16x256xf32>,
    %cst_9 = arith.constant 0.000000e+00 : f32
    %17 = vector.broadcast %cst_9 : f32 to vector<400x256xf32>
    %c0_10 = arith.constant 0 : index
    %c0_11 = arith.constant 0 : index
    %18 = vector.load %arg14[%c0_10, %c0_11] : memref<400x256xf32, #tpu.memory_space<vmem>>, vector<400x256xf32>
    tpu.vector_store %arg14[%c0_10, %c0_11], %17 {strides = array<i32>} : memref<400x256xf32, #tpu.memory_space<vmem>>, vector<400x256xf32>,
    %c0_12 = arith.constant 0 : index
    %c0_13 = arith.constant 0 : index
    %19 = vector.load %arg13[%c0_12, %c0_13] : memref<16x256xf32, #tpu.memory_space<vmem>>, vector<16x40xf32>
    %c0_14 = arith.constant 0 : index
    %c0_15 = arith.constant 0 : index
    %20 = vector.load %arg14[%c0_14, %c0_15] : memref<400x256xf32, #tpu.memory_space<vmem>>, vector<16x40xf32>
    tpu.vector_store %arg14[%c0_14, %c0_15], %19 {strides = array<i32>} : memref<400x256xf32, #tpu.memory_space<vmem>>, vector<16x40xf32>,
    %c0_16 = arith.constant 0 : index
    %c64 = arith.constant 64 : index
    %21 = vector.load %arg13[%c0_16, %c64] : memref<16x256xf32, #tpu.memory_space<vmem>>, vector<16x40xf32>
    %c16 = arith.constant 16 : index
    %c0_17 = arith.constant 0 : index
    %22 = vector.load %arg14[%c16, %c0_17] : memref<400x256xf32, #tpu.memory_space<vmem>>, vector<16x40xf32>
    tpu.vector_store %arg14[%c16, %c0_17], %21 {strides = array<i32>} : memref<400x256xf32, #tpu.memory_space<vmem>>, vector<16x40xf32>,
    %c0_18 = arith.constant 0 : index
    %c1 = arith.constant 1 : index
    %23 = vector.load %arg13[%c0_18, %c1] : memref<16x256xf32, #tpu.memory_space<vmem>>, vector<16x40xf32>
    %c32 = arith.constant 32 : index
    %c0_19 = arith.constant 0 : index
    %24 = vector.load %arg14[%c32, %c0_19] : memref<400x256xf32, #tpu.memory_space<vmem>>, vector<16x40xf32>
    tpu.vector_store %arg14[%c32, %c0_19], %23 {strides = array<i32>} : memref<400x256xf32, #tpu.memory_space<vmem>>, vector<16x40xf32>,
    %c0_20 = arith.constant 0 : index
    %c65 = arith.constant 65 : index
    %25 = vector.load %arg13[%c0_20, %c65] : memref<16x256xf32, #tpu.memory_space<vmem>>, vector<16x40xf32>
    %c48 = arith.constant 48 : index
    %c0_21 = arith.constant 0 : index
    %26 = vector.load %arg14[%c48, %c0_21] : memref<400x256xf32, #tpu.memory_space<vmem>>, vector<16x40xf32>
    tpu.vector_store %arg14[%c48, %c0_21], %25 {strides = array<i32>} : memref<400x256xf32, #tpu.memory_space<vmem>>, vector<16x40xf32>,
    %c0_22 = arith.constant 0 : index
    %c2 = arith.constant 2 : index
    %27 = vector.load %arg13[%c0_22, %c2] : memref<16x256xf32, #tpu.memory_space<vmem>>, vector<16x40xf32>
    %c64_23 = arith.constant 64 : index
    %c0_24 = arith.constant 0 : index
    %28 = vector.load %arg14[%c64_23, %c0_24] : memref<400x256xf32, #tpu.memory_space<vmem>>, vector<16x40xf32>
    tpu.vector_store %arg14[%c64_23, %c0_24], %27 {strides = array<i32>} : memref<400x256xf32, #tpu.memory_space<vmem>>, vector<16x40xf32>,
    %c0_25 = arith.constant 0 : index
    %c128 = arith.constant 128 : index
    %29 = vector.load %arg13[%c0_25, %c128] : memref<16x256xf32, #tpu.memory_space<vmem>>, vector<16x40xf32>
    %c80 = arith.constant 80 : index
    %c0_26 = arith.constant 0 : index
    %30 = vector.load %arg14[%c80, %c0_26] : memref<400x256xf32, #tpu.memory_space<vmem>>, vector<16x40xf32>
    tpu.vector_store %arg14[%c80, %c0_26], %29 {strides = array<i32>} : memref<400x256xf32, #tpu.memory_space<vmem>>, vector<16x40xf32>,
    %c0_27 = arith.constant 0 : index
    %c192 = arith.constant 192 : index
    %31 = vector.load %arg13[%c0_27, %c192] : memref<16x256xf32, #tpu.memory_space<vmem>>, vector<16x40xf32>
    %c96 = arith.constant 96 : index
    %c0_28 = arith.constant 0 : index
    %32 = vector.load %arg14[%c96, %c0_28] : memref<400x256xf32, #tpu.memory_space<vmem>>, vector<16x40xf32>
    tpu.vector_store %arg14[%c96, %c0_28], %31 {strides = array<i32>} : memref<400x256xf32, #tpu.memory_space<vmem>>, vector<16x40xf32>,
    %c0_29 = arith.constant 0 : index
    %c129 = arith.constant 129 : index
    %33 = vector.load %arg13[%c0_29, %c129] : memref<16x256xf32, #tpu.memory_space<vmem>>, vector<16x40xf32>
    %c112 = arith.constant 112 : index
    %c0_30 = arith.constant 0 : index
    %34 = vector.load %arg14[%c112, %c0_30] : memref<400x256xf32, #tpu.memory_space<vmem>>, vector<16x40xf32>
    tpu.vector_store %arg14[%c112, %c0_30], %33 {strides = array<i32>} : memref<400x256xf32, #tpu.memory_space<vmem>>, vector<16x40xf32>,
    %c0_31 = arith.constant 0 : index
    %c193 = arith.constant 193 : index
    %35 = vector.load %arg13[%c0_31, %c193] : memref<16x256xf32, #tpu.memory_space<vmem>>, vector<16x40xf32>
    %c128_32 = arith.constant 128 : index
    %c0_33 = arith.constant 0 : index
    %36 = vector.load %arg14[%c128_32, %c0_33] : memref<400x256xf32, #tpu.memory_space<vmem>>, vector<16x40xf32>
    tpu.vector_store %arg14[%c128_32, %c0_33], %35 {strides = array<i32>} : memref<400x256xf32, #tpu.memory_space<vmem>>, vector<16x40xf32>,
    %c0_34 = arith.constant 0 : index
    %c130 = arith.constant 130 : index
    %37 = vector.load %arg13[%c0_34, %c130] : memref<16x256xf32, #tpu.memory_space<vmem>>, vector<16x40xf32>
    %c144 = arith.constant 144 : index
    %c0_35 = arith.constant 0 : index
    %38 = vector.load %arg14[%c144, %c0_35] : memref<400x256xf32, #tpu.memory_space<vmem>>, vector<16x40xf32>
    tpu.vector_store %arg14[%c144, %c0_35], %37 {strides = array<i32>} : memref<400x256xf32, #tpu.memory_space<vmem>>, vector<16x40xf32>,
    %c0_36 = arith.constant 0 : index
    %c8 = arith.constant 8 : index
    %39 = vector.load %arg13[%c0_36, %c8] : memref<16x256xf32, #tpu.memory_space<vmem>>, vector<16x40xf32>
    %c160 = arith.constant 160 : index
    %c0_37 = arith.constant 0 : index
    %40 = vector.load %arg14[%c160, %c0_37] : memref<400x256xf32, #tpu.memory_space<vmem>>, vector<16x40xf32>
    tpu.vector_store %arg14[%c160, %c0_37], %39 {strides = array<i32>} : memref<400x256xf32, #tpu.memory_space<vmem>>, vector<16x40xf32>,
    %c0_38 = arith.constant 0 : index
    %c72 = arith.constant 72 : index
    %41 = vector.load %arg13[%c0_38, %c72] : memref<16x256xf32, #tpu.memory_space<vmem>>, vector<16x40xf32>
    %c176 = arith.constant 176 : index
    %c0_39 = arith.constant 0 : index
    %42 = vector.load %arg14[%c176, %c0_39] : memref<400x256xf32, #tpu.memory_space<vmem>>, vector<16x40xf32>
    tpu.vector_store %arg14[%c176, %c0_39], %41 {strides = array<i32>} : memref<400x256xf32, #tpu.memory_space<vmem>>, vector<16x40xf32>,
    %c0_40 = arith.constant 0 : index
    %c9 = arith.constant 9 : index
    %43 = vector.load %arg13[%c0_40, %c9] : memref<16x256xf32, #tpu.memory_space<vmem>>, vector<16x40xf32>
    %c192_41 = arith.constant 192 : index
    %c0_42 = arith.constant 0 : index
    %44 = vector.load %arg14[%c192_41, %c0_42] : memref<400x256xf32, #tpu.memory_space<vmem>>, vector<16x40xf32>
    tpu.vector_store %arg14[%c192_41, %c0_42], %43 {strides = array<i32>} : memref<400x256xf32, #tpu.memory_space<vmem>>, vector<16x40xf32>,
    %c0_43 = arith.constant 0 : index
    %c73 = arith.constant 73 : index
    %45 = vector.load %arg13[%c0_43, %c73] : memref<16x256xf32, #tpu.memory_space<vmem>>, vector<16x40xf32>
    %c208 = arith.constant 208 : index
    %c0_44 = arith.constant 0 : index
    %46 = vector.load %arg14[%c208, %c0_44] : memref<400x256xf32, #tpu.memory_space<vmem>>, vector<16x40xf32>
    tpu.vector_store %arg14[%c208, %c0_44], %45 {strides = array<i32>} : memref<400x256xf32, #tpu.memory_space<vmem>>, vector<16x40xf32>,
    %c0_45 = arith.constant 0 : index
    %c10 = arith.constant 10 : index
    %47 = vector.load %arg13[%c0_45, %c10] : memref<16x256xf32, #tpu.memory_space<vmem>>, vector<16x40xf32>
    %c224 = arith.constant 224 : index
    %c0_46 = arith.constant 0 : index
    %48 = vector.load %arg14[%c224, %c0_46] : memref<400x256xf32, #tpu.memory_space<vmem>>, vector<16x40xf32>
    tpu.vector_store %arg14[%c224, %c0_46], %47 {strides = array<i32>} : memref<400x256xf32, #tpu.memory_space<vmem>>, vector<16x40xf32>,
    %c0_47 = arith.constant 0 : index
    %c136 = arith.constant 136 : index
    %49 = vector.load %arg13[%c0_47, %c136] : memref<16x256xf32, #tpu.memory_space<vmem>>, vector<16x40xf32>
    %c240 = arith.constant 240 : index
    %c0_48 = arith.constant 0 : index
    %50 = vector.load %arg14[%c240, %c0_48] : memref<400x256xf32, #tpu.memory_space<vmem>>, vector<16x40xf32>
    tpu.vector_store %arg14[%c240, %c0_48], %49 {strides = array<i32>} : memref<400x256xf32, #tpu.memory_space<vmem>>, vector<16x40xf32>,
    %c0_49 = arith.constant 0 : index
    %c200 = arith.constant 200 : index
    %51 = vector.load %arg13[%c0_49, %c200] : memref<16x256xf32, #tpu.memory_space<vmem>>, vector<16x40xf32>
    %c256 = arith.constant 256 : index
    %c0_50 = arith.constant 0 : index
    %52 = vector.load %arg14[%c256, %c0_50] : memref<400x256xf32, #tpu.memory_space<vmem>>, vector<16x40xf32>
    tpu.vector_store %arg14[%c256, %c0_50], %51 {strides = array<i32>} : memref<400x256xf32, #tpu.memory_space<vmem>>, vector<16x40xf32>,
    %c0_51 = arith.constant 0 : index
    %c137 = arith.constant 137 : index
    %53 = vector.load %arg13[%c0_51, %c137] : memref<16x256xf32, #tpu.memory_space<vmem>>, vector<16x40xf32>
    %c272 = arith.constant 272 : index
    %c0_52 = arith.constant 0 : index
    %54 = vector.load %arg14[%c272, %c0_52] : memref<400x256xf32, #tpu.memory_space<vmem>>, vector<16x40xf32>
    tpu.vector_store %arg14[%c272, %c0_52], %53 {strides = array<i32>} : memref<400x256xf32, #tpu.memory_space<vmem>>, vector<16x40xf32>,
    %c0_53 = arith.constant 0 : index
    %c201 = arith.constant 201 : index
    %55 = vector.load %arg13[%c0_53, %c201] : memref<16x256xf32, #tpu.memory_space<vmem>>, vector<16x40xf32>
    %c288 = arith.constant 288 : index
    %c0_54 = arith.constant 0 : index
    %56 = vector.load %arg14[%c288, %c0_54] : memref<400x256xf32, #tpu.memory_space<vmem>>, vector<16x40xf32>
    tpu.vector_store %arg14[%c288, %c0_54], %55 {strides = array<i32>} : memref<400x256xf32, #tpu.memory_space<vmem>>, vector<16x40xf32>,
    %c0_55 = arith.constant 0 : index
    %c138 = arith.constant 138 : index
    %57 = vector.load %arg13[%c0_55, %c138] : memref<16x256xf32, #tpu.memory_space<vmem>>, vector<16x40xf32>
    %c304 = arith.constant 304 : index
    %c0_56 = arith.constant 0 : index
    %58 = vector.load %arg14[%c304, %c0_56] : memref<400x256xf32, #tpu.memory_space<vmem>>, vector<16x40xf32>
    tpu.vector_store %arg14[%c304, %c0_56], %57 {strides = array<i32>} : memref<400x256xf32, #tpu.memory_space<vmem>>, vector<16x40xf32>,
    %c0_57 = arith.constant 0 : index
    %c16_58 = arith.constant 16 : index
    %59 = vector.load %arg13[%c0_57, %c16_58] : memref<16x256xf32, #tpu.memory_space<vmem>>, vector<16x40xf32>
    %c320 = arith.constant 320 : index
    %c0_59 = arith.constant 0 : index
    %60 = vector.load %arg14[%c320, %c0_59] : memref<400x256xf32, #tpu.memory_space<vmem>>, vector<16x40xf32>
    tpu.vector_store %arg14[%c320, %c0_59], %59 {strides = array<i32>} : memref<400x256xf32, #tpu.memory_space<vmem>>, vector<16x40xf32>,
    %c0_60 = arith.constant 0 : index
    %c80_61 = arith.constant 80 : index
    %61 = vector.load %arg13[%c0_60, %c80_61] : memref<16x256xf32, #tpu.memory_space<vmem>>, vector<16x40xf32>
    %c336 = arith.constant 336 : index
    %c0_62 = arith.constant 0 : index
    %62 = vector.load %arg14[%c336, %c0_62] : memref<400x256xf32, #tpu.memory_space<vmem>>, vector<16x40xf32>
    tpu.vector_store %arg14[%c336, %c0_62], %61 {strides = array<i32>} : memref<400x256xf32, #tpu.memory_space<vmem>>, vector<16x40xf32>,
    %c0_63 = arith.constant 0 : index
    %c17 = arith.constant 17 : index
    %63 = vector.load %arg13[%c0_63, %c17] : memref<16x256xf32, #tpu.memory_space<vmem>>, vector<16x40xf32>
    %c352 = arith.constant 352 : index
    %c0_64 = arith.constant 0 : index
    %64 = vector.load %arg14[%c352, %c0_64] : memref<400x256xf32, #tpu.memory_space<vmem>>, vector<16x40xf32>
    tpu.vector_store %arg14[%c352, %c0_64], %63 {strides = array<i32>} : memref<400x256xf32, #tpu.memory_space<vmem>>, vector<16x40xf32>,
    %c0_65 = arith.constant 0 : index
    %c81 = arith.constant 81 : index
    %65 = vector.load %arg13[%c0_65, %c81] : memref<16x256xf32, #tpu.memory_space<vmem>>, vector<16x40xf32>
    %c368 = arith.constant 368 : index
    %c0_66 = arith.constant 0 : index
    %66 = vector.load %arg14[%c368, %c0_66] : memref<400x256xf32, #tpu.memory_space<vmem>>, vector<16x40xf32>
    tpu.vector_store %arg14[%c368, %c0_66], %65 {strides = array<i32>} : memref<400x256xf32, #tpu.memory_space<vmem>>, vector<16x40xf32>,
    %c0_67 = arith.constant 0 : index
    %c18 = arith.constant 18 : index
    %67 = vector.load %arg13[%c0_67, %c18] : memref<16x256xf32, #tpu.memory_space<vmem>>, vector<16x40xf32>
    %c384 = arith.constant 384 : index
    %c0_68 = arith.constant 0 : index
    %68 = vector.load %arg14[%c384, %c0_68] : memref<400x256xf32, #tpu.memory_space<vmem>>, vector<16x40xf32>
    tpu.vector_store %arg14[%c384, %c0_68], %67 {strides = array<i32>} : memref<400x256xf32, #tpu.memory_space<vmem>>, vector<16x40xf32>,
    %c0_69 = arith.constant 0 : index
    %c64_70 = arith.constant 64 : index
    %69 = vector.load %arg13[%c0_69, %c64_70] : memref<16x256xf32, #tpu.memory_space<vmem>>, vector<16x40xf32>
    %c0_71 = arith.constant 0 : index
    %c64_72 = arith.constant 64 : index
    %70 = vector.load %arg14[%c0_71, %c64_72] : memref<400x256xf32, #tpu.memory_space<vmem>>, vector<16x40xf32>
    tpu.vector_store %arg14[%c0_71, %c64_72], %69 {strides = array<i32>} : memref<400x256xf32, #tpu.memory_space<vmem>>, vector<16x40xf32>,
    %c0_73 = arith.constant 0 : index
    %c1_74 = arith.constant 1 : index
    %71 = vector.load %arg13[%c0_73, %c1_74] : memref<16x256xf32, #tpu.memory_space<vmem>>, vector<16x40xf32>
    %c16_75 = arith.constant 16 : index
    %c64_76 = arith.constant 64 : index
    %72 = vector.load %arg14[%c16_75, %c64_76] : memref<400x256xf32, #tpu.memory_space<vmem>>, vector<16x40xf32>
    tpu.vector_store %arg14[%c16_75, %c64_76], %71 {strides = array<i32>} : memref<400x256xf32, #tpu.memory_space<vmem>>, vector<16x40xf32>,
    %c0_77 = arith.constant 0 : index
    %c65_78 = arith.constant 65 : index
    %73 = vector.load %arg13[%c0_77, %c65_78] : memref<16x256xf32, #tpu.memory_space<vmem>>, vector<16x40xf32>
    %c32_79 = arith.constant 32 : index
    %c64_80 = arith.constant 64 : index
    %74 = vector.load %arg14[%c32_79, %c64_80] : memref<400x256xf32, #tpu.memory_space<vmem>>, vector<16x40xf32>
    tpu.vector_store %arg14[%c32_79, %c64_80], %73 {strides = array<i32>} : memref<400x256xf32, #tpu.memory_space<vmem>>, vector<16x40xf32>,
    %c0_81 = arith.constant 0 : index
    %c2_82 = arith.constant 2 : index
    %75 = vector.load %arg13[%c0_81, %c2_82] : memref<16x256xf32, #tpu.memory_space<vmem>>, vector<16x40xf32>
    %c48_83 = arith.constant 48 : index
    %c64_84 = arith.constant 64 : index
    %76 = vector.load %arg14[%c48_83, %c64_84] : memref<400x256xf32, #tpu.memory_space<vmem>>, vector<16x40xf32>
    tpu.vector_store %arg14[%c48_83, %c64_84], %75 {strides = array<i32>} : memref<400x256xf32, #tpu.memory_space<vmem>>, vector<16x40xf32>,
    %c0_85 = arith.constant 0 : index
    %c66 = arith.constant 66 : index
    %77 = vector.load %arg13[%c0_85, %c66] : memref<16x256xf32, #tpu.memory_space<vmem>>, vector<16x40xf32>
    %c64_86 = arith.constant 64 : index
    %c64_87 = arith.constant 64 : index
    %78 = vector.load %arg14[%c64_86, %c64_87] : memref<400x256xf32, #tpu.memory_space<vmem>>, vector<16x40xf32>
    tpu.vector_store %arg14[%c64_86, %c64_87], %77 {strides = array<i32>} : memref<400x256xf32, #tpu.memory_space<vmem>>, vector<16x40xf32>,
    %c0_88 = arith.constant 0 : index
    %c192_89 = arith.constant 192 : index
    %79 = vector.load %arg13[%c0_88, %c192_89] : memref<16x256xf32, #tpu.memory_space<vmem>>, vector<16x40xf32>
    %c80_90 = arith.constant 80 : index
    %c64_91 = arith.constant 64 : index
    %80 = vector.load %arg14[%c80_90, %c64_91] : memref<400x256xf32, #tpu.memory_space<vmem>>, vector<16x40xf32>
    tpu.vector_store %arg14[%c80_90, %c64_91], %79 {strides = array<i32>} : memref<400x256xf32, #tpu.memory_space<vmem>>, vector<16x40xf32>,
    %c0_92 = arith.constant 0 : index
    %c129_93 = arith.constant 129 : index
    %81 = vector.load %arg13[%c0_92, %c129_93] : memref<16x256xf32, #tpu.memory_space<vmem>>, vector<16x40xf32>
    %c96_94 = arith.constant 96 : index
    %c64_95 = arith.constant 64 : index
    %82 = vector.load %arg14[%c96_94, %c64_95] : memref<400x256xf32, #tpu.memory_space<vmem>>, vector<16x40xf32>
    tpu.vector_store %arg14[%c96_94, %c64_95], %81 {strides = array<i32>} : memref<400x256xf32, #tpu.memory_space<vmem>>, vector<16x40xf32>,
    %c0_96 = arith.constant 0 : index
    %c193_97 = arith.constant 193 : index
    %83 = vector.load %arg13[%c0_96, %c193_97] : memref<16x256xf32, #tpu.memory_space<vmem>>, vector<16x40xf32>
    %c112_98 = arith.constant 112 : index
    %c64_99 = arith.constant 64 : index
    %84 = vector.load %arg14[%c112_98, %c64_99] : memref<400x256xf32, #tpu.memory_space<vmem>>, vector<16x40xf32>
    tpu.vector_store %arg14[%c112_98, %c64_99], %83 {strides = array<i32>} : memref<400x256xf32, #tpu.memory_space<vmem>>, vector<16x40xf32>,
    %c0_100 = arith.constant 0 : index
    %c130_101 = arith.constant 130 : index
    %85 = vector.load %arg13[%c0_100, %c130_101] : memref<16x256xf32, #tpu.memory_space<vmem>>, vector<16x40xf32>
    %c128_102 = arith.constant 128 : index
    %c64_103 = arith.constant 64 : index
    %86 = vector.load %arg14[%c128_102, %c64_103] : memref<400x256xf32, #tpu.memory_space<vmem>>, vector<16x40xf32>
    tpu.vector_store %arg14[%c128_102, %c64_103], %85 {strides = array<i32>} : memref<400x256xf32, #tpu.memory_space<vmem>>, vector<16x40xf32>,
    %c0_104 = arith.constant 0 : index
    %c194 = arith.constant 194 : index
    %87 = vector.load %arg13[%c0_104, %c194] : memref<16x256xf32, #tpu.memory_space<vmem>>, vector<16x40xf32>
    %c144_105 = arith.constant 144 : index
    %c64_106 = arith.constant 64 : index
    %88 = vector.load %arg14[%c144_105, %c64_106] : memref<400x256xf32, #tpu.memory_space<vmem>>, vector<16x40xf32>
    tpu.vector_store %arg14[%c144_105, %c64_106], %87 {strides = array<i32>} : memref<400x256xf32, #tpu.memory_space<vmem>>, vector<16x40xf32>,
    %c0_107 = arith.constant 0 : index
    %c72_108 = arith.constant 72 : index
    %89 = vector.load %arg13[%c0_107, %c72_108] : memref<16x256xf32, #tpu.memory_space<vmem>>, vector<16x40xf32>
    %c160_109 = arith.constant 160 : index
    %c64_110 = arith.constant 64 : index
    %90 = vector.load %arg14[%c160_109, %c64_110] : memref<400x256xf32, #tpu.memory_space<vmem>>, vector<16x40xf32>
    tpu.vector_store %arg14[%c160_109, %c64_110], %89 {strides = array<i32>} : memref<400x256xf32, #tpu.memory_space<vmem>>, vector<16x40xf32>,
    %c0_111 = arith.constant 0 : index
    %c9_112 = arith.constant 9 : index
    %91 = vector.load %arg13[%c0_111, %c9_112] : memref<16x256xf32, #tpu.memory_space<vmem>>, vector<16x40xf32>
    %c176_113 = arith.constant 176 : index
    %c64_114 = arith.constant 64 : index
    %92 = vector.load %arg14[%c176_113, %c64_114] : memref<400x256xf32, #tpu.memory_space<vmem>>, vector<16x40xf32>
    tpu.vector_store %arg14[%c176_113, %c64_114], %91 {strides = array<i32>} : memref<400x256xf32, #tpu.memory_space<vmem>>, vector<16x40xf32>,
    %c0_115 = arith.constant 0 : index
    %c73_116 = arith.constant 73 : index
    %93 = vector.load %arg13[%c0_115, %c73_116] : memref<16x256xf32, #tpu.memory_space<vmem>>, vector<16x40xf32>
    %c192_117 = arith.constant 192 : index
    %c64_118 = arith.constant 64 : index
    %94 = vector.load %arg14[%c192_117, %c64_118] : memref<400x256xf32, #tpu.memory_space<vmem>>, vector<16x40xf32>
    tpu.vector_store %arg14[%c192_117, %c64_118], %93 {strides = array<i32>} : memref<400x256xf32, #tpu.memory_space<vmem>>, vector<16x40xf32>,
    %c0_119 = arith.constant 0 : index
    %c10_120 = arith.constant 10 : index
    %95 = vector.load %arg13[%c0_119, %c10_120] : memref<16x256xf32, #tpu.memory_space<vmem>>, vector<16x40xf32>
    %c208_121 = arith.constant 208 : index
    %c64_122 = arith.constant 64 : index
    %96 = vector.load %arg14[%c208_121, %c64_122] : memref<400x256xf32, #tpu.memory_space<vmem>>, vector<16x40xf32>
    tpu.vector_store %arg14[%c208_121, %c64_122], %95 {strides = array<i32>} : memref<400x256xf32, #tpu.memory_space<vmem>>, vector<16x40xf32>,
    %c0_123 = arith.constant 0 : index
    %c74 = arith.constant 74 : index
    %97 = vector.load %arg13[%c0_123, %c74] : memref<16x256xf32, #tpu.memory_space<vmem>>, vector<16x40xf32>
    %c224_124 = arith.constant 224 : index
    %c64_125 = arith.constant 64 : index
    %98 = vector.load %arg14[%c224_124, %c64_125] : memref<400x256xf32, #tpu.memory_space<vmem>>, vector<16x40xf32>
    tpu.vector_store %arg14[%c224_124, %c64_125], %97 {strides = array<i32>} : memref<400x256xf32, #tpu.memory_space<vmem>>, vector<16x40xf32>,
    %c0_126 = arith.constant 0 : index
    %c200_127 = arith.constant 200 : index
    %99 = vector.load %arg13[%c0_126, %c200_127] : memref<16x256xf32, #tpu.memory_space<vmem>>, vector<16x40xf32>
    %c240_128 = arith.constant 240 : index
    %c64_129 = arith.constant 64 : index
    %100 = vector.load %arg14[%c240_128, %c64_129] : memref<400x256xf32, #tpu.memory_space<vmem>>, vector<16x40xf32>
    tpu.vector_store %arg14[%c240_128, %c64_129], %99 {strides = array<i32>} : memref<400x256xf32, #tpu.memory_space<vmem>>, vector<16x40xf32>,
    %c0_130 = arith.constant 0 : index
    %c137_131 = arith.constant 137 : index
    %101 = vector.load %arg13[%c0_130, %c137_131] : memref<16x256xf32, #tpu.memory_space<vmem>>, vector<16x40xf32>
    %c256_132 = arith.constant 256 : index
    %c64_133 = arith.constant 64 : index
    %102 = vector.load %arg14[%c256_132, %c64_133] : memref<400x256xf32, #tpu.memory_space<vmem>>, vector<16x40xf32>
    tpu.vector_store %arg14[%c256_132, %c64_133], %101 {strides = array<i32>} : memref<400x256xf32, #tpu.memory_space<vmem>>, vector<16x40xf32>,
    %c0_134 = arith.constant 0 : index
    %c201_135 = arith.constant 201 : index
    %103 = vector.load %arg13[%c0_134, %c201_135] : memref<16x256xf32, #tpu.memory_space<vmem>>, vector<16x40xf32>
    %c272_136 = arith.constant 272 : index
    %c64_137 = arith.constant 64 : index
    %104 = vector.load %arg14[%c272_136, %c64_137] : memref<400x256xf32, #tpu.memory_space<vmem>>, vector<16x40xf32>
    tpu.vector_store %arg14[%c272_136, %c64_137], %103 {strides = array<i32>} : memref<400x256xf32, #tpu.memory_space<vmem>>, vector<16x40xf32>,
    %c0_138 = arith.constant 0 : index
    %c138_139 = arith.constant 138 : index
    %105 = vector.load %arg13[%c0_138, %c138_139] : memref<16x256xf32, #tpu.memory_space<vmem>>, vector<16x40xf32>
    %c288_140 = arith.constant 288 : index
    %c64_141 = arith.constant 64 : index
    %106 = vector.load %arg14[%c288_140, %c64_141] : memref<400x256xf32, #tpu.memory_space<vmem>>, vector<16x40xf32>
    tpu.vector_store %arg14[%c288_140, %c64_141], %105 {strides = array<i32>} : memref<400x256xf32, #tpu.memory_space<vmem>>, vector<16x40xf32>,
    %c0_142 = arith.constant 0 : index
    %c202 = arith.constant 202 : index
    %107 = vector.load %arg13[%c0_142, %c202] : memref<16x256xf32, #tpu.memory_space<vmem>>, vector<16x40xf32>
    %c304_143 = arith.constant 304 : index
    %c64_144 = arith.constant 64 : index
    %108 = vector.load %arg14[%c304_143, %c64_144] : memref<400x256xf32, #tpu.memory_space<vmem>>, vector<16x40xf32>
    tpu.vector_store %arg14[%c304_143, %c64_144], %107 {strides = array<i32>} : memref<400x256xf32, #tpu.memory_space<vmem>>, vector<16x40xf32>,
    %c0_145 = arith.constant 0 : index
    %c80_146 = arith.constant 80 : index
    %109 = vector.load %arg13[%c0_145, %c80_146] : memref<16x256xf32, #tpu.memory_space<vmem>>, vector<16x40xf32>
    %c320_147 = arith.constant 320 : index
    %c64_148 = arith.constant 64 : index
    %110 = vector.load %arg14[%c320_147, %c64_148] : memref<400x256xf32, #tpu.memory_space<vmem>>, vector<16x40xf32>
    tpu.vector_store %arg14[%c320_147, %c64_148], %109 {strides = array<i32>} : memref<400x256xf32, #tpu.memory_space<vmem>>, vector<16x40xf32>,
    %c0_149 = arith.constant 0 : index
    %c17_150 = arith.constant 17 : index
    %111 = vector.load %arg13[%c0_149, %c17_150] : memref<16x256xf32, #tpu.memory_space<vmem>>, vector<16x40xf32>
    %c336_151 = arith.constant 336 : index
    %c64_152 = arith.constant 64 : index
    %112 = vector.load %arg14[%c336_151, %c64_152] : memref<400x256xf32, #tpu.memory_space<vmem>>, vector<16x40xf32>
    tpu.vector_store %arg14[%c336_151, %c64_152], %111 {strides = array<i32>} : memref<400x256xf32, #tpu.memory_space<vmem>>, vector<16x40xf32>,
    %c0_153 = arith.constant 0 : index
    %c81_154 = arith.constant 81 : index
    %113 = vector.load %arg13[%c0_153, %c81_154] : memref<16x256xf32, #tpu.memory_space<vmem>>, vector<16x40xf32>
    %c352_155 = arith.constant 352 : index
    %c64_156 = arith.constant 64 : index
    %114 = vector.load %arg14[%c352_155, %c64_156] : memref<400x256xf32, #tpu.memory_space<vmem>>, vector<16x40xf32>
    tpu.vector_store %arg14[%c352_155, %c64_156], %113 {strides = array<i32>} : memref<400x256xf32, #tpu.memory_space<vmem>>, vector<16x40xf32>,
    %c0_157 = arith.constant 0 : index
    %c18_158 = arith.constant 18 : index
    %115 = vector.load %arg13[%c0_157, %c18_158] : memref<16x256xf32, #tpu.memory_space<vmem>>, vector<16x40xf32>
    %c368_159 = arith.constant 368 : index
    %c64_160 = arith.constant 64 : index
    %116 = vector.load %arg14[%c368_159, %c64_160] : memref<400x256xf32, #tpu.memory_space<vmem>>, vector<16x40xf32>
    tpu.vector_store %arg14[%c368_159, %c64_160], %115 {strides = array<i32>} : memref<400x256xf32, #tpu.memory_space<vmem>>, vector<16x40xf32>,
    %c0_161 = arith.constant 0 : index
    %c82 = arith.constant 82 : index
    %117 = vector.load %arg13[%c0_161, %c82] : memref<16x256xf32, #tpu.memory_space<vmem>>, vector<16x40xf32>
    %c384_162 = arith.constant 384 : index
    %c64_163 = arith.constant 64 : index
    %118 = vector.load %arg14[%c384_162, %c64_163] : memref<400x256xf32, #tpu.memory_space<vmem>>, vector<16x40xf32>
    tpu.vector_store %arg14[%c384_162, %c64_163], %117 {strides = array<i32>} : memref<400x256xf32, #tpu.memory_space<vmem>>, vector<16x40xf32>,
    %c0_164 = arith.constant 0 : index
    %c128_165 = arith.constant 128 : index
    %119 = vector.load %arg13[%c0_164, %c128_165] : memref<16x256xf32, #tpu.memory_space<vmem>>, vector<16x40xf32>
    %c0_166 = arith.constant 0 : index
    %c128_167 = arith.constant 128 : index
    %120 = vector.load %arg14[%c0_166, %c128_167] : memref<400x256xf32, #tpu.memory_space<vmem>>, vector<16x40xf32>
    tpu.vector_store %arg14[%c0_166, %c128_167], %119 {strides = array<i32>} : memref<400x256xf32, #tpu.memory_space<vmem>>, vector<16x40xf32>,
    %c0_168 = arith.constant 0 : index
    %c192_169 = arith.constant 192 : index
    %121 = vector.load %arg13[%c0_168, %c192_169] : memref<16x256xf32, #tpu.memory_space<vmem>>, vector<16x40xf32>
    %c16_170 = arith.constant 16 : index
    %c128_171 = arith.constant 128 : index
    %122 = vector.load %arg14[%c16_170, %c128_171] : memref<400x256xf32, #tpu.memory_space<vmem>>, vector<16x40xf32>
    tpu.vector_store %arg14[%c16_170, %c128_171], %121 {strides = array<i32>} : memref<400x256xf32, #tpu.memory_space<vmem>>, vector<16x40xf32>,
    %c0_172 = arith.constant 0 : index
    %c129_173 = arith.constant 129 : index
    %123 = vector.load %arg13[%c0_172, %c129_173] : memref<16x256xf32, #tpu.memory_space<vmem>>, vector<16x40xf32>
    %c32_174 = arith.constant 32 : index
    %c128_175 = arith.constant 128 : index
    %124 = vector.load %arg14[%c32_174, %c128_175] : memref<400x256xf32, #tpu.memory_space<vmem>>, vector<16x40xf32>
    tpu.vector_store %arg14[%c32_174, %c128_175], %123 {strides = array<i32>} : memref<400x256xf32, #tpu.memory_space<vmem>>, vector<16x40xf32>,
    %c0_176 = arith.constant 0 : index
    %c193_177 = arith.constant 193 : index
    %125 = vector.load %arg13[%c0_176, %c193_177] : memref<16x256xf32, #tpu.memory_space<vmem>>, vector<16x40xf32>
    %c48_178 = arith.constant 48 : index
    %c128_179 = arith.constant 128 : index
    %126 = vector.load %arg14[%c48_178, %c128_179] : memref<400x256xf32, #tpu.memory_space<vmem>>, vector<16x40xf32>
    tpu.vector_store %arg14[%c48_178, %c128_179], %125 {strides = array<i32>} : memref<400x256xf32, #tpu.memory_space<vmem>>, vector<16x40xf32>,
    %c0_180 = arith.constant 0 : index
    %c130_181 = arith.constant 130 : index
    %127 = vector.load %arg13[%c0_180, %c130_181] : memref<16x256xf32, #tpu.memory_space<vmem>>, vector<16x40xf32>
    %c64_182 = arith.constant 64 : index
    %c128_183 = arith.constant 128 : index
    %128 = vector.load %arg14[%c64_182, %c128_183] : memref<400x256xf32, #tpu.memory_space<vmem>>, vector<16x40xf32>
    tpu.vector_store %arg14[%c64_182, %c128_183], %127 {strides = array<i32>} : memref<400x256xf32, #tpu.memory_space<vmem>>, vector<16x40xf32>,
    %c0_184 = arith.constant 0 : index
    %c8_185 = arith.constant 8 : index
    %129 = vector.load %arg13[%c0_184, %c8_185] : memref<16x256xf32, #tpu.memory_space<vmem>>, vector<16x40xf32>
    %c80_186 = arith.constant 80 : index
    %c128_187 = arith.constant 128 : index
    %130 = vector.load %arg14[%c80_186, %c128_187] : memref<400x256xf32, #tpu.memory_space<vmem>>, vector<16x40xf32>
    tpu.vector_store %arg14[%c80_186, %c128_187], %129 {strides = array<i32>} : memref<400x256xf32, #tpu.memory_space<vmem>>, vector<16x40xf32>,
    %c0_188 = arith.constant 0 : index
    %c72_189 = arith.constant 72 : index
    %131 = vector.load %arg13[%c0_188, %c72_189] : memref<16x256xf32, #tpu.memory_space<vmem>>, vector<16x40xf32>
    %c96_190 = arith.constant 96 : index
    %c128_191 = arith.constant 128 : index
    %132 = vector.load %arg14[%c96_190, %c128_191] : memref<400x256xf32, #tpu.memory_space<vmem>>, vector<16x40xf32>
    tpu.vector_store %arg14[%c96_190, %c128_191], %131 {strides = array<i32>} : memref<400x256xf32, #tpu.memory_space<vmem>>, vector<16x40xf32>,
    %c0_192 = arith.constant 0 : index
    %c9_193 = arith.constant 9 : index
    %133 = vector.load %arg13[%c0_192, %c9_193] : memref<16x256xf32, #tpu.memory_space<vmem>>, vector<16x40xf32>
    %c112_194 = arith.constant 112 : index
    %c128_195 = arith.constant 128 : index
    %134 = vector.load %arg14[%c112_194, %c128_195] : memref<400x256xf32, #tpu.memory_space<vmem>>, vector<16x40xf32>
    tpu.vector_store %arg14[%c112_194, %c128_195], %133 {strides = array<i32>} : memref<400x256xf32, #tpu.memory_space<vmem>>, vector<16x40xf32>,
    %c0_196 = arith.constant 0 : index
    %c73_197 = arith.constant 73 : index
    %135 = vector.load %arg13[%c0_196, %c73_197] : memref<16x256xf32, #tpu.memory_space<vmem>>, vector<16x40xf32>
    %c128_198 = arith.constant 128 : index
    %c128_199 = arith.constant 128 : index
    %136 = vector.load %arg14[%c128_198, %c128_199] : memref<400x256xf32, #tpu.memory_space<vmem>>, vector<16x40xf32>
    tpu.vector_store %arg14[%c128_198, %c128_199], %135 {strides = array<i32>} : memref<400x256xf32, #tpu.memory_space<vmem>>, vector<16x40xf32>,
    %c0_200 = arith.constant 0 : index
    %c10_201 = arith.constant 10 : index
    %137 = vector.load %arg13[%c0_200, %c10_201] : memref<16x256xf32, #tpu.memory_space<vmem>>, vector<16x40xf32>
    %c144_202 = arith.constant 144 : index
    %c128_203 = arith.constant 128 : index
    %138 = vector.load %arg14[%c144_202, %c128_203] : memref<400x256xf32, #tpu.memory_space<vmem>>, vector<16x40xf32>
    tpu.vector_store %arg14[%c144_202, %c128_203], %137 {strides = array<i32>} : memref<400x256xf32, #tpu.memory_space<vmem>>, vector<16x40xf32>,
    %c0_204 = arith.constant 0 : index
    %c136_205 = arith.constant 136 : index
    %139 = vector.load %arg13[%c0_204, %c136_205] : memref<16x256xf32, #tpu.memory_space<vmem>>, vector<16x40xf32>
    %c160_206 = arith.constant 160 : index
    %c128_207 = arith.constant 128 : index
    %140 = vector.load %arg14[%c160_206, %c128_207] : memref<400x256xf32, #tpu.memory_space<vmem>>, vector<16x40xf32>
    tpu.vector_store %arg14[%c160_206, %c128_207], %139 {strides = array<i32>} : memref<400x256xf32, #tpu.memory_space<vmem>>, vector<16x40xf32>,
    %c0_208 = arith.constant 0 : index
    %c200_209 = arith.constant 200 : index
    %141 = vector.load %arg13[%c0_208, %c200_209] : memref<16x256xf32, #tpu.memory_space<vmem>>, vector<16x40xf32>
    %c176_210 = arith.constant 176 : index
    %c128_211 = arith.constant 128 : index
    %142 = vector.load %arg14[%c176_210, %c128_211] : memref<400x256xf32, #tpu.memory_space<vmem>>, vector<16x40xf32>
    tpu.vector_store %arg14[%c176_210, %c128_211], %141 {strides = array<i32>} : memref<400x256xf32, #tpu.memory_space<vmem>>, vector<16x40xf32>,
    %c0_212 = arith.constant 0 : index
    %c137_213 = arith.constant 137 : index
    %143 = vector.load %arg13[%c0_212, %c137_213] : memref<16x256xf32, #tpu.memory_space<vmem>>, vector<16x40xf32>
    %c192_214 = arith.constant 192 : index
    %c128_215 = arith.constant 128 : index
    %144 = vector.load %arg14[%c192_214, %c128_215] : memref<400x256xf32, #tpu.memory_space<vmem>>, vector<16x40xf32>
    tpu.vector_store %arg14[%c192_214, %c128_215], %143 {strides = array<i32>} : memref<400x256xf32, #tpu.memory_space<vmem>>, vector<16x40xf32>,
    %c0_216 = arith.constant 0 : index
    %c201_217 = arith.constant 201 : index
    %145 = vector.load %arg13[%c0_216, %c201_217] : memref<16x256xf32, #tpu.memory_space<vmem>>, vector<16x40xf32>
    %c208_218 = arith.constant 208 : index
    %c128_219 = arith.constant 128 : index
    %146 = vector.load %arg14[%c208_218, %c128_219] : memref<400x256xf32, #tpu.memory_space<vmem>>, vector<16x40xf32>
    tpu.vector_store %arg14[%c208_218, %c128_219], %145 {strides = array<i32>} : memref<400x256xf32, #tpu.memory_space<vmem>>, vector<16x40xf32>,
    %c0_220 = arith.constant 0 : index
    %c138_221 = arith.constant 138 : index
    %147 = vector.load %arg13[%c0_220, %c138_221] : memref<16x256xf32, #tpu.memory_space<vmem>>, vector<16x40xf32>
    %c224_222 = arith.constant 224 : index
    %c128_223 = arith.constant 128 : index
    %148 = vector.load %arg14[%c224_222, %c128_223] : memref<400x256xf32, #tpu.memory_space<vmem>>, vector<16x40xf32>
    tpu.vector_store %arg14[%c224_222, %c128_223], %147 {strides = array<i32>} : memref<400x256xf32, #tpu.memory_space<vmem>>, vector<16x40xf32>,
    %c0_224 = arith.constant 0 : index
    %c16_225 = arith.constant 16 : index
    %149 = vector.load %arg13[%c0_224, %c16_225] : memref<16x256xf32, #tpu.memory_space<vmem>>, vector<16x40xf32>
    %c240_226 = arith.constant 240 : index
    %c128_227 = arith.constant 128 : index
    %150 = vector.load %arg14[%c240_226, %c128_227] : memref<400x256xf32, #tpu.memory_space<vmem>>, vector<16x40xf32>
    tpu.vector_store %arg14[%c240_226, %c128_227], %149 {strides = array<i32>} : memref<400x256xf32, #tpu.memory_space<vmem>>, vector<16x40xf32>,
    %c0_228 = arith.constant 0 : index
    %c80_229 = arith.constant 80 : index
    %151 = vector.load %arg13[%c0_228, %c80_229] : memref<16x256xf32, #tpu.memory_space<vmem>>, vector<16x40xf32>
    %c256_230 = arith.constant 256 : index
    %c128_231 = arith.constant 128 : index
    %152 = vector.load %arg14[%c256_230, %c128_231] : memref<400x256xf32, #tpu.memory_space<vmem>>, vector<16x40xf32>
    tpu.vector_store %arg14[%c256_230, %c128_231], %151 {strides = array<i32>} : memref<400x256xf32, #tpu.memory_space<vmem>>, vector<16x40xf32>,
    %c0_232 = arith.constant 0 : index
    %c17_233 = arith.constant 17 : index
    %153 = vector.load %arg13[%c0_232, %c17_233] : memref<16x256xf32, #tpu.memory_space<vmem>>, vector<16x40xf32>
    %c272_234 = arith.constant 272 : index
    %c128_235 = arith.constant 128 : index
    %154 = vector.load %arg14[%c272_234, %c128_235] : memref<400x256xf32, #tpu.memory_space<vmem>>, vector<16x40xf32>
    tpu.vector_store %arg14[%c272_234, %c128_235], %153 {strides = array<i32>} : memref<400x256xf32, #tpu.memory_space<vmem>>, vector<16x40xf32>,
    %c0_236 = arith.constant 0 : index
    %c81_237 = arith.constant 81 : index
    %155 = vector.load %arg13[%c0_236, %c81_237] : memref<16x256xf32, #tpu.memory_space<vmem>>, vector<16x40xf32>
    %c288_238 = arith.constant 288 : index
    %c128_239 = arith.constant 128 : index
    %156 = vector.load %arg14[%c288_238, %c128_239] : memref<400x256xf32, #tpu.memory_space<vmem>>, vector<16x40xf32>
    tpu.vector_store %arg14[%c288_238, %c128_239], %155 {strides = array<i32>} : memref<400x256xf32, #tpu.memory_space<vmem>>, vector<16x40xf32>,
    %c0_240 = arith.constant 0 : index
    %c18_241 = arith.constant 18 : index
    %157 = vector.load %arg13[%c0_240, %c18_241] : memref<16x256xf32, #tpu.memory_space<vmem>>, vector<16x40xf32>
    %c304_242 = arith.constant 304 : index
    %c128_243 = arith.constant 128 : index
    %158 = vector.load %arg14[%c304_242, %c128_243] : memref<400x256xf32, #tpu.memory_space<vmem>>, vector<16x40xf32>
    tpu.vector_store %arg14[%c304_242, %c128_243], %157 {strides = array<i32>} : memref<400x256xf32, #tpu.memory_space<vmem>>, vector<16x40xf32>,
    %c0_244 = arith.constant 0 : index
    %c144_245 = arith.constant 144 : index
    %159 = vector.load %arg13[%c0_244, %c144_245] : memref<16x256xf32, #tpu.memory_space<vmem>>, vector<16x40xf32>
    %c320_246 = arith.constant 320 : index
    %c128_247 = arith.constant 128 : index
    %160 = vector.load %arg14[%c320_246, %c128_247] : memref<400x256xf32, #tpu.memory_space<vmem>>, vector<16x40xf32>
    tpu.vector_store %arg14[%c320_246, %c128_247], %159 {strides = array<i32>} : memref<400x256xf32, #tpu.memory_space<vmem>>, vector<16x40xf32>,
    %c0_248 = arith.constant 0 : index
    %c208_249 = arith.constant 208 : index
    %161 = vector.load %arg13[%c0_248, %c208_249] : memref<16x256xf32, #tpu.memory_space<vmem>>, vector<16x40xf32>
    %c336_250 = arith.constant 336 : index
    %c128_251 = arith.constant 128 : index
    %162 = vector.load %arg14[%c336_250, %c128_251] : memref<400x256xf32, #tpu.memory_space<vmem>>, vector<16x40xf32>
    tpu.vector_store %arg14[%c336_250, %c128_251], %161 {strides = array<i32>} : memref<400x256xf32, #tpu.memory_space<vmem>>, vector<16x40xf32>,
    %c0_252 = arith.constant 0 : index
    %c145 = arith.constant 145 : index
    %163 = vector.load %arg13[%c0_252, %c145] : memref<16x256xf32, #tpu.memory_space<vmem>>, vector<16x40xf32>
    %c352_253 = arith.constant 352 : index
    %c128_254 = arith.constant 128 : index
    %164 = vector.load %arg14[%c352_253, %c128_254] : memref<400x256xf32, #tpu.memory_space<vmem>>, vector<16x40xf32>
    tpu.vector_store %arg14[%c352_253, %c128_254], %163 {strides = array<i32>} : memref<400x256xf32, #tpu.memory_space<vmem>>, vector<16x40xf32>,
    %c0_255 = arith.constant 0 : index
    %c209 = arith.constant 209 : index
    %165 = vector.load %arg13[%c0_255, %c209] : memref<16x256xf32, #tpu.memory_space<vmem>>, vector<16x40xf32>
    %c368_256 = arith.constant 368 : index
    %c128_257 = arith.constant 128 : index
    %166 = vector.load %arg14[%c368_256, %c128_257] : memref<400x256xf32, #tpu.memory_space<vmem>>, vector<16x40xf32>
    tpu.vector_store %arg14[%c368_256, %c128_257], %165 {strides = array<i32>} : memref<400x256xf32, #tpu.memory_space<vmem>>, vector<16x40xf32>,
    %c0_258 = arith.constant 0 : index
    %c146 = arith.constant 146 : index
    %167 = vector.load %arg13[%c0_258, %c146] : memref<16x256xf32, #tpu.memory_space<vmem>>, vector<16x40xf32>
    %c384_259 = arith.constant 384 : index
    %c128_260 = arith.constant 128 : index
    %168 = vector.load %arg14[%c384_259, %c128_260] : memref<400x256xf32, #tpu.memory_space<vmem>>, vector<16x40xf32>
    tpu.vector_store %arg14[%c384_259, %c128_260], %167 {strides = array<i32>} : memref<400x256xf32, #tpu.memory_space<vmem>>, vector<16x40xf32>,
    %c0_261 = arith.constant 0 : index
    %c192_262 = arith.constant 192 : index
    %169 = vector.load %arg13[%c0_261, %c192_262] : memref<16x256xf32, #tpu.memory_space<vmem>>, vector<16x40xf32>
    %c0_263 = arith.constant 0 : index
    %c192_264 = arith.constant 192 : index
    %170 = vector.load %arg14[%c0_263, %c192_264] : memref<400x256xf32, #tpu.memory_space<vmem>>, vector<16x40xf32>
    tpu.vector_store %arg14[%c0_263, %c192_264], %169 {strides = array<i32>} : memref<400x256xf32, #tpu.memory_space<vmem>>, vector<16x40xf32>,
    %c0_265 = arith.constant 0 : index
    %c129_266 = arith.constant 129 : index
    %171 = vector.load %arg13[%c0_265, %c129_266] : memref<16x256xf32, #tpu.memory_space<vmem>>, vector<16x40xf32>
    %c16_267 = arith.constant 16 : index
    %c192_268 = arith.constant 192 : index
    %172 = vector.load %arg14[%c16_267, %c192_268] : memref<400x256xf32, #tpu.memory_space<vmem>>, vector<16x40xf32>
    tpu.vector_store %arg14[%c16_267, %c192_268], %171 {strides = array<i32>} : memref<400x256xf32, #tpu.memory_space<vmem>>, vector<16x40xf32>,
    %c0_269 = arith.constant 0 : index
    %c193_270 = arith.constant 193 : index
    %173 = vector.load %arg13[%c0_269, %c193_270] : memref<16x256xf32, #tpu.memory_space<vmem>>, vector<16x40xf32>
    %c32_271 = arith.constant 32 : index
    %c192_272 = arith.constant 192 : index
    %174 = vector.load %arg14[%c32_271, %c192_272] : memref<400x256xf32, #tpu.memory_space<vmem>>, vector<16x40xf32>
    tpu.vector_store %arg14[%c32_271, %c192_272], %173 {strides = array<i32>} : memref<400x256xf32, #tpu.memory_space<vmem>>, vector<16x40xf32>,
    %c0_273 = arith.constant 0 : index
    %c130_274 = arith.constant 130 : index
    %175 = vector.load %arg13[%c0_273, %c130_274] : memref<16x256xf32, #tpu.memory_space<vmem>>, vector<16x40xf32>
    %c48_275 = arith.constant 48 : index
    %c192_276 = arith.constant 192 : index
    %176 = vector.load %arg14[%c48_275, %c192_276] : memref<400x256xf32, #tpu.memory_space<vmem>>, vector<16x40xf32>
    tpu.vector_store %arg14[%c48_275, %c192_276], %175 {strides = array<i32>} : memref<400x256xf32, #tpu.memory_space<vmem>>, vector<16x40xf32>,
    %c0_277 = arith.constant 0 : index
    %c194_278 = arith.constant 194 : index
    %177 = vector.load %arg13[%c0_277, %c194_278] : memref<16x256xf32, #tpu.memory_space<vmem>>, vector<16x40xf32>
    %c64_279 = arith.constant 64 : index
    %c192_280 = arith.constant 192 : index
    %178 = vector.load %arg14[%c64_279, %c192_280] : memref<400x256xf32, #tpu.memory_space<vmem>>, vector<16x40xf32>
    tpu.vector_store %arg14[%c64_279, %c192_280], %177 {strides = array<i32>} : memref<400x256xf32, #tpu.memory_space<vmem>>, vector<16x40xf32>,
    %c0_281 = arith.constant 0 : index
    %c72_282 = arith.constant 72 : index
    %179 = vector.load %arg13[%c0_281, %c72_282] : memref<16x256xf32, #tpu.memory_space<vmem>>, vector<16x40xf32>
    %c80_283 = arith.constant 80 : index
    %c192_284 = arith.constant 192 : index
    %180 = vector.load %arg14[%c80_283, %c192_284] : memref<400x256xf32, #tpu.memory_space<vmem>>, vector<16x40xf32>
    tpu.vector_store %arg14[%c80_283, %c192_284], %179 {strides = array<i32>} : memref<400x256xf32, #tpu.memory_space<vmem>>, vector<16x40xf32>,
    %c0_285 = arith.constant 0 : index
    %c9_286 = arith.constant 9 : index
    %181 = vector.load %arg13[%c0_285, %c9_286] : memref<16x256xf32, #tpu.memory_space<vmem>>, vector<16x40xf32>
    %c96_287 = arith.constant 96 : index
    %c192_288 = arith.constant 192 : index
    %182 = vector.load %arg14[%c96_287, %c192_288] : memref<400x256xf32, #tpu.memory_space<vmem>>, vector<16x40xf32>
    tpu.vector_store %arg14[%c96_287, %c192_288], %181 {strides = array<i32>} : memref<400x256xf32, #tpu.memory_space<vmem>>, vector<16x40xf32>,
    %c0_289 = arith.constant 0 : index
    %c73_290 = arith.constant 73 : index
    %183 = vector.load %arg13[%c0_289, %c73_290] : memref<16x256xf32, #tpu.memory_space<vmem>>, vector<16x40xf32>
    %c112_291 = arith.constant 112 : index
    %c192_292 = arith.constant 192 : index
    %184 = vector.load %arg14[%c112_291, %c192_292] : memref<400x256xf32, #tpu.memory_space<vmem>>, vector<16x40xf32>
    tpu.vector_store %arg14[%c112_291, %c192_292], %183 {strides = array<i32>} : memref<400x256xf32, #tpu.memory_space<vmem>>, vector<16x40xf32>,
    %c0_293 = arith.constant 0 : index
    %c10_294 = arith.constant 10 : index
    %185 = vector.load %arg13[%c0_293, %c10_294] : memref<16x256xf32, #tpu.memory_space<vmem>>, vector<16x40xf32>
    %c128_295 = arith.constant 128 : index
    %c192_296 = arith.constant 192 : index
    %186 = vector.load %arg14[%c128_295, %c192_296] : memref<400x256xf32, #tpu.memory_space<vmem>>, vector<16x40xf32>
    tpu.vector_store %arg14[%c128_295, %c192_296], %185 {strides = array<i32>} : memref<400x256xf32, #tpu.memory_space<vmem>>, vector<16x40xf32>,
    %c0_297 = arith.constant 0 : index
    %c74_298 = arith.constant 74 : index
    %187 = vector.load %arg13[%c0_297, %c74_298] : memref<16x256xf32, #tpu.memory_space<vmem>>, vector<16x40xf32>
    %c144_299 = arith.constant 144 : index
    %c192_300 = arith.constant 192 : index
    %188 = vector.load %arg14[%c144_299, %c192_300] : memref<400x256xf32, #tpu.memory_space<vmem>>, vector<16x40xf32>
    tpu.vector_store %arg14[%c144_299, %c192_300], %187 {strides = array<i32>} : memref<400x256xf32, #tpu.memory_space<vmem>>, vector<16x40xf32>,
    %c0_301 = arith.constant 0 : index
    %c200_302 = arith.constant 200 : index
    %189 = vector.load %arg13[%c0_301, %c200_302] : memref<16x256xf32, #tpu.memory_space<vmem>>, vector<16x40xf32>
    %c160_303 = arith.constant 160 : index
    %c192_304 = arith.constant 192 : index
    %190 = vector.load %arg14[%c160_303, %c192_304] : memref<400x256xf32, #tpu.memory_space<vmem>>, vector<16x40xf32>
    tpu.vector_store %arg14[%c160_303, %c192_304], %189 {strides = array<i32>} : memref<400x256xf32, #tpu.memory_space<vmem>>, vector<16x40xf32>,
    %c0_305 = arith.constant 0 : index
    %c137_306 = arith.constant 137 : index
    %191 = vector.load %arg13[%c0_305, %c137_306] : memref<16x256xf32, #tpu.memory_space<vmem>>, vector<16x40xf32>
    %c176_307 = arith.constant 176 : index
    %c192_308 = arith.constant 192 : index
    %192 = vector.load %arg14[%c176_307, %c192_308] : memref<400x256xf32, #tpu.memory_space<vmem>>, vector<16x40xf32>
    tpu.vector_store %arg14[%c176_307, %c192_308], %191 {strides = array<i32>} : memref<400x256xf32, #tpu.memory_space<vmem>>, vector<16x40xf32>,
    %c0_309 = arith.constant 0 : index
    %c201_310 = arith.constant 201 : index
    %193 = vector.load %arg13[%c0_309, %c201_310] : memref<16x256xf32, #tpu.memory_space<vmem>>, vector<16x40xf32>
    %c192_311 = arith.constant 192 : index
    %c192_312 = arith.constant 192 : index
    %194 = vector.load %arg14[%c192_311, %c192_312] : memref<400x256xf32, #tpu.memory_space<vmem>>, vector<16x40xf32>
    tpu.vector_store %arg14[%c192_311, %c192_312], %193 {strides = array<i32>} : memref<400x256xf32, #tpu.memory_space<vmem>>, vector<16x40xf32>,
    %c0_313 = arith.constant 0 : index
    %c138_314 = arith.constant 138 : index
    %195 = vector.load %arg13[%c0_313, %c138_314] : memref<16x256xf32, #tpu.memory_space<vmem>>, vector<16x40xf32>
    %c208_315 = arith.constant 208 : index
    %c192_316 = arith.constant 192 : index
    %196 = vector.load %arg14[%c208_315, %c192_316] : memref<400x256xf32, #tpu.memory_space<vmem>>, vector<16x40xf32>
    tpu.vector_store %arg14[%c208_315, %c192_316], %195 {strides = array<i32>} : memref<400x256xf32, #tpu.memory_space<vmem>>, vector<16x40xf32>,
    %c0_317 = arith.constant 0 : index
    %c202_318 = arith.constant 202 : index
    %197 = vector.load %arg13[%c0_317, %c202_318] : memref<16x256xf32, #tpu.memory_space<vmem>>, vector<16x40xf32>
    %c224_319 = arith.constant 224 : index
    %c192_320 = arith.constant 192 : index
    %198 = vector.load %arg14[%c224_319, %c192_320] : memref<400x256xf32, #tpu.memory_space<vmem>>, vector<16x40xf32>
    tpu.vector_store %arg14[%c224_319, %c192_320], %197 {strides = array<i32>} : memref<400x256xf32, #tpu.memory_space<vmem>>, vector<16x40xf32>,
    %c0_321 = arith.constant 0 : index
    %c80_322 = arith.constant 80 : index
    %199 = vector.load %arg13[%c0_321, %c80_322] : memref<16x256xf32, #tpu.memory_space<vmem>>, vector<16x40xf32>
    %c240_323 = arith.constant 240 : index
    %c192_324 = arith.constant 192 : index
    %200 = vector.load %arg14[%c240_323, %c192_324] : memref<400x256xf32, #tpu.memory_space<vmem>>, vector<16x40xf32>
    tpu.vector_store %arg14[%c240_323, %c192_324], %199 {strides = array<i32>} : memref<400x256xf32, #tpu.memory_space<vmem>>, vector<16x40xf32>,
    %c0_325 = arith.constant 0 : index
    %c17_326 = arith.constant 17 : index
    %201 = vector.load %arg13[%c0_325, %c17_326] : memref<16x256xf32, #tpu.memory_space<vmem>>, vector<16x40xf32>
    %c256_327 = arith.constant 256 : index
    %c192_328 = arith.constant 192 : index
    %202 = vector.load %arg14[%c256_327, %c192_328] : memref<400x256xf32, #tpu.memory_space<vmem>>, vector<16x40xf32>
    tpu.vector_store %arg14[%c256_327, %c192_328], %201 {strides = array<i32>} : memref<400x256xf32, #tpu.memory_space<vmem>>, vector<16x40xf32>,
    %c0_329 = arith.constant 0 : index
    %c81_330 = arith.constant 81 : index
    %203 = vector.load %arg13[%c0_329, %c81_330] : memref<16x256xf32, #tpu.memory_space<vmem>>, vector<16x40xf32>
    %c272_331 = arith.constant 272 : index
    %c192_332 = arith.constant 192 : index
    %204 = vector.load %arg14[%c272_331, %c192_332] : memref<400x256xf32, #tpu.memory_space<vmem>>, vector<16x40xf32>
    tpu.vector_store %arg14[%c272_331, %c192_332], %203 {strides = array<i32>} : memref<400x256xf32, #tpu.memory_space<vmem>>, vector<16x40xf32>,
    %c0_333 = arith.constant 0 : index
    %c18_334 = arith.constant 18 : index
    %205 = vector.load %arg13[%c0_333, %c18_334] : memref<16x256xf32, #tpu.memory_space<vmem>>, vector<16x40xf32>
    %c288_335 = arith.constant 288 : index
    %c192_336 = arith.constant 192 : index
    %206 = vector.load %arg14[%c288_335, %c192_336] : memref<400x256xf32, #tpu.memory_space<vmem>>, vector<16x40xf32>
    tpu.vector_store %arg14[%c288_335, %c192_336], %205 {strides = array<i32>} : memref<400x256xf32, #tpu.memory_space<vmem>>, vector<16x40xf32>,
    %c0_337 = arith.constant 0 : index
    %c82_338 = arith.constant 82 : index
    %207 = vector.load %arg13[%c0_337, %c82_338] : memref<16x256xf32, #tpu.memory_space<vmem>>, vector<16x40xf32>
    %c304_339 = arith.constant 304 : index
    %c192_340 = arith.constant 192 : index
    %208 = vector.load %arg14[%c304_339, %c192_340] : memref<400x256xf32, #tpu.memory_space<vmem>>, vector<16x40xf32>
    tpu.vector_store %arg14[%c304_339, %c192_340], %207 {strides = array<i32>} : memref<400x256xf32, #tpu.memory_space<vmem>>, vector<16x40xf32>,
    %c0_341 = arith.constant 0 : index
    %c208_342 = arith.constant 208 : index
    %209 = vector.load %arg13[%c0_341, %c208_342] : memref<16x256xf32, #tpu.memory_space<vmem>>, vector<16x40xf32>
    %c320_343 = arith.constant 320 : index
    %c192_344 = arith.constant 192 : index
    %210 = vector.load %arg14[%c320_343, %c192_344] : memref<400x256xf32, #tpu.memory_space<vmem>>, vector<16x40xf32>
    tpu.vector_store %arg14[%c320_343, %c192_344], %209 {strides = array<i32>} : memref<400x256xf32, #tpu.memory_space<vmem>>, vector<16x40xf32>,
    %c0_345 = arith.constant 0 : index
    %c145_346 = arith.constant 145 : index
    %211 = vector.load %arg13[%c0_345, %c145_346] : memref<16x256xf32, #tpu.memory_space<vmem>>, vector<16x40xf32>
    %c336_347 = arith.constant 336 : index
    %c192_348 = arith.constant 192 : index
    %212 = vector.load %arg14[%c336_347, %c192_348] : memref<400x256xf32, #tpu.memory_space<vmem>>, vector<16x40xf32>
    tpu.vector_store %arg14[%c336_347, %c192_348], %211 {strides = array<i32>} : memref<400x256xf32, #tpu.memory_space<vmem>>, vector<16x40xf32>,
    %c0_349 = arith.constant 0 : index
    %c209_350 = arith.constant 209 : index
    %213 = vector.load %arg13[%c0_349, %c209_350] : memref<16x256xf32, #tpu.memory_space<vmem>>, vector<16x40xf32>
    %c352_351 = arith.constant 352 : index
    %c192_352 = arith.constant 192 : index
    %214 = vector.load %arg14[%c352_351, %c192_352] : memref<400x256xf32, #tpu.memory_space<vmem>>, vector<16x40xf32>
    tpu.vector_store %arg14[%c352_351, %c192_352], %213 {strides = array<i32>} : memref<400x256xf32, #tpu.memory_space<vmem>>, vector<16x40xf32>,
    %c0_353 = arith.constant 0 : index
    %c146_354 = arith.constant 146 : index
    %215 = vector.load %arg13[%c0_353, %c146_354] : memref<16x256xf32, #tpu.memory_space<vmem>>, vector<16x40xf32>
    %c368_355 = arith.constant 368 : index
    %c192_356 = arith.constant 192 : index
    %216 = vector.load %arg14[%c368_355, %c192_356] : memref<400x256xf32, #tpu.memory_space<vmem>>, vector<16x40xf32>
    tpu.vector_store %arg14[%c368_355, %c192_356], %215 {strides = array<i32>} : memref<400x256xf32, #tpu.memory_space<vmem>>, vector<16x40xf32>,
    %c0_357 = arith.constant 0 : index
    %c210 = arith.constant 210 : index
    %217 = vector.load %arg13[%c0_357, %c210] : memref<16x256xf32, #tpu.memory_space<vmem>>, vector<16x40xf32>
    %c384_358 = arith.constant 384 : index
    %c192_359 = arith.constant 192 : index
    %218 = vector.load %arg14[%c384_358, %c192_359] : memref<400x256xf32, #tpu.memory_space<vmem>>, vector<16x40xf32>
    tpu.vector_store %arg14[%c384_358, %c192_359], %217 {strides = array<i32>} : memref<400x256xf32, #tpu.memory_space<vmem>>, vector<16x40xf32>,
    %c0_360 = arith.constant 0 : index
    %c0_361 = arith.constant 0 : index
    %219 = vector.load %arg4[%c0_360, %c0_361] : memref<32x400xf32, #tpu.memory_space<vmem>>, vector<32x400xf32>
    %c0_362 = arith.constant 0 : index
    %c0_363 = arith.constant 0 : index
    %220 = vector.load %arg14[%c0_362, %c0_363] : memref<400x256xf32, #tpu.memory_space<vmem>>, vector<400x256xf32>
    %cst_364 = arith.constant dense<0.000000e+00> : vector<32x256xf32>
    %221 = tpu.matmul %219, %220, %cst_364 {dimension_numbers = #tpu.dot_dimension_numbers<[1], [0], [0], [1], [0, 0, 1, 1], [], []>} : vector<32x400xf32>, vector<400x256xf32>, vector<32x256xf32> -> vector<32x256xf32>
    %222 = vector.extract_strided_slice %221 {offsets = [0, 0], sizes = [32, 64], strides = [1, 1]} : vector<32x256xf32> to vector<32x64xf32>
    %223 = vector.extract_strided_slice %221 {offsets = [0, 64], sizes = [32, 64], strides = [1, 1]} : vector<32x256xf32> to vector<32x64xf32>
    %224 = arith.maximumf %222, %223 : vector<32x64xf32>
    %225 = vector.extract_strided_slice %221 {offsets = [0, 128], sizes = [32, 64], strides = [1, 1]} : vector<32x256xf32> to vector<32x64xf32>
    %226 = vector.extract_strided_slice %221 {offsets = [0, 192], sizes = [32, 64], strides = [1, 1]} : vector<32x256xf32> to vector<32x64xf32>
    %227 = arith.maximumf %225, %226 : vector<32x64xf32>
    %228 = arith.maximumf %224, %227 : vector<32x64xf32>
    %c0_365 = arith.constant 0 : index
    %c0_366 = arith.constant 0 : index
    %229 = vector.load %arg5[%c0_365, %c0_366] : memref<32x1xf32, #tpu.memory_space<vmem>>, vector<32x1xf32>
    %230 = vector.broadcast %229 : vector<32x1xf32> to vector<32x64xf32>
    %231 = arith.addf %228, %230 : vector<32x64xf32>
    %cst_367 = arith.constant 0.000000e+00 : f32
    %232 = vector.broadcast %cst_367 : f32 to vector<32x64xf32>
    %233 = arith.maximumf %231, %232 : vector<32x64xf32>
    %c0_368 = arith.constant 0 : index
    %c0_369 = arith.constant 0 : index
    %234 = vector.load %arg15[%c0_368, %c0_369] : memref<32x128xf32, #tpu.memory_space<vmem>>, vector<32x64xf32>
    tpu.vector_store %arg15[%c0_368, %c0_369], %233 {strides = array<i32>} : memref<32x128xf32, #tpu.memory_space<vmem>>, vector<32x64xf32>,
    %c0_370 = arith.constant 0 : index
    %c0_371 = arith.constant 0 : index
    %235 = vector.load %arg15[%c0_370, %c0_371] : memref<32x128xf32, #tpu.memory_space<vmem>>, vector<1x40xf32>
    %c0_372 = arith.constant 0 : index
    %c0_373 = arith.constant 0 : index
    %236 = vector.load %arg16[%c0_372, %c0_373] : memref<1x1280xf32, #tpu.memory_space<vmem>>, vector<1x40xf32>
    tpu.vector_store %arg16[%c0_372, %c0_373], %235 {strides = array<i32>} : memref<1x1280xf32, #tpu.memory_space<vmem>>, vector<1x40xf32>,
    %c1_374 = arith.constant 1 : index
    %c0_375 = arith.constant 0 : index
    %237 = vector.load %arg15[%c1_374, %c0_375] : memref<32x128xf32, #tpu.memory_space<vmem>>, vector<1x40xf32>
    %c0_376 = arith.constant 0 : index
    %c40 = arith.constant 40 : index
    %238 = vector.load %arg16[%c0_376, %c40] : memref<1x1280xf32, #tpu.memory_space<vmem>>, vector<1x40xf32>
    tpu.vector_store %arg16[%c0_376, %c40], %237 {strides = array<i32>} : memref<1x1280xf32, #tpu.memory_space<vmem>>, vector<1x40xf32>,
    %c2_377 = arith.constant 2 : index
    %c0_378 = arith.constant 0 : index
    %239 = vector.load %arg15[%c2_377, %c0_378] : memref<32x128xf32, #tpu.memory_space<vmem>>, vector<1x40xf32>
    %c0_379 = arith.constant 0 : index
    %c80_380 = arith.constant 80 : index
    %240 = vector.load %arg16[%c0_379, %c80_380] : memref<1x1280xf32, #tpu.memory_space<vmem>>, vector<1x40xf32>
    tpu.vector_store %arg16[%c0_379, %c80_380], %239 {strides = array<i32>} : memref<1x1280xf32, #tpu.memory_space<vmem>>, vector<1x40xf32>,
    %c3 = arith.constant 3 : index
    %c0_381 = arith.constant 0 : index
    %241 = vector.load %arg15[%c3, %c0_381] : memref<32x128xf32, #tpu.memory_space<vmem>>, vector<1x40xf32>
    %c0_382 = arith.constant 0 : index
    %c120 = arith.constant 120 : index
    %242 = vector.load %arg16[%c0_382, %c120] : memref<1x1280xf32, #tpu.memory_space<vmem>>, vector<1x40xf32>
    tpu.vector_store %arg16[%c0_382, %c120], %241 {strides = array<i32>} : memref<1x1280xf32, #tpu.memory_space<vmem>>, vector<1x40xf32>,
    %c4 = arith.constant 4 : index
    %c0_383 = arith.constant 0 : index
    %243 = vector.load %arg15[%c4, %c0_383] : memref<32x128xf32, #tpu.memory_space<vmem>>, vector<1x40xf32>
    %c0_384 = arith.constant 0 : index
    %c160_385 = arith.constant 160 : index
    %244 = vector.load %arg16[%c0_384, %c160_385] : memref<1x1280xf32, #tpu.memory_space<vmem>>, vector<1x40xf32>
    tpu.vector_store %arg16[%c0_384, %c160_385], %243 {strides = array<i32>} : memref<1x1280xf32, #tpu.memory_space<vmem>>, vector<1x40xf32>,
    %c5 = arith.constant 5 : index
    %c0_386 = arith.constant 0 : index
    %245 = vector.load %arg15[%c5, %c0_386] : memref<32x128xf32, #tpu.memory_space<vmem>>, vector<1x40xf32>
    %c0_387 = arith.constant 0 : index
    %c200_388 = arith.constant 200 : index
    %246 = vector.load %arg16[%c0_387, %c200_388] : memref<1x1280xf32, #tpu.memory_space<vmem>>, vector<1x40xf32>
    tpu.vector_store %arg16[%c0_387, %c200_388], %245 {strides = array<i32>} : memref<1x1280xf32, #tpu.memory_space<vmem>>, vector<1x40xf32>,
    %c6 = arith.constant 6 : index
    %c0_389 = arith.constant 0 : index
    %247 = vector.load %arg15[%c6, %c0_389] : memref<32x128xf32, #tpu.memory_space<vmem>>, vector<1x40xf32>
    %c0_390 = arith.constant 0 : index
    %c240_391 = arith.constant 240 : index
    %248 = vector.load %arg16[%c0_390, %c240_391] : memref<1x1280xf32, #tpu.memory_space<vmem>>, vector<1x40xf32>
    tpu.vector_store %arg16[%c0_390, %c240_391], %247 {strides = array<i32>} : memref<1x1280xf32, #tpu.memory_space<vmem>>, vector<1x40xf32>,
    %c7 = arith.constant 7 : index
    %c0_392 = arith.constant 0 : index
    %249 = vector.load %arg15[%c7, %c0_392] : memref<32x128xf32, #tpu.memory_space<vmem>>, vector<1x40xf32>
    %c0_393 = arith.constant 0 : index
    %c280 = arith.constant 280 : index
    %250 = vector.load %arg16[%c0_393, %c280] : memref<1x1280xf32, #tpu.memory_space<vmem>>, vector<1x40xf32>
    tpu.vector_store %arg16[%c0_393, %c280], %249 {strides = array<i32>} : memref<1x1280xf32, #tpu.memory_space<vmem>>, vector<1x40xf32>,
    %c8_394 = arith.constant 8 : index
    %c0_395 = arith.constant 0 : index
    %251 = vector.load %arg15[%c8_394, %c0_395] : memref<32x128xf32, #tpu.memory_space<vmem>>, vector<1x40xf32>
    %c0_396 = arith.constant 0 : index
    %c320_397 = arith.constant 320 : index
    %252 = vector.load %arg16[%c0_396, %c320_397] : memref<1x1280xf32, #tpu.memory_space<vmem>>, vector<1x40xf32>
    tpu.vector_store %arg16[%c0_396, %c320_397], %251 {strides = array<i32>} : memref<1x1280xf32, #tpu.memory_space<vmem>>, vector<1x40xf32>,
    %c9_398 = arith.constant 9 : index
    %c0_399 = arith.constant 0 : index
    %253 = vector.load %arg15[%c9_398, %c0_399] : memref<32x128xf32, #tpu.memory_space<vmem>>, vector<1x40xf32>
    %c0_400 = arith.constant 0 : index
    %c360 = arith.constant 360 : index
    %254 = vector.load %arg16[%c0_400, %c360] : memref<1x1280xf32, #tpu.memory_space<vmem>>, vector<1x40xf32>
    tpu.vector_store %arg16[%c0_400, %c360], %253 {strides = array<i32>} : memref<1x1280xf32, #tpu.memory_space<vmem>>, vector<1x40xf32>,
    %c10_401 = arith.constant 10 : index
    %c0_402 = arith.constant 0 : index
    %255 = vector.load %arg15[%c10_401, %c0_402] : memref<32x128xf32, #tpu.memory_space<vmem>>, vector<1x40xf32>
    %c0_403 = arith.constant 0 : index
    %c400 = arith.constant 400 : index
    %256 = vector.load %arg16[%c0_403, %c400] : memref<1x1280xf32, #tpu.memory_space<vmem>>, vector<1x40xf32>
    tpu.vector_store %arg16[%c0_403, %c400], %255 {strides = array<i32>} : memref<1x1280xf32, #tpu.memory_space<vmem>>, vector<1x40xf32>,
    %c11 = arith.constant 11 : index
    %c0_404 = arith.constant 0 : index
    %257 = vector.load %arg15[%c11, %c0_404] : memref<32x128xf32, #tpu.memory_space<vmem>>, vector<1x40xf32>
    %c0_405 = arith.constant 0 : index
    %c440 = arith.constant 440 : index
    %258 = vector.load %arg16[%c0_405, %c440] : memref<1x1280xf32, #tpu.memory_space<vmem>>, vector<1x40xf32>
    tpu.vector_store %arg16[%c0_405, %c440], %257 {strides = array<i32>} : memref<1x1280xf32, #tpu.memory_space<vmem>>, vector<1x40xf32>,
    %c12 = arith.constant 12 : index
    %c0_406 = arith.constant 0 : index
    %259 = vector.load %arg15[%c12, %c0_406] : memref<32x128xf32, #tpu.memory_space<vmem>>, vector<1x40xf32>
    %c0_407 = arith.constant 0 : index
    %c480 = arith.constant 480 : index
    %260 = vector.load %arg16[%c0_407, %c480] : memref<1x1280xf32, #tpu.memory_space<vmem>>, vector<1x40xf32>
    tpu.vector_store %arg16[%c0_407, %c480], %259 {strides = array<i32>} : memref<1x1280xf32, #tpu.memory_space<vmem>>, vector<1x40xf32>,
    %c13 = arith.constant 13 : index
    %c0_408 = arith.constant 0 : index
    %261 = vector.load %arg15[%c13, %c0_408] : memref<32x128xf32, #tpu.memory_space<vmem>>, vector<1x40xf32>
    %c0_409 = arith.constant 0 : index
    %c520 = arith.constant 520 : index
    %262 = vector.load %arg16[%c0_409, %c520] : memref<1x1280xf32, #tpu.memory_space<vmem>>, vector<1x40xf32>
    tpu.vector_store %arg16[%c0_409, %c520], %261 {strides = array<i32>} : memref<1x1280xf32, #tpu.memory_space<vmem>>, vector<1x40xf32>,
    %c14 = arith.constant 14 : index
    %c0_410 = arith.constant 0 : index
    %263 = vector.load %arg15[%c14, %c0_410] : memref<32x128xf32, #tpu.memory_space<vmem>>, vector<1x40xf32>
    %c0_411 = arith.constant 0 : index
    %c560 = arith.constant 560 : index
    %264 = vector.load %arg16[%c0_411, %c560] : memref<1x1280xf32, #tpu.memory_space<vmem>>, vector<1x40xf32>
    tpu.vector_store %arg16[%c0_411, %c560], %263 {strides = array<i32>} : memref<1x1280xf32, #tpu.memory_space<vmem>>, vector<1x40xf32>,
    %c15 = arith.constant 15 : index
    %c0_412 = arith.constant 0 : index
    %265 = vector.load %arg15[%c15, %c0_412] : memref<32x128xf32, #tpu.memory_space<vmem>>, vector<1x40xf32>
    %c0_413 = arith.constant 0 : index
    %c600 = arith.constant 600 : index
    %266 = vector.load %arg16[%c0_413, %c600] : memref<1x1280xf32, #tpu.memory_space<vmem>>, vector<1x40xf32>
    tpu.vector_store %arg16[%c0_413, %c600], %265 {strides = array<i32>} : memref<1x1280xf32, #tpu.memory_space<vmem>>, vector<1x40xf32>,
    %c16_414 = arith.constant 16 : index
    %c0_415 = arith.constant 0 : index
    %267 = vector.load %arg15[%c16_414, %c0_415] : memref<32x128xf32, #tpu.memory_space<vmem>>, vector<1x40xf32>
    %c0_416 = arith.constant 0 : index
    %c640 = arith.constant 640 : index
    %268 = vector.load %arg16[%c0_416, %c640] : memref<1x1280xf32, #tpu.memory_space<vmem>>, vector<1x40xf32>
    tpu.vector_store %arg16[%c0_416, %c640], %267 {strides = array<i32>} : memref<1x1280xf32, #tpu.memory_space<vmem>>, vector<1x40xf32>,
    %c17_417 = arith.constant 17 : index
    %c0_418 = arith.constant 0 : index
    %269 = vector.load %arg15[%c17_417, %c0_418] : memref<32x128xf32, #tpu.memory_space<vmem>>, vector<1x40xf32>
    %c0_419 = arith.constant 0 : index
    %c680 = arith.constant 680 : index
    %270 = vector.load %arg16[%c0_419, %c680] : memref<1x1280xf32, #tpu.memory_space<vmem>>, vector<1x40xf32>
    tpu.vector_store %arg16[%c0_419, %c680], %269 {strides = array<i32>} : memref<1x1280xf32, #tpu.memory_space<vmem>>, vector<1x40xf32>,
    %c18_420 = arith.constant 18 : index
    %c0_421 = arith.constant 0 : index
    %271 = vector.load %arg15[%c18_420, %c0_421] : memref<32x128xf32, #tpu.memory_space<vmem>>, vector<1x40xf32>
    %c0_422 = arith.constant 0 : index
    %c720 = arith.constant 720 : index
    %272 = vector.load %arg16[%c0_422, %c720] : memref<1x1280xf32, #tpu.memory_space<vmem>>, vector<1x40xf32>
    tpu.vector_store %arg16[%c0_422, %c720], %271 {strides = array<i32>} : memref<1x1280xf32, #tpu.memory_space<vmem>>, vector<1x40xf32>,
    %c19 = arith.constant 19 : index
    %c0_423 = arith.constant 0 : index
    %273 = vector.load %arg15[%c19, %c0_423] : memref<32x128xf32, #tpu.memory_space<vmem>>, vector<1x40xf32>
    %c0_424 = arith.constant 0 : index
    %c760 = arith.constant 760 : index
    %274 = vector.load %arg16[%c0_424, %c760] : memref<1x1280xf32, #tpu.memory_space<vmem>>, vector<1x40xf32>
    tpu.vector_store %arg16[%c0_424, %c760], %273 {strides = array<i32>} : memref<1x1280xf32, #tpu.memory_space<vmem>>, vector<1x40xf32>,
    %c20 = arith.constant 20 : index
    %c0_425 = arith.constant 0 : index
    %275 = vector.load %arg15[%c20, %c0_425] : memref<32x128xf32, #tpu.memory_space<vmem>>, vector<1x40xf32>
    %c0_426 = arith.constant 0 : index
    %c800 = arith.constant 800 : index
    %276 = vector.load %arg16[%c0_426, %c800] : memref<1x1280xf32, #tpu.memory_space<vmem>>, vector<1x40xf32>
    tpu.vector_store %arg16[%c0_426, %c800], %275 {strides = array<i32>} : memref<1x1280xf32, #tpu.memory_space<vmem>>, vector<1x40xf32>,
    %c21 = arith.constant 21 : index
    %c0_427 = arith.constant 0 : index
    %277 = vector.load %arg15[%c21, %c0_427] : memref<32x128xf32, #tpu.memory_space<vmem>>, vector<1x40xf32>
    %c0_428 = arith.constant 0 : index
    %c840 = arith.constant 840 : index
    %278 = vector.load %arg16[%c0_428, %c840] : memref<1x1280xf32, #tpu.memory_space<vmem>>, vector<1x40xf32>
    tpu.vector_store %arg16[%c0_428, %c840], %277 {strides = array<i32>} : memref<1x1280xf32, #tpu.memory_space<vmem>>, vector<1x40xf32>,
    %c22 = arith.constant 22 : index
    %c0_429 = arith.constant 0 : index
    %279 = vector.load %arg15[%c22, %c0_429] : memref<32x128xf32, #tpu.memory_space<vmem>>, vector<1x40xf32>
    %c0_430 = arith.constant 0 : index
    %c880 = arith.constant 880 : index
    %280 = vector.load %arg16[%c0_430, %c880] : memref<1x1280xf32, #tpu.memory_space<vmem>>, vector<1x40xf32>
    tpu.vector_store %arg16[%c0_430, %c880], %279 {strides = array<i32>} : memref<1x1280xf32, #tpu.memory_space<vmem>>, vector<1x40xf32>,
    %c23 = arith.constant 23 : index
    %c0_431 = arith.constant 0 : index
    %281 = vector.load %arg15[%c23, %c0_431] : memref<32x128xf32, #tpu.memory_space<vmem>>, vector<1x40xf32>
    %c0_432 = arith.constant 0 : index
    %c920 = arith.constant 920 : index
    %282 = vector.load %arg16[%c0_432, %c920] : memref<1x1280xf32, #tpu.memory_space<vmem>>, vector<1x40xf32>
    tpu.vector_store %arg16[%c0_432, %c920], %281 {strides = array<i32>} : memref<1x1280xf32, #tpu.memory_space<vmem>>, vector<1x40xf32>,
    %c24 = arith.constant 24 : index
    %c0_433 = arith.constant 0 : index
    %283 = vector.load %arg15[%c24, %c0_433] : memref<32x128xf32, #tpu.memory_space<vmem>>, vector<1x40xf32>
    %c0_434 = arith.constant 0 : index
    %c960 = arith.constant 960 : index
    %284 = vector.load %arg16[%c0_434, %c960] : memref<1x1280xf32, #tpu.memory_space<vmem>>, vector<1x40xf32>
    tpu.vector_store %arg16[%c0_434, %c960], %283 {strides = array<i32>} : memref<1x1280xf32, #tpu.memory_space<vmem>>, vector<1x40xf32>,
    %c25 = arith.constant 25 : index
    %c0_435 = arith.constant 0 : index
    %285 = vector.load %arg15[%c25, %c0_435] : memref<32x128xf32, #tpu.memory_space<vmem>>, vector<1x40xf32>
    %c0_436 = arith.constant 0 : index
    %c1000 = arith.constant 1000 : index
    %286 = vector.load %arg16[%c0_436, %c1000] : memref<1x1280xf32, #tpu.memory_space<vmem>>, vector<1x40xf32>
    tpu.vector_store %arg16[%c0_436, %c1000], %285 {strides = array<i32>} : memref<1x1280xf32, #tpu.memory_space<vmem>>, vector<1x40xf32>,
    %c26 = arith.constant 26 : index
    %c0_437 = arith.constant 0 : index
    %287 = vector.load %arg15[%c26, %c0_437] : memref<32x128xf32, #tpu.memory_space<vmem>>, vector<1x40xf32>
    %c0_438 = arith.constant 0 : index
    %c1040 = arith.constant 1040 : index
    %288 = vector.load %arg16[%c0_438, %c1040] : memref<1x1280xf32, #tpu.memory_space<vmem>>, vector<1x40xf32>
    tpu.vector_store %arg16[%c0_438, %c1040], %287 {strides = array<i32>} : memref<1x1280xf32, #tpu.memory_space<vmem>>, vector<1x40xf32>,
    %c27 = arith.constant 27 : index
    %c0_439 = arith.constant 0 : index
    %289 = vector.load %arg15[%c27, %c0_439] : memref<32x128xf32, #tpu.memory_space<vmem>>, vector<1x40xf32>
    %c0_440 = arith.constant 0 : index
    %c1080 = arith.constant 1080 : index
    %290 = vector.load %arg16[%c0_440, %c1080] : memref<1x1280xf32, #tpu.memory_space<vmem>>, vector<1x40xf32>
    tpu.vector_store %arg16[%c0_440, %c1080], %289 {strides = array<i32>} : memref<1x1280xf32, #tpu.memory_space<vmem>>, vector<1x40xf32>,
    %c28 = arith.constant 28 : index
    %c0_441 = arith.constant 0 : index
    %291 = vector.load %arg15[%c28, %c0_441] : memref<32x128xf32, #tpu.memory_space<vmem>>, vector<1x40xf32>
    %c0_442 = arith.constant 0 : index
    %c1120 = arith.constant 1120 : index
    %292 = vector.load %arg16[%c0_442, %c1120] : memref<1x1280xf32, #tpu.memory_space<vmem>>, vector<1x40xf32>
    tpu.vector_store %arg16[%c0_442, %c1120], %291 {strides = array<i32>} : memref<1x1280xf32, #tpu.memory_space<vmem>>, vector<1x40xf32>,
    %c29 = arith.constant 29 : index
    %c0_443 = arith.constant 0 : index
    %293 = vector.load %arg15[%c29, %c0_443] : memref<32x128xf32, #tpu.memory_space<vmem>>, vector<1x40xf32>
    %c0_444 = arith.constant 0 : index
    %c1160 = arith.constant 1160 : index
    %294 = vector.load %arg16[%c0_444, %c1160] : memref<1x1280xf32, #tpu.memory_space<vmem>>, vector<1x40xf32>
    tpu.vector_store %arg16[%c0_444, %c1160], %293 {strides = array<i32>} : memref<1x1280xf32, #tpu.memory_space<vmem>>, vector<1x40xf32>,
    %c30 = arith.constant 30 : index
    %c0_445 = arith.constant 0 : index
    %295 = vector.load %arg15[%c30, %c0_445] : memref<32x128xf32, #tpu.memory_space<vmem>>, vector<1x40xf32>
    %c0_446 = arith.constant 0 : index
    %c1200 = arith.constant 1200 : index
    %296 = vector.load %arg16[%c0_446, %c1200] : memref<1x1280xf32, #tpu.memory_space<vmem>>, vector<1x40xf32>
    tpu.vector_store %arg16[%c0_446, %c1200], %295 {strides = array<i32>} : memref<1x1280xf32, #tpu.memory_space<vmem>>, vector<1x40xf32>,
    %c31 = arith.constant 31 : index
    %c0_447 = arith.constant 0 : index
    %297 = vector.load %arg15[%c31, %c0_447] : memref<32x128xf32, #tpu.memory_space<vmem>>, vector<1x40xf32>
    %c0_448 = arith.constant 0 : index
    %c1240 = arith.constant 1240 : index
    %298 = vector.load %arg16[%c0_448, %c1240] : memref<1x1280xf32, #tpu.memory_space<vmem>>, vector<1x40xf32>
    tpu.vector_store %arg16[%c0_448, %c1240], %297 {strides = array<i32>} : memref<1x1280xf32, #tpu.memory_space<vmem>>, vector<1x40xf32>,
    %c0_449 = arith.constant 0 : index
    %c0_450 = arith.constant 0 : index
    %299 = vector.load %arg16[%c0_449, %c0_450] : memref<1x1280xf32, #tpu.memory_space<vmem>>, vector<1x1280xf32>
    %c0_451 = arith.constant 0 : index
    %c0_452 = arith.constant 0 : index
    %300 = vector.load %arg6[%c0_451, %c0_452] : memref<1280x128xf32, #tpu.memory_space<vmem>>, vector<1280x128xf32>
    %cst_453 = arith.constant dense<0.000000e+00> : vector<1x128xf32>
    %301 = tpu.matmul %299, %300, %cst_453 {dimension_numbers = #tpu.dot_dimension_numbers<[1], [0], [0], [1], [0, 0, 1, 1], [], []>} : vector<1x1280xf32>, vector<1280x128xf32>, vector<1x128xf32> -> vector<1x128xf32>
    %c0_454 = arith.constant 0 : index
    %c0_455 = arith.constant 0 : index
    %302 = vector.load %arg7[%c0_454, %c0_455] : memref<1x128xf32, #tpu.memory_space<vmem>>, vector<1x128xf32>
    %303 = arith.addf %301, %302 : vector<1x128xf32>
    %cst_456 = arith.constant 0.000000e+00 : f32
    %304 = vector.broadcast %cst_456 : f32 to vector<1x128xf32>
    %305 = arith.maximumf %303, %304 : vector<1x128xf32>
    %c0_457 = arith.constant 0 : index
    %c0_458 = arith.constant 0 : index
    %306 = vector.load %arg8[%c0_457, %c0_458] : memref<128x128xf32, #tpu.memory_space<vmem>>, vector<128x128xf32>
    %cst_459 = arith.constant dense<0.000000e+00> : vector<1x128xf32>
    %307 = tpu.matmul %305, %306, %cst_459 {dimension_numbers = #tpu.dot_dimension_numbers<[1], [0], [0], [1], [0, 0, 1, 1], [], []>} : vector<1x128xf32>, vector<128x128xf32>, vector<1x128xf32> -> vector<1x128xf32>
    %c0_460 = arith.constant 0 : index
    %c0_461 = arith.constant 0 : index
    %308 = vector.load %arg9[%c0_460, %c0_461] : memref<1x128xf32, #tpu.memory_space<vmem>>, vector<1x128xf32>
    %309 = arith.addf %307, %308 : vector<1x128xf32>
    %cst_462 = arith.constant 0.000000e+00 : f32
    %310 = vector.broadcast %cst_462 : f32 to vector<1x128xf32>
    %311 = arith.maximumf %309, %310 : vector<1x128xf32>
    %c0_463 = arith.constant 0 : index
    %c0_464 = arith.constant 0 : index
    %312 = vector.load %arg10[%c0_463, %c0_464] : memref<128x128xf32, #tpu.memory_space<vmem>>, vector<128x128xf32>
    %cst_465 = arith.constant dense<0.000000e+00> : vector<1x128xf32>
    %313 = tpu.matmul %311, %312, %cst_465 {dimension_numbers = #tpu.dot_dimension_numbers<[1], [0], [0], [1], [0, 0, 1, 1], [], []>} : vector<1x128xf32>, vector<128x128xf32>, vector<1x128xf32> -> vector<1x128xf32>
    %c0_466 = arith.constant 0 : index
    %c0_467 = arith.constant 0 : index
    %314 = vector.load %arg11[%c0_466, %c0_467] : memref<1x128xf32, #tpu.memory_space<vmem>>, vector<1x128xf32>
    %315 = arith.addf %313, %314 : vector<1x128xf32>
    %c0_468 = arith.constant 0 : index
    %c0_469 = arith.constant 0 : index
    %c0_470 = arith.constant 0 : index
    %316 = vector.load %arg12[%c0_468, %c0_469, %c0_470] : memref<1x1x128xf32, #tpu.memory_space<vmem>>, vector<1x1x128xf32>
    %317 = vector.shape_cast %316 : vector<1x1x128xf32> to vector<1x128xf32>
    %318 = vector.shape_cast %315 : vector<1x128xf32> to vector<1x1x128xf32>
    tpu.vector_store %arg12[%c0_468, %c0_469, %c0_470], %318 {strides = array<i32>} : memref<1x1x128xf32, #tpu.memory_space<vmem>>, vector<1x1x128xf32>,
    return
  }
  func.func @transform_0(%arg0: i32) -> (i32, i32, i32) {
    %c0_i32 = arith.constant 0 : i32
    %c0_i32_0 = arith.constant 0 : i32
    %c0_i32_1 = arith.constant 0 : i32
    return %arg0, %c0_i32, %c0_i32_0 : i32, i32, i32
  }
  func.func @transform_1(%arg0: i32) -> (i32, i32) {
    %c0_i32 = arith.constant 0 : i32
    %c0_i32_0 = arith.constant 0 : i32
    %c0_i32_1 = arith.constant 0 : i32
    return %c0_i32, %c0_i32_0 : i32, i32
  }
  func.func @transform_2(%arg0: i32) -> (i32, i32) {
    %c0_i32 = arith.constant 0 : i32
    %c0_i32_0 = arith.constant 0 : i32
    %c0_i32_1 = arith.constant 0 : i32
    return %c0_i32, %c0_i32_0 : i32, i32
  }
  func.func @transform_3(%arg0: i32) -> (i32, i32) {
    %c0_i32 = arith.constant 0 : i32
    %c0_i32_0 = arith.constant 0 : i32
    %c0_i32_1 = arith.constant 0 : i32
    return %c0_i32, %c0_i32_0 : i32, i32
  }
  func.func @transform_4(%arg0: i32) -> (i32, i32) {
    %c0_i32 = arith.constant 0 : i32
    %c0_i32_0 = arith.constant 0 : i32
    %c0_i32_1 = arith.constant 0 : i32
    return %c0_i32, %c0_i32_0 : i32, i32
  }
  func.func @transform_5(%arg0: i32) -> (i32, i32) {
    %c0_i32 = arith.constant 0 : i32
    %c0_i32_0 = arith.constant 0 : i32
    %c0_i32_1 = arith.constant 0 : i32
    return %c0_i32, %c0_i32_0 : i32, i32
  }
  func.func @transform_6(%arg0: i32) -> (i32, i32) {
    %c0_i32 = arith.constant 0 : i32
    %c0_i32_0 = arith.constant 0 : i32
    %c0_i32_1 = arith.constant 0 : i32
    return %c0_i32, %c0_i32_0 : i32, i32
  }
  func.func @transform_7(%arg0: i32) -> (i32, i32) {
    %c0_i32 = arith.constant 0 : i32
    %c0_i32_0 = arith.constant 0 : i32
    %c0_i32_1 = arith.constant 0 : i32
    return %c0_i32, %c0_i32_0 : i32, i32
  }
  func.func @transform_8(%arg0: i32) -> (i32, i32) {
    %c0_i32 = arith.constant 0 : i32
    %c0_i32_0 = arith.constant 0 : i32
    %c0_i32_1 = arith.constant 0 : i32
    return %c0_i32, %c0_i32_0 : i32, i32
  }
  func.func @transform_9(%arg0: i32) -> (i32, i32) {
    %c0_i32 = arith.constant 0 : i32
    %c0_i32_0 = arith.constant 0 : i32
    %c0_i32_1 = arith.constant 0 : i32
    return %c0_i32, %c0_i32_0 : i32, i32
  }
  func.func @transform_10(%arg0: i32) -> (i32, i32) {
    %c0_i32 = arith.constant 0 : i32
    %c0_i32_0 = arith.constant 0 : i32
    %c0_i32_1 = arith.constant 0 : i32
    return %c0_i32, %c0_i32_0 : i32, i32
  }
  func.func @transform_11(%arg0: i32) -> (i32, i32, i32) {
    %c0_i32 = arith.constant 0 : i32
    %c0_i32_0 = arith.constant 0 : i32
    %c0_i32_1 = arith.constant 0 : i32
    return %arg0, %c0_i32, %c0_i32_0 : i32, i32, i32
  }
}

</mosaic_0001>

<bundles_post_ra>
// kernel: lenet_forward.1
= control target key start
LH: loop header
LB: loop body
LE: loop exit
PB: predicated region body
PF: predicated region fallthrough
CT: control target
= control target key end

     0   :  { %s7023_s0 = inlined_call_operand.vmem [shape: f32[2,75,1024], index: 0, kind: input, shape index: {}]   ;;  %s7024_s1 = inlined_call_operand.vmem [shape: f32[16,75], index: 1, kind: input, shape index: {}]   ;;  %s7025_s2 = inlined_call_operand.vmem [shape: f32[16,1], index: 2, kind: input, shape index: {}]   ;;  %s7026_s3 = inlined_call_operand.vmem [shape: f32[32,400], index: 3, kind: input, shape index: {}]   ;;  %s7027_s4 = inlined_call_operand.vmem [shape: f32[32,1], index: 4, kind: input, shape index: {}]   ;;  %s7028_s5 = inlined_call_operand.vmem [shape: f32[1280,128], index: 5, kind: input, shape index: {}]   ;;  %s7029_s6 = inlined_call_operand.vmem [shape: f32[1,128], index: 6, kind: input, shape index: {}]   ;;  %s7030_s7 = inlined_call_operand.vmem [shape: f32[128,128], index: 7, kind: input, shape index: {}]   ;;  %s7031_s8 = inlined_call_operand.vmem [shape: f32[1,128], index: 8, kind: input, shape index: {}]   ;;  %s7032_s9 = inlined_call_operand.vmem [shape: f32[128,128], index: 9, kind: input, shape index: {}]   ;;  %s7033_s10 = inlined_call_operand.vmem [shape: f32[1,128], index: 10, kind: input, shape index: {}]   ;;  %s7034_s11 = inlined_call_operand.hbm [shape: f32[2,1,128], index: 11, kind: output, shape index: {}]  }
   0x1   :  { %7098 = sst [smem:[#allocation9_spill]] %s7023_s0 }
   0x2   :  { %7099 = sst [smem:[#allocation10_spill]] %s7024_s1 }
   0x3   :  { %7100 = sst [smem:[#allocation11_spill]] %s7025_s2 }
   0x4   :  { %7101 = sst [smem:[#allocation12_spill]] %s7026_s3 }
   0x5   :  { %7102 = sst [smem:[#allocation13_spill]] %s7027_s4 }
   0x6   :  { %16 = vsyncpa [#allocation7], 0 }
   0x7   :  { %18 = vsyncpa [#allocation7 + $0x1], 0  ;;  %s4941_s17 = smov 0   ;;  %s4943_s18 = smov 0  }
   0x8   :  { %s4945_s19 = smov 0   ;;  %s4947_s20 = smov 0  }
   0x9 LB: > { %s4962_s21 = sadd.s32 4294967295, %s4845_s20   ;;  %s3967_s22 = sadd.s32 4294967294, %s4845_s20   ;;  %s4845_s20 = sphi %s4947_s20, %s7235_s20   ;;  %s4841_s19 = sphi %s4945_s19, %s7234_s19   ;;  %s4837_s18 = sphi %s4943_s18, %s7233_s18   ;;  %s4833_s17 = sphi %s4941_s17, %s7232_s17  }
   0xa   : > { %s4966_s23 = sadd.s32 1, %s4845_s20   ;;  %s267_s24 = sadd.s32 1, %s4841_s19 }
   0xb   : > { %s264_s25 = ssub.s32 %s4845_s20, %s4966_s23  ;;  %p277_p0 = scmp.ne.s32.totalorder %s4841_s19, %s4837_s18 }
   0xc   : > { %p265_p1 = scmp.eq.s32.totalorder %s264_s25, 0  ;;  %p278_p2 = scmp.eq.s32.totalorder %s4962_s21, 1 }
   0xd   : > { %p283_p3 = scmp.ne.s32.totalorder %s4837_s18, %s4833_s17  ;;  %p284_p4 = scmp.eq.s32.totalorder %s3967_s22, 1 }
   0xe   : > { %s4977_s26 = scalar_select %p265_p1, %s4841_s19, %s267_s24  }
   0xf   : > { %p4979_p5 = por %p278_p2, %p277_p0  ;;  %p4983_p6 = por %p284_p4, %p283_p3 }
  0x10   : > { %p3970_p7 = scmp.ge.s32.totalorder %s4845_s20, 1  ;;  %p340_p8 = scmp.lt.s32.totalorder %s4845_s20, 3 }
  0x12   : > { %p341_p9 = pnand %p3970_p7, %p340_p8 }
  0x13   : > { %p379_p10 = scmp.lt.s32.totalorder (!%p341_p9), %s4962_s21, 1  ;;  %v4847_v0 = vmov (!%p341_p9), 0.0   ;;  %s7105_s2 = sld [smem:[#allocation11_spill]] (!%p341_p9)  ;;  %v4848_v2 = vmov (!%p341_p9), 0   ;;  %vm473_vm0 = vcmask (!%p341_p9), 1042432   ;;  %vm4849_vm1 = vmmov (!%p341_p9), 1  }
  0x14   : > { %344 = sbr.rel (%p341_p9) target bundleno = 2099 (0x833), region = 64  ;;  %562 = vmatprep.mubr.f32.mxu0 (!%p341_p9), %v4847_v0  ;;  %842 = vst [vmem:[#allocation3] sm:$0xff] (!%p341_p9), %v4847_v0  ;;  %843 = vst [vmem:[#allocation3 + $0x8] sm:$0xff] (!%p341_p9), %v4847_v0  ;;  %639 = vmatprep.mubr.f32.mxu1 (!%p341_p9), %v4847_v0  ;;  %s7106_s0 = sld [smem:[#allocation9_spill]] (!%p341_p9)  ;;  %vm466_vm3 = vcmask (!%p341_p9), 613376   ;;  %vm944_vm4 = vcmask (!%p341_p9), 326656  }
  0x15   : > { %844 = vst [vmem:[#allocation3 + $0x10] sm:$0xff] (!%p341_p9), %v4847_v0  ;;  %845 = vst [vmem:[#allocation3 + $0x18] sm:$0xff] (!%p341_p9), %v4847_v0  ;;  %4781 = vset.pattern.permute.xlu0 (!%p341_p9), %v4848_v2  ;;  %4782 = vset.pattern.permute.xlu1 (!%p341_p9), %v4848_v2  ;;  %s7109_s1 = sld [smem:[#allocation10_spill]] (!%p341_p9)  ;;  %vm1229_vm5 = vcmask (!%p341_p9), 851456   ;;  %s4851_s14 = smov (!%p341_p9), 63   ;;  %vm2212_vm6 = vcmask (!%p341_p9), 130048  }
  0x16   : > { %846 = vst [vmem:[#allocation3 + $0x20] sm:$0xff] (!%p341_p9), %v4847_v0  ;;  %847 = vst [vmem:[#allocation3 + $0x28] sm:$0xff] (!%p341_p9), %v4847_v0  ;;  %s4852_s15 = smov (!%p341_p9), 127   ;;  %s4853_s16 = smov (!%p341_p9), 62   ;;  %vm2479_vm7 = vcmask (!%p341_p9), 523264  }
  0x17   : > { %848 = vst [vmem:[#allocation3 + $0x30] sm:$0xff] (!%p341_p9), %v4847_v0  ;;  %849 = vst [vmem:[#allocation3 + $0x38] sm:$0xff] (!%p341_p9), %v4847_v0  ;;  %s7035_s22 = smov (!%p341_p9), 126   ;;  %s7037_s25 = smov (!%p341_p9), 56  }
  0x18   : > { %850 = vst [vmem:[#allocation3 + $0x40] sm:$0xff] (!%p341_p9), %v4847_v0  ;;  %851 = vst [vmem:[#allocation3 + $0x48] sm:$0xff] (!%p341_p9), %v4847_v0  ;;  %s4857_s29 = smov (!%p341_p9), 55   ;;  %s4858_s30 = smov (!%p341_p9), 119  }
  0x19   : > { %852 = vst [vmem:[#allocation3 + $0x50] sm:$0xff] (!%p341_p9), %v4847_v0  ;;  %853 = vst [vmem:[#allocation3 + $0x58] sm:$0xff] (!%p341_p9), %v4847_v0  ;;  %v818_v1 = vld [vmem:[%s7105_s2] sm:$0xff] (!%p341_p9)  ;;  %v819_v3 = vld [vmem:[%s7105_s2 + $0x8] sm:$0xff] (!%p341_p9)  ;;  %s7114_s3 = sld [smem:[#allocation12_spill]] (!%p341_p9)  ;;  %s7117_s4 = sld [smem:[#allocation13_spill]] (!%p341_p9) }
  0x1a   : > { %854 = vst [vmem:[#allocation3 + $0x60] sm:$0xff] (!%p341_p9), %v4847_v0  ;;  %855 = vst [vmem:[#allocation3 + $0x68] sm:$0xff] (!%p341_p9), %v4847_v0  ;;  %822 = vperm.xlu0 (!%p341_p9), %4781, %v818_v1   ;;  %s7125_s2 = smov (!%p341_p9), 24  }
  0x1b   : > { %856 = vst [vmem:[#allocation3 + $0x70] sm:$0xff] %v4847_v0  ;;  %857 = vst [vmem:[#allocation3 + $0x78] sm:$0xff] %v4847_v0  ;;  %s380_s12 = scalar_select %p379_p10, %s4962_s21, 1 }
  0x1c   : > { %858 = vst [vmem:[#allocation3 + $0x80] sm:$0xff] %v4847_v0  ;;  %859 = vst [vmem:[#allocation3 + $0x88] sm:$0xff] %v4847_v0 }
  0x1d   : > { %860 = vst [vmem:[#allocation3 + $0x90] sm:$0xff] %v4847_v0  ;;  %861 = vst [vmem:[#allocation3 + $0x98] sm:$0xff] %v4847_v0  ;;  %s4708_s13 = smul.u32 640, %s380_s12  ;;  %s7039_s12 = smov 54  }
  0x1e   : > { %862 = vst [vmem:[#allocation3 + $0xa0] sm:$0xff] %v4847_v0  ;;  %863 = vst [vmem:[#allocation3 + $0xa8] sm:$0xff] %v4847_v0  ;;  %827 = vperm.xlu0 %4781, %v819_v3  }
  0x1f   : > { %864 = vst [vmem:[#allocation3 + $0xb0] sm:$0xff] %v4847_v0  ;;  %865 = vst [vmem:[#allocation3 + $0xb8] sm:$0xff] %v4847_v0  ;;  %s5104_s24 = scalar_lea.vmem %s7106_s0, %s4708_s13  ;;  %s7047_s13 = smov 64  }
  0x20   : > { %866 = vst [vmem:[#allocation3 + $0xc0] sm:$0xff] %v4847_v0  ;;  %867 = vst [vmem:[#allocation3 + $0xc8] sm:$0xff] %v4847_v0  ;;  %v387_v4 = vld [vmem:[%s5104_s24 + $0x8] sm:$0xff]  ;;  %v389_v6 = vld [vmem:[%s5104_s24 + $0x18] sm:$0xff]  ;;  %s7059_s0 = smov 104  }
  0x21   : > { %868 = vst [vmem:[#allocation3 + $0xd0] sm:$0xff] %v4847_v0  ;;  %869 = vst [vmem:[#allocation3 + $0xd8] sm:$0xff] %v4847_v0  ;;  %v395_v5 = vld [vmem:[%s5104_s24 + $0x48] sm:$0xff]  ;;  %v397_v8 = vld [vmem:[%s5104_s24 + $0x58] sm:$0xff] }
  0x22   : > { %870 = vst [vmem:[#allocation3 + $0xe0] sm:$0xff] %v4847_v0  ;;  %871 = vst [vmem:[#allocation3 + $0xe8] sm:$0xff] %v4847_v0  ;;  %v4304_v7 = vpack.c.bf16 %v395_v5, %v387_v4  ;;  %v386_v9 = vld [vmem:[%s5104_s24] sm:$0xff]  ;;  %v4326_v11 = vpack.c.bf16 %v397_v8, %v389_v6  ;;  %v388_v13 = vld [vmem:[%s5104_s24 + $0x10] sm:$0xff] }
  0x23   : > { %872 = vst [vmem:[#allocation3 + $0xf0] sm:$0xff] %v4847_v0  ;;  %873 = vst [vmem:[#allocation3 + $0xf8] sm:$0xff] %v4847_v0  ;;  %v394_v10 = vld [vmem:[%s5104_s24 + $0x40] sm:$0xff]  ;;  %v396_v14 = vld [vmem:[%s5104_s24 + $0x50] sm:$0xff] }
  0x24   : > { %874 = vst [vmem:[#allocation3 + $0x100] sm:$0xff] %v4847_v0  ;;  %875 = vst [vmem:[#allocation3 + $0x108] sm:$0xff] %v4847_v0  ;;  %v4306_v12 = vpack.c.bf16 %v394_v10, %v386_v9  ;;  %v403_v15 = vld [vmem:[%s5104_s24 + $0x88] sm:$0xff]  ;;  %4305 = vmatprep.subr.bf16.mxu0 %v4304_v7  ;;  %v4328_v16 = vpack.c.bf16 %v396_v14, %v388_v13  ;;  %v405_v18 = vld [vmem:[%s5104_s24 + $0x98] sm:$0xff]  ;;  %4327 = vmatprep.subr.bf16.mxu1 %v4326_v11 }
  0x25   : > { %876 = vst [vmem:[#allocation3 + $0x110] sm:$0xff] %v4847_v0  ;;  %877 = vst [vmem:[#allocation3 + $0x118] sm:$0xff] %v4847_v0  ;;  %v411_v17 = vld [vmem:[%s5104_s24 + $0xc8] sm:$0xff]  ;;  %v413_v19 = vld [vmem:[%s5104_s24 + $0xd8] sm:$0xff] }
  0x26   : > { %878 = vst [vmem:[#allocation3 + $0x120] sm:$0xff] %v4847_v0  ;;  %879 = vst [vmem:[#allocation3 + $0x128] sm:$0xff] %v4847_v0  ;;  %4307 = vmatpush1.bf16.msra.mxu0 %v4306_v12  ;;  %v4308_v20 = vpack.c.bf16 %v411_v17, %v403_v15  ;;  %v4330_v21 = vpack.c.bf16 %v413_v19, %v405_v18  ;;  %v402_v22 = vld [vmem:[%s5104_s24 + $0x80] sm:$0xff]  ;;  %v404_v24 = vld [vmem:[%s5104_s24 + $0x90] sm:$0xff]  ;;  %4329 = vmatpush1.bf16.msra.mxu1 %v4328_v16 }
  0x27   : > { %880 = vst [vmem:[#allocation3 + $0x130] sm:$0xff] %v4847_v0  ;;  %881 = vst [vmem:[#allocation3 + $0x138] sm:$0xff] %v4847_v0  ;;  %v410_v23 = vld [vmem:[%s5104_s24 + $0xc0] sm:$0xff]  ;;  %v412_v26 = vld [vmem:[%s5104_s24 + $0xd0] sm:$0xff] }
  0x28   : > { %882 = vst [vmem:[#allocation3 + $0x140] sm:$0xff] %v4847_v0  ;;  %883 = vst [vmem:[#allocation3 + $0x148] sm:$0xff] %v4847_v0  ;;  %v4310_v25 = vpack.c.bf16 %v410_v23, %v402_v22  ;;  %v419_v27 = vld [vmem:[%s5104_s24 + $0x108] sm:$0xff]  ;;  %4309 = vmatprep.subr.bf16.mxu0 %v4308_v20  ;;  %4331 = vmatprep.subr.bf16.mxu1 %v4330_v21  ;;  %v4332_v29 = vpack.c.bf16 %v412_v26, %v404_v24  ;;  %v421_v31 = vld [vmem:[%s5104_s24 + $0x118] sm:$0xff] }
  0x29   : > { %884 = vst [vmem:[#allocation3 + $0x150] sm:$0xff] %v4847_v0  ;;  %885 = vst [vmem:[#allocation3 + $0x158] sm:$0xff] %v4847_v0  ;;  %v427_v28 = vld [vmem:[%s5104_s24 + $0x148] sm:$0xff]  ;;  %v429_v32 = vld [vmem:[%s5104_s24 + $0x158] sm:$0xff] }
  0x2a   : > { %886 = vst [vmem:[#allocation3 + $0x160] sm:$0xff] %v4847_v0  ;;  %887 = vst [vmem:[#allocation3 + $0x168] sm:$0xff] %v4847_v0  ;;  %v4312_v30 = vpack.c.bf16 %v427_v28, %v419_v27  ;;  %v418_v33 = vld [vmem:[%s5104_s24 + $0x100] sm:$0xff]  ;;  %v4334_v34 = vpack.c.bf16 %v429_v32, %v421_v31  ;;  %v420_v36 = vld [vmem:[%s5104_s24 + $0x110] sm:$0xff]  ;;  %4311 = vmatpush1.bf16.msra.mxu0 %v4310_v25  ;;  %4333 = vmatpush1.bf16.msra.mxu1 %v4332_v29 }
  0x2b   : > { %888 = vst [vmem:[#allocation3 + $0x170] sm:$0xff] %v4847_v0  ;;  %889 = vst [vmem:[#allocation3 + $0x178] sm:$0xff] %v4847_v0  ;;  %v426_v35 = vld [vmem:[%s5104_s24 + $0x140] sm:$0xff]  ;;  %v428_v37 = vld [vmem:[%s5104_s24 + $0x150] sm:$0xff] }
  0x2c   : > { %890 = vst [vmem:[#allocation3 + $0x180] sm:$0xff] %v4847_v0  ;;  %891 = vst [vmem:[#allocation3 + $0x188] sm:$0xff] %v4847_v0  ;;  %v4314_v38 = vpack.c.bf16 %v426_v35, %v418_v33  ;;  %v435_v39 = vld [vmem:[%s5104_s24 + $0x188] sm:$0xff]  ;;  %v437_v41 = vld [vmem:[%s5104_s24 + $0x198] sm:$0xff]  ;;  %4313 = vmatprep.subr.bf16.mxu0 %v4312_v30  ;;  %v4336_v42 = vpack.c.bf16 %v428_v37, %v420_v36  ;;  %4335 = vmatprep.subr.bf16.mxu1 %v4334_v34 }
  0x2d   : > { %892 = vst [vmem:[#allocation3 + $0x190] sm:$0xff] %v4847_v0  ;;  %893 = vst [vmem:[#allocation3 + $0x198] sm:$0xff] %v4847_v0  ;;  %v443_v40 = vld [vmem:[%s5104_s24 + $0x1c8] sm:$0xff]  ;;  %v445_v44 = vld [vmem:[%s5104_s24 + $0x1d8] sm:$0xff] }
  0x2e   : > { %894 = vst [vmem:[#allocation3 + $0x1a0] sm:$0xff] %v4847_v0  ;;  %895 = vst [vmem:[#allocation3 + $0x1a8] sm:$0xff] %v4847_v0  ;;  %v4316_v43 = vpack.c.bf16 %v443_v40, %v435_v39  ;;  %v434_v45 = vld [vmem:[%s5104_s24 + $0x180] sm:$0xff]  ;;  %v4338_v47 = vpack.c.bf16 %v445_v44, %v437_v41  ;;  %v436_v48 = vld [vmem:[%s5104_s24 + $0x190] sm:$0xff]  ;;  %4315 = vmatpush1.bf16.msra.mxu0 %v4314_v38  ;;  %4337 = vmatpush1.bf16.msra.mxu1 %v4336_v42 }
  0x2f   : > { %896 = vst [vmem:[#allocation3 + $0x1b0] sm:$0xff] %v4847_v0  ;;  %897 = vst [vmem:[#allocation3 + $0x1b8] sm:$0xff] %v4847_v0  ;;  %v442_v46 = vld [vmem:[%s5104_s24 + $0x1c0] sm:$0xff]  ;;  %v444_v49 = vld [vmem:[%s5104_s24 + $0x1d0] sm:$0xff] }
  0x30   : > { %898 = vst [vmem:[#allocation3 + $0x1c0] sm:$0xff] %v4847_v0  ;;  %899 = vst [vmem:[#allocation3 + $0x1c8] sm:$0xff] %v4847_v0  ;;  %v451_v50 = vld [vmem:[%s5104_s24 + $0x208] sm:$0xff]  ;;  %v453_v52 = vld [vmem:[%s5104_s24 + $0x218] sm:$0xff]  ;;  %v4318_v54 = vpack.c.bf16 %v442_v46, %v434_v45  ;;  %4317 = vmatprep.subr.bf16.mxu0 %v4316_v43  ;;  %v4340_v56 = vpack.c.bf16 %v444_v49, %v436_v48  ;;  %4339 = vmatprep.subr.bf16.mxu1 %v4338_v47 }
  0x31   : > { %900 = vst [vmem:[#allocation3 + $0x1d0] sm:$0xff] %v4847_v0  ;;  %901 = vst [vmem:[#allocation3 + $0x1d8] sm:$0xff] %v4847_v0  ;;  %v459_v51 = vld [vmem:[%s5104_s24 + $0x248] sm:$0x7]  ;;  %v461_v53 = vld [vmem:[%s5104_s24 + $0x258] sm:$0x7] }
  0x32   : > { %902 = vst [vmem:[#allocation3 + $0x1e0] sm:$0xff] %v4847_v0  ;;  %903 = vst [vmem:[#allocation3 + $0x1e8] sm:$0xff] %v4847_v0  ;;  %v4320_v57 = vpack.c.bf16 %v459_v51, %v451_v50  ;;  %v450_v58 = vld [vmem:[%s5104_s24 + $0x200] sm:$0xff]  ;;  %v452_v60 = vld [vmem:[%s5104_s24 + $0x210] sm:$0xff]  ;;  %v4342_v61 = vpack.c.bf16 %v461_v53, %v453_v52  ;;  %4319 = vmatpush1.bf16.msra.mxu0 %v4318_v54  ;;  %4341 = vmatpush1.bf16.msra.mxu1 %v4340_v56 }
  0x33   : > { %904 = vst [vmem:[#allocation3 + $0x1f0] sm:$0xff] %v4847_v0  ;;  %905 = vst [vmem:[#allocation3 + $0x1f8] sm:$0xff] %v4847_v0  ;;  %v458_v59 = vld [vmem:[%s5104_s24 + $0x240] sm:$0x7]  ;;  %v460_v62 = vld [vmem:[%s5104_s24 + $0x250] sm:$0x7] }
  0x34   : > { %906 = vst [vmem:[#allocation3 + $0x200] sm:$0xff] %v4847_v0  ;;  %907 = vst [vmem:[#allocation3 + $0x208] sm:$0xff] %v4847_v0  ;;  %v391_v63 = vld [vmem:[%s5104_s24 + $0x28] sm:$0xff]  ;;  %v393_v2 = vld [vmem:[%s5104_s24 + $0x38] sm:$0xff]  ;;  %v4323_v4 = vpack.c.bf16 %v458_v59, %v450_v58  ;;  %v4345_v5 = vpack.c.bf16 %v460_v62, %v452_v60 }
  0x35   : > { %908 = vst [vmem:[#allocation3 + $0x210] sm:$0xff] %v4847_v0  ;;  %909 = vst [vmem:[#allocation3 + $0x218] sm:$0xff] %v4847_v0  ;;  %v399_v1 = vld [vmem:[%s5104_s24 + $0x68] sm:$0xff]  ;;  %v401_v3 = vld [vmem:[%s5104_s24 + $0x78] sm:$0xff] }
  0x36   : > { %910 = vst [vmem:[#allocation3 + $0x220] sm:$0xff] %v4847_v0  ;;  %911 = vst [vmem:[#allocation3 + $0x228] sm:$0xff] %v4847_v0  ;;  %v4348_v6 = vpack.c.bf16 %v399_v1, %v391_v63  ;;  %v390_v7 = vld [vmem:[%s5104_s24 + $0x20] sm:$0xff]  ;;  %v392_v9 = vld [vmem:[%s5104_s24 + $0x30] sm:$0xff]  ;;  %v4370_v10 = vpack.c.bf16 %v401_v3, %v393_v2 }
  0x37   : > { %912 = vst [vmem:[#allocation3 + $0x230] sm:$0xff] %v4847_v0  ;;  %913 = vst [vmem:[#allocation3 + $0x238] sm:$0xff] %v4847_v0  ;;  %v398_v8 = vld [vmem:[%s5104_s24 + $0x60] sm:$0xff]  ;;  %v400_v11 = vld [vmem:[%s5104_s24 + $0x70] sm:$0xff] }
  0x38   : > { %914 = vst [vmem:[#allocation3 + $0x240] sm:$0xff] %v4847_v0  ;;  %915 = vst [vmem:[#allocation3 + $0x248] sm:$0xff] %v4847_v0  ;;  %v407_v12 = vld [vmem:[%s5104_s24 + $0xa8] sm:$0xff]  ;;  %v409_v14 = vld [vmem:[%s5104_s24 + $0xb8] sm:$0xff]  ;;  %v4350_v17 = vpack.c.bf16 %v398_v8, %v390_v7  ;;  %v4372_v18 = vpack.c.bf16 %v400_v11, %v392_v9 }
  0x39   : > { %916 = vst [vmem:[#allocation3 + $0x250] sm:$0xff] %v4847_v0  ;;  %917 = vst [vmem:[#allocation3 + $0x258] sm:$0xff] %v4847_v0  ;;  %v415_v13 = vld [vmem:[%s5104_s24 + $0xe8] sm:$0xff]  ;;  %v417_v15 = vld [vmem:[%s5104_s24 + $0xf8] sm:$0xff] }
  0x3a   : > { %918 = vst [vmem:[#allocation3 + $0x260] sm:$0xff] %v4847_v0  ;;  %919 = vst [vmem:[#allocation3 + $0x268] sm:$0xff] %v4847_v0  ;;  %v5171_v16 = vld [vmem:[%s7109_s1] sm:$0xff]  ;;  %v4352_v19 = vpack.c.bf16 %v415_v13, %v407_v12  ;;  %v408_v22 = vld [vmem:[%s5104_s24 + $0xb0] sm:$0xff]  ;;  %v4374_v23 = vpack.c.bf16 %v417_v15, %v409_v14 }
  0x3b   : > { %920 = vst [vmem:[#allocation3 + $0x270] sm:$0xff] %v4847_v0  ;;  %921 = vst [vmem:[#allocation3 + $0x278] sm:$0xff] %v4847_v0  ;;  %v406_v20 = vld [vmem:[%s5104_s24 + $0xa0] sm:$0xff]  ;;  %v416_v24 = vld [vmem:[%s5104_s24 + $0xf0] sm:$0xff] }
  0x3c   : > { %922 = vst [vmem:[#allocation3 + $0x280] sm:$0xff] %v4847_v0  ;;  %923 = vst [vmem:[#allocation3 + $0x288] sm:$0xff] %v4847_v0  ;;  %v414_v21 = vld [vmem:[%s5104_s24 + $0xe0] sm:$0xff]  ;;  %v423_v25 = vld [vmem:[%s5104_s24 + $0x128] sm:$0xff]  ;;  %v4376_v31 = vpack.c.bf16 %v416_v24, %v408_v22 }
  0x3d   : > { %924 = vst [vmem:[#allocation3 + $0x290] sm:$0xff] %v4847_v0  ;;  %925 = vst [vmem:[#allocation3 + $0x298] sm:$0xff] %v4847_v0  ;;  %v431_v26 = vld [vmem:[%s5104_s24 + $0x168] sm:$0xff]  ;;  %v425_v27 = vld [vmem:[%s5104_s24 + $0x138] sm:$0xff]  ;;  %v4354_v29 = vpack.c.bf16 %v414_v21, %v406_v20 }
  0x3e   : > { %926 = vst [vmem:[#allocation3 + $0x2a0] sm:$0xff] %v4847_v0  ;;  %927 = vst [vmem:[#allocation3 + $0x2a8] sm:$0xff] %v4847_v0  ;;  %v433_v28 = vld [vmem:[%s5104_s24 + $0x178] sm:$0xff]  ;;  %v385_v30 = vld [vmem:[%s7109_s1 + $0x8] sm:$0xff]  ;;  %v4356_v32 = vpack.c.bf16 %v431_v26, %v423_v25 }
  0x3f   : > { %928 = vst [vmem:[#allocation3 + $0x2b0] sm:$0xff] %v4847_v0  ;;  %929 = vst [vmem:[#allocation3 + $0x2b8] sm:$0xff] %v4847_v0  ;;  %v422_v33 = vld [vmem:[%s5104_s24 + $0x120] sm:$0xff]  ;;  %v424_v35 = vld [vmem:[%s5104_s24 + $0x130] sm:$0xff]  ;;  %v4378_v36 = vpack.c.bf16 %v433_v28, %v425_v27 }
  0x40   : > { %930 = vst [vmem:[#allocation3 + $0x2c0] sm:$0xff] %v4847_v0  ;;  %931 = vst [vmem:[#allocation3 + $0x2c8] sm:$0xff] %v4847_v0  ;;  %v430_v34 = vld [vmem:[%s5104_s24 + $0x160] sm:$0xff]  ;;  %v432_v37 = vld [vmem:[%s5104_s24 + $0x170] sm:$0xff] }
  0x41   : > { %932 = vst [vmem:[#allocation3 + $0x2d0] sm:$0xff] %v4847_v0  ;;  %933 = vst [vmem:[#allocation3 + $0x2d8] sm:$0xff] %v4847_v0  ;;  %v439_v38 = vld [vmem:[%s5104_s24 + $0x1a8] sm:$0xff]  ;;  %v441_v40 = vld [vmem:[%s5104_s24 + $0x1b8] sm:$0xff]  ;;  %v4358_v42 = vpack.c.bf16 %v430_v34, %v422_v33  ;;  %v4380_v43 = vpack.c.bf16 %v432_v37, %v424_v35 }
  0x42   : > { %934 = vst [vmem:[#allocation3 + $0x2e0] sm:$0xff] %v4847_v0  ;;  %935 = vst [vmem:[#allocation3 + $0x2e8] sm:$0xff] %v4847_v0  ;;  %v447_v39 = vld [vmem:[%s5104_s24 + $0x1e8] sm:$0xff]  ;;  %v449_v41 = vld [vmem:[%s5104_s24 + $0x1f8] sm:$0xff] }
  0x43   : > { %936 = vst [vmem:[#allocation3 + $0x2f0] sm:$0xff] %v4847_v0  ;;  %937 = vst [vmem:[#allocation3 + $0x2f8] sm:$0xff] %v4847_v0  ;;  %v4360_v44 = vpack.c.bf16 %v447_v39, %v439_v38  ;;  %v438_v45 = vld [vmem:[%s5104_s24 + $0x1a0] sm:$0xff]  ;;  %v440_v47 = vld [vmem:[%s5104_s24 + $0x1b0] sm:$0xff]  ;;  %v4382_v48 = vpack.c.bf16 %v449_v41, %v441_v40 }
  0x44   : > { %938 = vst [vmem:[#allocation3 + $0x300] sm:$0xff] %v4847_v0  ;;  %939 = vst [vmem:[#allocation3 + $0x308] sm:$0xff] %v4847_v0  ;;  %v446_v46 = vld [vmem:[%s5104_s24 + $0x1e0] sm:$0xff]  ;;  %v448_v49 = vld [vmem:[%s5104_s24 + $0x1f0] sm:$0xff] }
  0x45   : > { %940 = vst [vmem:[#allocation3 + $0x310] sm:$0xff] %v4847_v0  ;;  %941 = vst [vmem:[#allocation3 + $0x318] sm:$0xff] %v4847_v0  ;;  %v455_v50 = vld [vmem:[%s5104_s24 + $0x228] sm:$0xff]  ;;  %v457_v52 = vld [vmem:[%s5104_s24 + $0x238] sm:$0xff]  ;;  %v4362_v54 = vpack.c.bf16 %v446_v46, %v438_v45  ;;  %v4384_v56 = vpack.c.bf16 %v448_v49, %v440_v47 }
  0x46   : > { %vm5142_vm2 = vmpackc.low %vm473_vm0, %vm4849_vm1  ;;  %v463_v51 = vld [vmem:[%s5104_s24 + $0x268] sm:$0x7]  ;;  %v465_v53 = vld [vmem:[%s5104_s24 + $0x278] sm:$0x7]  ;;  %vm7061_vm0 = vcmask 982016  }
  0x47   : > { %4322 = vmatprep.subr.msk.bf16.mxu0 %vm5142_vm2, %v4320_v57  ;;  %4344 = vmatprep.subr.msk.bf16.mxu1 %vm5142_vm2, %v4342_v61  ;;  %v4364_v57 = vpack.c.bf16 %v463_v51, %v455_v50  ;;  %v454_v58 = vld [vmem:[%s5104_s24 + $0x220] sm:$0xff]  ;;  %v4386_v60 = vpack.c.bf16 %v465_v53, %v457_v52  ;;  %v456_v61 = vld [vmem:[%s5104_s24 + $0x230] sm:$0xff] }
  0x48   : > { %4325 = vmatpush1.bf16.msk.msra.mxu0 %vm5142_vm2, %v4323_v4  ;;  %4347 = vmatpush1.bf16.msk.msra.mxu1 %vm5142_vm2, %v4345_v5  ;;  %v462_v59 = vld [vmem:[%s5104_s24 + $0x260] sm:$0x7]  ;;  %v464_v62 = vld [vmem:[%s5104_s24 + $0x270] sm:$0x7]  ;;  %s7051_s24 = smov 120  }
  0x49   : > { %4349 = vmatprep.subr.bf16.mxu0 %v4348_v6  ;;  %4371 = vmatprep.subr.bf16.mxu1 %v4370_v10  ;;  %v4367_v63 = vpack.c.bf16 %v462_v59, %v454_v58  ;;  %v4389_v1 = vpack.c.bf16 %v464_v62, %v456_v61 }
  0x4b   : > { %3974 = vmatmul.mubr.msk.f32.vlgmr.msra.gmra.mrb[0].mxu0 %vm466_vm3, %v5171_v16  ;;  %3978 = vmatmul.mubr.msk.f32.vlgmr.msra.gmra.mrb[0].mxu1 %vm466_vm3, %v5171_v16 }
  0x4c   : > { %4351 = vmatpush1.bf16.msra.mxu0 %v4350_v17  ;;  %4373 = vmatpush1.bf16.msra.mxu1 %v4372_v18 }
  0x4d   : > { %4353 = vmatprep.subr.bf16.mxu0 %v4352_v19  ;;  %4375 = vmatprep.subr.bf16.mxu1 %v4374_v23 }
  0x4e   : > { %568 = vmatprep.mubr.f32.mxu0 %v4847_v0  ;;  %645 = vmatprep.mubr.f32.mxu1 %v4847_v0 }
  0x4f   : > { %3975 = vmatmul.mubr.msk.f32.gmra.mrb[2].mxu0 %vm466_vm3, %v385_v30  ;;  %3979 = vmatmul.mubr.msk.f32.gmra.mrb[2].mxu1 %vm466_vm3, %v385_v30 }
  0x50   : > { %4355 = vmatpush1.bf16.msra.mxu0 %v4354_v29  ;;  %4377 = vmatpush1.bf16.msra.mxu1 %v4376_v31 }
  0x51   : > { %4357 = vmatprep.subr.bf16.mxu0 %v4356_v32  ;;  %4379 = vmatprep.subr.bf16.mxu1 %v4378_v36 }
  0x52   : > { %716 = vmatprep.mubr.f32.mxu0 %v4847_v0  ;;  %793 = vmatprep.mubr.f32.mxu1 %v4847_v0 }
  0x54   : > { %4359 = vmatpush1.bf16.msra.mxu0 %v4358_v42  ;;  %4381 = vmatpush1.bf16.msra.mxu1 %v4380_v43 }
  0x55   : > { %4361 = vmatprep.subr.bf16.mxu0 %v4360_v44  ;;  %4383 = vmatprep.subr.bf16.mxu1 %v4382_v48 }
  0x58   : > { %4363 = vmatpush1.bf16.msra.mxu0 %v4362_v54  ;;  %4385 = vmatpush1.bf16.msra.mxu1 %v4384_v56 }
  0x59   : > { %4366 = vmatprep.subr.msk.bf16.mxu0 %vm5142_vm2, %v4364_v57  ;;  %4388 = vmatprep.subr.msk.bf16.mxu1 %vm5142_vm2, %v4386_v60 }
  0x5c   : > { %4369 = vmatpush1.bf16.msk.msra.mxu0 %vm5142_vm2, %v4367_v63  ;;  %4391 = vmatpush1.bf16.msk.msra.mxu1 %vm5142_vm2, %v4389_v1 }
  0x5f   : > { %3982 = vmatmul.mubr.msk.f32.vlgmr.msra.gmra.mrb[4].mxu0 %vm466_vm3, %v5171_v16  ;;  %3986 = vmatmul.mubr.msk.f32.vlgmr.msra.gmra.mrb[4].mxu1 %vm466_vm3, %v5171_v16 }
  0x60   : > { %722 = vmatprep.mubr.f32.mxu0 %v4847_v0  ;;  %799 = vmatprep.mubr.f32.mxu1 %v4847_v0 }
  0x63   : > { %3983 = vmatmul.mubr.msk.f32.gmra.mrb[6].mxu0 %vm466_vm3, %v385_v30  ;;  %3987 = vmatmul.mubr.msk.f32.gmra.mrb[6].mxu1 %vm466_vm3, %v385_v30 }
  0x99   : > { %v823_v18 = vpop.permute.xlu0 %822 }
  0x9d   : > { %v828_v33 = vpop.permute.xlu0 %827 }
 0x11e   : > { %v564_v2 = vpop.f32.mrb[0].mxu0  ;;  %v641_v3 = vpop.f32.mrb[0].mxu1 }
 0x11f   : > { %v566_v4 = vpop.f32.mrb[1].mxu0  ;;  %v806_v5 = vmax.f32 %v564_v2, %v641_v3  ;;  %v643_v55 = vpop.f32.mrb[1].mxu1 }
 0x120   : > { %v807_v6 = vmax.f32 %v566_v4, %v643_v55 }
 0x122   : > { %v570_v7 = vpop.f32.mrb[2].mxu0  ;;  %v647_v8 = vpop.f32.mrb[2].mxu1 }
 0x123   : > { %v572_v9 = vpop.f32.mrb[3].mxu0  ;;  %v808_v10 = vmax.f32 %v570_v7, %v647_v8  ;;  %v649_v11 = vpop.f32.mrb[3].mxu1 }
 0x124   : > { %v809_v12 = vmax.f32 %v572_v9, %v649_v11 }
 0x132   : > { %v718_v13 = vpop.f32.mrb[4].mxu0  ;;  %v795_v14 = vpop.f32.mrb[4].mxu1 }
 0x133   : > { %v720_v15 = vpop.f32.mrb[5].mxu0  ;;  %v810_v16 = vmax.f32 %v718_v13, %v795_v14  ;;  %v797_v17 = vpop.f32.mrb[5].mxu1 }
 0x134   : > { %v811_v19 = vmax.f32 %v720_v15, %v797_v17 }
 0x135   : > { %v814_v20 = vmax.f32 %v806_v5, %v810_v16 }
 0x136   : > { %v724_v21 = vpop.f32.mrb[6].mxu0  ;;  %v815_v22 = vmax.f32 %v807_v6, %v811_v19  ;;  %v801_v23 = vpop.f32.mrb[6].mxu1 }
 0x137   : > { %v726_v24 = vpop.f32.mrb[7].mxu0  ;;  %v830_v25 = vadd.f32 %v823_v18, %v814_v20  ;;  %v812_v26 = vmax.f32 %v724_v21, %v801_v23  ;;  %v803_v27 = vpop.f32.mrb[7].mxu1 }
 0x138   : > { %v831_v28 = vadd.f32 %v823_v18, %v815_v22  ;;  %v813_v29 = vmax.f32 %v726_v24, %v803_v27 }
 0x139   : > { %v5232_v30 = vmax.f32 %v830_v25, 0.0  ;;  %v816_v31 = vmax.f32 %v808_v10, %v812_v26 }
 0x13a   : > { %v5234_v32 = vmax.f32 %v831_v28, 0.0  ;;  %v817_v34 = vmax.f32 %v809_v12, %v813_v29 }
 0x13b   : > { %v832_v35 = vadd.f32 %v828_v33, %v816_v31  ;;  %951 = vrot.lane.b32.xlu0 %v5232_v30, %s7047_s13  ;;  %945 = vst.msk [vmem:[#allocation3] sm:$0xff] %vm944_vm4, %v5232_v30 }
 0x13c   : > { %v833_v36 = vadd.f32 %v828_v33, %v817_v34  ;;  %1520 = vrot.lane.b32.xlu1 %v5234_v32, %s7047_s13  ;;  %1514 = vst.msk [vmem:[#allocation3 + $0x8] sm:$0xff] %vm944_vm4, %v5234_v32  ;;  %997 = vst.msk [vmem:[#allocation3 + $0xa0] sm:$0xff] %vm944_vm4, %v5234_v32 }
 0x13d   : > { %1230 = vst.msk [vmem:[#allocation3] sm:$0xff] %vm1229_vm5, %v5232_v30  ;;  %v5248_v37 = vmax.f32 %v832_v35, 0.0  ;;  %1806 = vst.msk [vmem:[#allocation3 + $0x8] sm:$0xff] %vm1229_vm5, %v5234_v32 }
 0x13e   : > { %1282 = vst.msk [vmem:[#allocation3 + $0xa0] sm:$0xff] %vm1229_vm5, %v5234_v32  ;;  %v5254_v38 = vmax.f32 %v833_v36, 0.0 }
 0x13f   : > { %1236 = vrot.lane.b32.xlu0 %v5232_v30, %s4851_s14  ;;  %946 = vst.msk [vmem:[#allocation3 + $0x10] sm:$0xff] %vm944_vm4, %v5248_v37 }
 0x140   : > { %953 = vrot.lane.b32.xlu1 %v5248_v37, %s7047_s13  ;;  %1515 = vst.msk [vmem:[#allocation3 + $0x18] sm:$0xff] %vm944_vm4, %v5254_v38  ;;  %998 = vst.msk [vmem:[#allocation3 + $0xb0] sm:$0xff] %vm944_vm4, %v5254_v38 }
 0x141   : > { %1231 = vst.msk [vmem:[#allocation3 + $0x10] sm:$0xff] %vm1229_vm5, %v5248_v37  ;;  %1807 = vst.msk [vmem:[#allocation3 + $0x18] sm:$0xff] %vm1229_vm5, %v5254_v38 }
 0x142   : > { %1283 = vst.msk [vmem:[#allocation3 + $0xb0] sm:$0xff] %vm1229_vm5, %v5254_v38 }
 0x143   : > { %963 = vrot.lane.b32.xlu0 %v5232_v30, %s4852_s15 }
 0x144   : > { %1238 = vrot.lane.b32.xlu1 %v5248_v37, %s4851_s14  ;;  %v2113_v40 = vld [vmem:[#allocation3 + $0x8] sm:$0xff]  ;;  %v2112_v43 = vld [vmem:[#allocation3] sm:$0xff] }
 0x147   : > { %1248 = vrot.lane.b32.xlu0 %v5232_v30, %s4852_s15 }
 0x148   : > { %v2114_v39 = vld [vmem:[#allocation3 + $0x10] sm:$0xff]  ;;  %965 = vrot.lane.b32.xlu1 %v5248_v37, %s4852_s15  ;;  %v2115_v41 = vld [vmem:[#allocation3 + $0x18] sm:$0xff] }
 0x149   : > { %v4392_v42 = vpack.c.bf16 %v2115_v41, %v2113_v40  ;;  %v4394_v44 = vpack.c.bf16 %v2114_v39, %v2112_v43 }
 0x14b   : > { %975 = vrot.lane.b32.xlu0 %v5232_v30, %s4851_s14  ;;  %4393 = vmatprep.subr.bf16.mxu0 %v4392_v42 }
 0x14c   : > { %1250 = vrot.lane.b32.xlu1 %v5248_v37, %s4852_s15  ;;  %4395 = vmatpush1.bf16.msra.mxu0 %v4394_v44 }
 0x14f   : > { %1260 = vrot.lane.b32.xlu0 %v5232_v30, %s4853_s16 }
 0x150   : > { %977 = vrot.lane.b32.xlu1 %v5248_v37, %s4851_s14 }
 0x153   : > { %987 = vrot.lane.b32.xlu0 %v5232_v30, %s7035_s22 }
 0x154   : > { %1262 = vrot.lane.b32.xlu1 %v5248_v37, %s4853_s16 }
 0x157   : > { %1272 = vrot.lane.b32.xlu0 %v5232_v30, %s7035_s22 }
 0x158   : > { %989 = vrot.lane.b32.xlu1 %v5248_v37, %s7035_s22 }
 0x15b   : > { %1568 = vrot.lane.b32.xlu0 %v5232_v30, %s7051_s24 }
 0x15c   : > { %1274 = vrot.lane.b32.xlu1 %v5248_v37, %s7035_s22  ;;  %s7041_s22 = smov 118  }
 0x15f   : > { %1860 = vrot.lane.b32.xlu0 %v5232_v30, %s7051_s24 }
 0x160   : > { %1570 = vrot.lane.b32.xlu1 %v5248_v37, %s7051_s24 }
 0x163   : > { %1580 = vrot.lane.b32.xlu0 %v5232_v30, %s7037_s25 }
 0x164   : > { %1862 = vrot.lane.b32.xlu1 %v5248_v37, %s7051_s24 }
 0x167   : > { %1872 = vrot.lane.b32.xlu0 %v5232_v30, %s4857_s29 }
 0x168   : > { %1582 = vrot.lane.b32.xlu1 %v5248_v37, %s7037_s25 }
 0x16b   : > { %1592 = vrot.lane.b32.xlu0 %v5232_v30, %s4858_s30 }
 0x16c   : > { %1874 = vrot.lane.b32.xlu1 %v5248_v37, %s4857_s29 }
 0x16f   : > { %1884 = vrot.lane.b32.xlu0 %v5232_v30, %s4858_s30 }
 0x170   : > { %1594 = vrot.lane.b32.xlu1 %v5248_v37, %s4858_s30 }
 0x173   : > { %1604 = vrot.lane.b32.xlu0 %v5232_v30, %s4857_s29 }
 0x174   : > { %1886 = vrot.lane.b32.xlu1 %v5248_v37, %s4858_s30 }
 0x177   : > { %1896 = vrot.lane.b32.xlu0 %v5232_v30, %s7039_s12 }
 0x178   : > { %1606 = vrot.lane.b32.xlu1 %v5248_v37, %s4857_s29 }
 0x17b   : > { %1616 = vrot.lane.b32.xlu0 %v5232_v30, %s7041_s22 }
 0x17c   : > { %1898 = vrot.lane.b32.xlu1 %v5248_v37, %s7039_s12 }
 0x17f   : > { %1908 = vrot.lane.b32.xlu0 %v5232_v30, %s7041_s22 }
 0x180   : > { %1618 = vrot.lane.b32.xlu1 %v5248_v37, %s7041_s22 }
 0x183   : > { %1051 = vrot.lane.b32.xlu0 %v5232_v30, %s7051_s24 }
 0x184   : > { %1910 = vrot.lane.b32.xlu1 %v5248_v37, %s7041_s22 }
 0x187   : > { %1336 = vrot.lane.b32.xlu0 %v5232_v30, %s7051_s24 }
 0x188   : > { %1053 = vrot.lane.b32.xlu1 %v5248_v37, %s7051_s24 }
 0x18b   : > { %1063 = vrot.lane.b32.xlu0 %v5232_v30, %s7037_s25 }
 0x18c   : > { %1338 = vrot.lane.b32.xlu1 %v5248_v37, %s7051_s24 }
 0x18f   : > { %1348 = vrot.lane.b32.xlu0 %v5232_v30, %s4857_s29 }
 0x190   : > { %1065 = vrot.lane.b32.xlu1 %v5248_v37, %s7037_s25  ;;  %s7043_s25 = smov 112  }
 0x193   : > { %1075 = vrot.lane.b32.xlu0 %v5232_v30, %s4858_s30 }
 0x194   : > { %1350 = vrot.lane.b32.xlu1 %v5248_v37, %s4857_s29 }
 0x197   : > { %1360 = vrot.lane.b32.xlu0 %v5232_v30, %s4858_s30 }
 0x198   : > { %1077 = vrot.lane.b32.xlu1 %v5248_v37, %s4858_s30 }
 0x19b   : > { %1087 = vrot.lane.b32.xlu0 %v5232_v30, %s4857_s29 }
 0x19c   : > { %1362 = vrot.lane.b32.xlu1 %v5248_v37, %s4858_s30 }
 0x19f   : > { %1372 = vrot.lane.b32.xlu0 %v5232_v30, %s7039_s12 }
 0x1a0   : > { %1089 = vrot.lane.b32.xlu1 %v5248_v37, %s4857_s29 }
 0x1a3   : > { %1099 = vrot.lane.b32.xlu0 %v5232_v30, %s7041_s22 }
 0x1a4   : > { %1374 = vrot.lane.b32.xlu1 %v5248_v37, %s7039_s12  ;;  %s7049_s12 = smov 48  }
 0x1a7   : > { %1384 = vrot.lane.b32.xlu0 %v5232_v30, %s7041_s22 }
 0x1a8   : > { %1101 = vrot.lane.b32.xlu1 %v5248_v37, %s7041_s22 }
 0x1ab   : > { %1688 = vrot.lane.b32.xlu0 %v5232_v30, %s7043_s25 }
 0x1ac   : > { %1386 = vrot.lane.b32.xlu1 %v5248_v37, %s7041_s22  ;;  %s4863_s22 = smov 47  }
 0x1ad   : > { %v952_v45 = vpop.permute.xlu0 %951 }
 0x1ae   : > { %957 = vst.msk [vmem:[#allocation3 + $0x20] sm:$0xff] %vm944_vm4, %v952_v45  ;;  %v1521_v46 = vpop.permute.xlu1 %1520 }
 0x1af   : > { %1526 = vst.msk [vmem:[#allocation3 + $0x28] sm:$0xff] %vm944_vm4, %v1521_v46  ;;  %1980 = vrot.lane.b32.xlu0 %v5232_v30, %s7043_s25 }
 0x1b0   : > { %1690 = vrot.lane.b32.xlu1 %v5248_v37, %s7043_s25 }
 0x1b1   : > { %v1237_v47 = vpop.permute.xlu0 %1236 }
 0x1b2   : > { %1242 = vst.msk [vmem:[#allocation3 + $0x20] sm:$0xff] %vm1229_vm5, %v1237_v47  ;;  %v954_v48 = vpop.permute.xlu1 %953 }
 0x1b3   : > { %958 = vst.msk [vmem:[#allocation3 + $0x30] sm:$0xff] %vm944_vm4, %v954_v48  ;;  %1700 = vrot.lane.b32.xlu0 %v5232_v30, %s7049_s12 }
 0x1b4   : > { %1982 = vrot.lane.b32.xlu1 %v5248_v37, %s7043_s25  ;;  %s7045_s25 = smov 111  }
 0x1b5   : > { %v964_v49 = vpop.permute.xlu0 %963 }
 0x1b6   : > { %969 = vst.msk [vmem:[#allocation3 + $0x40] sm:$0xff] %vm944_vm4, %v964_v49  ;;  %v1239_v50 = vpop.permute.xlu1 %1238 }
 0x1b7   : > { %1243 = vst.msk [vmem:[#allocation3 + $0x30] sm:$0xff] %vm1229_vm5, %v1239_v50  ;;  %1992 = vrot.lane.b32.xlu0 %v5232_v30, %s4863_s22 }
 0x1b8   : > { %1702 = vrot.lane.b32.xlu1 %v5248_v37, %s7049_s12 }
 0x1b9   : > { %v1249_v51 = vpop.permute.xlu0 %1248 }
 0x1ba   : > { %1254 = vst.msk [vmem:[#allocation3 + $0x40] sm:$0xff] %vm1229_vm5, %v1249_v51  ;;  %v966_v52 = vpop.permute.xlu1 %965 }
 0x1bb   : > { %970 = vst.msk [vmem:[#allocation3 + $0x50] sm:$0xff] %vm944_vm4, %v966_v52  ;;  %1712 = vrot.lane.b32.xlu0 %v5232_v30, %s7045_s25 }
 0x1bc   : > { %1994 = vrot.lane.b32.xlu1 %v5248_v37, %s4863_s22 }
 0x1bd   : > { %v976_v53 = vpop.permute.xlu0 %975 }
 0x1be   : > { %981 = vst.msk [vmem:[#allocation3 + $0x60] sm:$0xff] %vm944_vm4, %v976_v53  ;;  %v1251_v54 = vpop.permute.xlu1 %1250 }
 0x1bf   : > { %1255 = vst.msk [vmem:[#allocation3 + $0x50] sm:$0xff] %vm1229_vm5, %v1251_v54  ;;  %2004 = vrot.lane.b32.xlu0 %v5232_v30, %s7045_s25 }
 0x1c0   : > { %1714 = vrot.lane.b32.xlu1 %v5248_v37, %s7045_s25 }
 0x1c1   : > { %v1261_v56 = vpop.permute.xlu0 %1260 }
 0x1c2   : > { %1266 = vst.msk [vmem:[#allocation3 + $0x60] sm:$0xff] %vm1229_vm5, %v1261_v56  ;;  %v978_v57 = vpop.permute.xlu1 %977 }
 0x1c3   : > { %982 = vst.msk [vmem:[#allocation3 + $0x70] sm:$0xff] %vm944_vm4, %v978_v57  ;;  %1724 = vrot.lane.b32.xlu0 %v5232_v30, %s4863_s22 }
 0x1c4   : > { %2006 = vrot.lane.b32.xlu1 %v5248_v37, %s7045_s25  ;;  %s7110_s25 = smov 126  }
 0x1c5   : > { %v988_v58 = vpop.permute.xlu0 %987 }
 0x1c6   : > { %993 = vst.msk [vmem:[#allocation3 + $0x80] sm:$0xff] %vm944_vm4, %v988_v58  ;;  %v1263_v59 = vpop.permute.xlu1 %1262 }
 0x1c7   : > { %1267 = vst.msk [vmem:[#allocation3 + $0x70] sm:$0xff] %vm1229_vm5, %v1263_v59  ;;  %1812 = vrot.lane.b32.xlu0 %v5234_v32, %s4851_s14  ;;  %v2097_v59 = vld [vmem:[%s7114_s3 + $0x8] sm:$0xff] }
 0x1c8   : > { %1726 = vrot.lane.b32.xlu1 %v5248_v37, %s4863_s22  ;;  %2289 = vmatprep.mubr.f32.mxu0 %v2097_v59 }
 0x1c9   : > { %v1273_v60 = vpop.permute.xlu0 %1272 }
 0x1ca   : > { %1278 = vst.msk [vmem:[#allocation3 + $0x80] sm:$0xff] %vm1229_vm5, %v1273_v60  ;;  %v990_v61 = vpop.permute.xlu1 %989 }
 0x1cb   : > { %994 = vst.msk [vmem:[#allocation3 + $0x90] sm:$0xff] %vm944_vm4, %v990_v61  ;;  %1532 = vrot.lane.b32.xlu0 %v5234_v32, %s4852_s15 }
 0x1cc   : > { %1522 = vrot.lane.b32.xlu1 %v5254_v38, %s7047_s13 }
 0x1cd   : > { %v1569_v62 = vpop.permute.xlu0 %1568 }
 0x1ce   : > { %1574 = vst.msk [vmem:[#allocation3 + $0xa8] sm:$0xff] %vm944_vm4, %v1569_v62  ;;  %v1275_v63 = vpop.permute.xlu1 %1274 }
 0x1cf   : > { %1279 = vst.msk [vmem:[#allocation3 + $0x90] sm:$0xff] %vm1229_vm5, %v1275_v63  ;;  %1824 = vrot.lane.b32.xlu0 %v5234_v32, %s4852_s15 }
 0x1d0   : > { %1814 = vrot.lane.b32.xlu1 %v5254_v38, %s4851_s14 }
 0x1d1   : > { %v1861_v1 = vpop.permute.xlu0 %1860 }
 0x1d2   : > { %1866 = vst.msk [vmem:[#allocation3 + $0xa8] sm:$0xff] %vm1229_vm5, %v1861_v1  ;;  %v1571_v2 = vpop.permute.xlu1 %1570 }
 0x1d3   : > { %1575 = vst.msk [vmem:[#allocation3 + $0xb8] sm:$0xff] %vm944_vm4, %v1571_v2  ;;  %1544 = vrot.lane.b32.xlu0 %v5234_v32, %s4851_s14 }
 0x1d4   : > { %1534 = vrot.lane.b32.xlu1 %v5254_v38, %s4852_s15 }
 0x1d5   : > { %v1581_v3 = vpop.permute.xlu0 %1580 }
 0x1d6   : > { %1586 = vst.msk [vmem:[#allocation3 + $0xc8] sm:$0xff] %vm944_vm4, %v1581_v3  ;;  %v1863_v4 = vpop.permute.xlu1 %1862 }
 0x1d7   : > { %1867 = vst.msk [vmem:[#allocation3 + $0xb8] sm:$0xff] %vm1229_vm5, %v1863_v4  ;;  %1836 = vrot.lane.b32.xlu0 %v5234_v32, %s4853_s16  ;;  %v2118_v4 = vld [vmem:[#allocation3 + $0x30] sm:$0xff] }
 0x1d8   : > { %1826 = vrot.lane.b32.xlu1 %v5254_v38, %s4852_s15 }
 0x1d9   : > { %v1873_v5 = vpop.permute.xlu0 %1872 }
 0x1da   : > { %1878 = vst.msk [vmem:[#allocation3 + $0xc8] sm:$0xff] %vm1229_vm5, %v1873_v5  ;;  %v1583_v55 = vpop.permute.xlu1 %1582 }
 0x1db   : > { %1587 = vst.msk [vmem:[#allocation3 + $0xd8] sm:$0xff] %vm944_vm4, %v1583_v55  ;;  %1556 = vrot.lane.b32.xlu0 %v5234_v32, %s7110_s25 }
 0x1dc   : > { %1546 = vrot.lane.b32.xlu1 %v5254_v38, %s4851_s14 }
 0x1dd   : > { %v1593_v6 = vpop.permute.xlu0 %1592 }
 0x1de   : > { %1598 = vst.msk [vmem:[#allocation3 + $0xe8] sm:$0xff] %vm944_vm4, %v1593_v6  ;;  %v1875_v7 = vpop.permute.xlu1 %1874 }
 0x1df   : > { %1879 = vst.msk [vmem:[#allocation3 + $0xd8] sm:$0xff] %vm1229_vm5, %v1875_v7  ;;  %1848 = vrot.lane.b32.xlu0 %v5234_v32, %s7110_s25 }
 0x1e0   : > { %1838 = vrot.lane.b32.xlu1 %v5254_v38, %s4853_s16 }
 0x1e1   : > { %v1885_v8 = vpop.permute.xlu0 %1884 }
 0x1e2   : > { %1890 = vst.msk [vmem:[#allocation3 + $0xe8] sm:$0xff] %vm1229_vm5, %v1885_v8  ;;  %v1595_v9 = vpop.permute.xlu1 %1594  ;;  %v2116_v8 = vld [vmem:[#allocation3 + $0x20] sm:$0xff] }
 0x1e3   : > { %1599 = vst.msk [vmem:[#allocation3 + $0xf8] sm:$0xff] %vm944_vm4, %v1595_v9  ;;  %1003 = vrot.lane.b32.xlu0 %v5234_v32, %s7047_s13  ;;  %v4398_v9 = vpack.c.bf16 %v2118_v4, %v2116_v8 }
 0x1e4   : > { %1558 = vrot.lane.b32.xlu1 %v5254_v38, %s7110_s25 }
 0x1e5   : > { %v1605_v10 = vpop.permute.xlu0 %1604 }
 0x1e6   : > { %1610 = vst.msk [vmem:[#allocation3 + $0x108] sm:$0xff] %vm944_vm4, %v1605_v10  ;;  %v1887_v11 = vpop.permute.xlu1 %1886 }
 0x1e7   : > { %1891 = vst.msk [vmem:[#allocation3 + $0xf8] sm:$0xff] %vm1229_vm5, %v1887_v11  ;;  %1288 = vrot.lane.b32.xlu0 %v5234_v32, %s4851_s14 }
 0x1e8   : > { %1850 = vrot.lane.b32.xlu1 %v5254_v38, %s7110_s25 }
 0x1e9   : > { %v1897_v12 = vpop.permute.xlu0 %1896 }
 0x1ea   : > { %1902 = vst.msk [vmem:[#allocation3 + $0x108] sm:$0xff] %vm1229_vm5, %v1897_v12  ;;  %v1607_v13 = vpop.permute.xlu1 %1606 }
 0x1eb   : > { %1611 = vst.msk [vmem:[#allocation3 + $0x118] sm:$0xff] %vm944_vm4, %v1607_v13  ;;  %1015 = vrot.lane.b32.xlu0 %v5234_v32, %s4852_s15  ;;  %v2122_v13 = vld [vmem:[#allocation3 + $0x50] sm:$0xff] }
 0x1ec   : > { %1005 = vrot.lane.b32.xlu1 %v5254_v38, %s7047_s13  ;;  %s4865_s13 = smov 46  }
 0x1ed   : > { %v1617_v14 = vpop.permute.xlu0 %1616 }
 0x1ee   : > { %1622 = vst.msk [vmem:[#allocation3 + $0x128] sm:$0xff] %vm944_vm4, %v1617_v14  ;;  %v1899_v15 = vpop.permute.xlu1 %1898 }
 0x1ef   : > { %1903 = vst.msk [vmem:[#allocation3 + $0x118] sm:$0xff] %vm1229_vm5, %v1899_v15  ;;  %1300 = vrot.lane.b32.xlu0 %v5234_v32, %s4852_s15 }
 0x1f0   : > { %1290 = vrot.lane.b32.xlu1 %v5254_v38, %s4851_s14 }
 0x1f1   : > { %v1909_v16 = vpop.permute.xlu0 %1908  ;;  %v2145_v8 = vld [vmem:[#allocation3 + $0x108] sm:$0xff] }
 0x1f2   : > { %1914 = vst.msk [vmem:[#allocation3 + $0x128] sm:$0xff] %vm1229_vm5, %v1909_v16  ;;  %v1619_v17 = vpop.permute.xlu1 %1618 }
 0x1f3   : > { %1623 = vst.msk [vmem:[#allocation3 + $0x138] sm:$0xff] %vm944_vm4, %v1619_v17  ;;  %1027 = vrot.lane.b32.xlu0 %v5234_v32, %s4851_s14 }
 0x1f4   : > { %1017 = vrot.lane.b32.xlu1 %v5254_v38, %s4852_s15 }
 0x1f5   : > { %v1052_v18 = vpop.permute.xlu0 %1051 }
 0x1f6   : > { %1057 = vst.msk [vmem:[#allocation3 + $0x140] sm:$0xff] %vm944_vm4, %v1052_v18  ;;  %v1911_v19 = vpop.permute.xlu1 %1910  ;;  %v2120_v18 = vld [vmem:[#allocation3 + $0x40] sm:$0xff]  ;;  %v2147_v4 = vld [vmem:[#allocation3 + $0x118] sm:$0xff] }
 0x1f7   : > { %1915 = vst.msk [vmem:[#allocation3 + $0x138] sm:$0xff] %vm1229_vm5, %v1911_v19  ;;  %1312 = vrot.lane.b32.xlu0 %v5234_v32, %s4853_s16  ;;  %v4402_v19 = vpack.c.bf16 %v2122_v13, %v2120_v18 }
 0x1f8   : > { %1302 = vrot.lane.b32.xlu1 %v5254_v38, %s4852_s15  ;;  %s7112_s15 = smov 54  }
 0x1f9   : > { %v1337_v20 = vpop.permute.xlu0 %1336  ;;  %v2149_v18 = vld [vmem:[#allocation3 + $0x128] sm:$0xff] }
 0x1fa   : > { %1342 = vst.msk [vmem:[#allocation3 + $0x140] sm:$0xff] %vm1229_vm5, %v1337_v20  ;;  %v1054_v21 = vpop.permute.xlu1 %1053 }
 0x1fb   : > { %1058 = vst.msk [vmem:[#allocation3 + $0x150] sm:$0xff] %vm944_vm4, %v1054_v21  ;;  %1039 = vrot.lane.b32.xlu0 %v5234_v32, %s7110_s25 }
 0x1fc   : > { %1029 = vrot.lane.b32.xlu1 %v5254_v38, %s4851_s14  ;;  %s7111_s14 = smov 56  }
 0x1fd   : > { %v1064_v22 = vpop.permute.xlu0 %1063 }
 0x1fe   : > { %1069 = vst.msk [vmem:[#allocation3 + $0x160] sm:$0xff] %vm944_vm4, %v1064_v22  ;;  %v1339_v23 = vpop.permute.xlu1 %1338  ;;  %v2151_v13 = vld [vmem:[#allocation3 + $0x138] sm:$0xff] }
 0x1ff   : > { %1343 = vst.msk [vmem:[#allocation3 + $0x150] sm:$0xff] %vm1229_vm5, %v1339_v23  ;;  %1324 = vrot.lane.b32.xlu0 %v5234_v32, %s7110_s25  ;;  %v2126_v23 = vld [vmem:[#allocation3 + $0x70] sm:$0xff] }
 0x200   : > { %1314 = vrot.lane.b32.xlu1 %v5254_v38, %s4853_s16  ;;  %s7113_s16 = smov 118  }
 0x201   : > { %v1349_v24 = vpop.permute.xlu0 %1348 }
 0x202   : > { %1354 = vst.msk [vmem:[#allocation3 + $0x160] sm:$0xff] %vm1229_vm5, %v1349_v24  ;;  %v1066_v25 = vpop.permute.xlu1 %1065 }
 0x203   : > { %1070 = vst.msk [vmem:[#allocation3 + $0x170] sm:$0xff] %vm944_vm4, %v1066_v25  ;;  %1628 = vrot.lane.b32.xlu0 %v5234_v32, %s7051_s24 }
 0x204   : > { %1041 = vrot.lane.b32.xlu1 %v5254_v38, %s7110_s25 }
 0x205   : > { %v1076_v26 = vpop.permute.xlu0 %1075 }
 0x206   : > { %1081 = vst.msk [vmem:[#allocation3 + $0x180] sm:$0xff] %vm944_vm4, %v1076_v26  ;;  %v1351_v27 = vpop.permute.xlu1 %1350 }
 0x207   : > { %1355 = vst.msk [vmem:[#allocation3 + $0x170] sm:$0xff] %vm1229_vm5, %v1351_v27  ;;  %1920 = vrot.lane.b32.xlu0 %v5234_v32, %s7051_s24 }
 0x208   : > { %1326 = vrot.lane.b32.xlu1 %v5254_v38, %s7110_s25  ;;  %s7055_s25 = smov 72  }
 0x209   : > { %v1361_v28 = vpop.permute.xlu0 %1360 }
 0x20a   : > { %1366 = vst.msk [vmem:[#allocation3 + $0x180] sm:$0xff] %vm1229_vm5, %v1361_v28  ;;  %v1078_v29 = vpop.permute.xlu1 %1077  ;;  %v2124_v28 = vld [vmem:[#allocation3 + $0x60] sm:$0xff] }
 0x20b   : > { %1082 = vst.msk [vmem:[#allocation3 + $0x190] sm:$0xff] %vm944_vm4, %v1078_v29  ;;  %1640 = vrot.lane.b32.xlu0 %v5234_v32, %s7111_s14  ;;  %v4406_v29 = vpack.c.bf16 %v2126_v23, %v2124_v28 }
 0x20c   : > { %1630 = vrot.lane.b32.xlu1 %v5254_v38, %s7051_s24 }
 0x20d   : > { %v1088_v31 = vpop.permute.xlu0 %1087 }
 0x20e   : > { %1093 = vst.msk [vmem:[#allocation3 + $0x1a0] sm:$0xff] %vm944_vm4, %v1088_v31  ;;  %v1363_v33 = vpop.permute.xlu1 %1362 }
 0x20f   : > { %1367 = vst.msk [vmem:[#allocation3 + $0x190] sm:$0xff] %vm1229_vm5, %v1363_v33  ;;  %1932 = vrot.lane.b32.xlu0 %v5234_v32, %s4857_s29 }
 0x210   : > { %1922 = vrot.lane.b32.xlu1 %v5254_v38, %s7051_s24 }
 0x211   : > { %v1373_v34 = vpop.permute.xlu0 %1372 }
 0x212   : > { %1378 = vst.msk [vmem:[#allocation3 + $0x1a0] sm:$0xff] %vm1229_vm5, %v1373_v34  ;;  %v1090_v35 = vpop.permute.xlu1 %1089 }
 0x213   : > { %1094 = vst.msk [vmem:[#allocation3 + $0x1b0] sm:$0xff] %vm944_vm4, %v1090_v35  ;;  %1652 = vrot.lane.b32.xlu0 %v5234_v32, %s4858_s30  ;;  %v2130_v35 = vld [vmem:[#allocation3 + $0x90] sm:$0xff] }
 0x214   : > { %1642 = vrot.lane.b32.xlu1 %v5254_v38, %s7111_s14 }
 0x215   : > { %v1100_v36 = vpop.permute.xlu0 %1099 }
 0x216   : > { %1105 = vst.msk [vmem:[#allocation3 + $0x1c0] sm:$0xff] %vm944_vm4, %v1100_v36  ;;  %v1375_v39 = vpop.permute.xlu1 %1374 }
 0x217   : > { %1379 = vst.msk [vmem:[#allocation3 + $0x1b0] sm:$0xff] %vm1229_vm5, %v1375_v39  ;;  %1944 = vrot.lane.b32.xlu0 %v5234_v32, %s4858_s30 }
 0x218   : > { %1934 = vrot.lane.b32.xlu1 %v5254_v38, %s4857_s29 }
 0x219   : > { %v1385_v40 = vpop.permute.xlu0 %1384 }
 0x21a   : > { %1390 = vst.msk [vmem:[#allocation3 + $0x1c0] sm:$0xff] %vm1229_vm5, %v1385_v40  ;;  %v1102_v41 = vpop.permute.xlu1 %1101 }
 0x21b   : > { %1106 = vst.msk [vmem:[#allocation3 + $0x1d0] sm:$0xff] %vm944_vm4, %v1102_v41  ;;  %1664 = vrot.lane.b32.xlu0 %v5234_v32, %s4857_s29  ;;  %v2135_v41 = vld [vmem:[#allocation3 + $0xb8] sm:$0xff] }
 0x21c   : > { %1654 = vrot.lane.b32.xlu1 %v5254_v38, %s4858_s30 }
 0x21d   : > { %v1689_v42 = vpop.permute.xlu0 %1688 }
 0x21e   : > { %1694 = vst.msk [vmem:[#allocation3 + $0x1e8] sm:$0xff] %vm944_vm4, %v1689_v42  ;;  %v1387_v43 = vpop.permute.xlu1 %1386 }
 0x21f   : > { %1391 = vst.msk [vmem:[#allocation3 + $0x1d0] sm:$0xff] %vm1229_vm5, %v1387_v43  ;;  %1956 = vrot.lane.b32.xlu0 %v5234_v32, %s7112_s15  ;;  %v2128_v43 = vld [vmem:[#allocation3 + $0x80] sm:$0xff] }
 0x220   : > { %1946 = vrot.lane.b32.xlu1 %v5254_v38, %s4858_s30 }
 0x221   : > { %v1981_v44 = vpop.permute.xlu0 %1980 }
 0x222   : > { %1986 = vst.msk [vmem:[#allocation3 + $0x1e8] sm:$0xff] %vm1229_vm5, %v1981_v44  ;;  %v1691_v45 = vpop.permute.xlu1 %1690  ;;  %v4410_v44 = vpack.c.bf16 %v2130_v35, %v2128_v43 }
 0x223   : > { %1695 = vst.msk [vmem:[#allocation3 + $0x1f8] sm:$0xff] %vm944_vm4, %v1691_v45  ;;  %1676 = vrot.lane.b32.xlu0 %v5234_v32, %s7113_s16  ;;  %v2133_v45 = vld [vmem:[#allocation3 + $0xa8] sm:$0xff] }
 0x224   : > { %1666 = vrot.lane.b32.xlu1 %v5254_v38, %s4857_s29 }
 0x225   : > { %v1701_v46 = vpop.permute.xlu0 %1700 }
 0x226   : > { %1706 = vst.msk [vmem:[#allocation3 + $0x208] sm:$0xff] %vm944_vm4, %v1701_v46  ;;  %v1983_v47 = vpop.permute.xlu1 %1982 }
 0x227   : > { %1987 = vst.msk [vmem:[#allocation3 + $0x1f8] sm:$0xff] %vm1229_vm5, %v1983_v47  ;;  %1968 = vrot.lane.b32.xlu0 %v5234_v32, %s7113_s16  ;;  %v4412_v47 = vpack.c.bf16 %v2135_v41, %v2133_v45 }
 0x228   : > { %1958 = vrot.lane.b32.xlu1 %v5254_v38, %s7112_s15 }
 0x229   : > { %v1993_v48 = vpop.permute.xlu0 %1992 }
 0x22a   : > { %1998 = vst.msk [vmem:[#allocation3 + $0x208] sm:$0xff] %vm1229_vm5, %v1993_v48  ;;  %v1703_v49 = vpop.permute.xlu1 %1702  ;;  %v2134_v48 = vld [vmem:[#allocation3 + $0xb0] sm:$0xff] }
 0x22b   : > { %1707 = vst.msk [vmem:[#allocation3 + $0x218] sm:$0xff] %vm944_vm4, %v1703_v49  ;;  %1111 = vrot.lane.b32.xlu0 %v5234_v32, %s7051_s24 }
 0x22c   : > { %1678 = vrot.lane.b32.xlu1 %v5254_v38, %s7113_s16 }
 0x22d   : > { %v1713_v50 = vpop.permute.xlu0 %1712 }
 0x22e   : > { %1718 = vst.msk [vmem:[#allocation3 + $0x228] sm:$0xff] %vm944_vm4, %v1713_v50  ;;  %v1995_v51 = vpop.permute.xlu1 %1994  ;;  %v2139_v50 = vld [vmem:[#allocation3 + $0xd8] sm:$0xff] }
 0x22f   : > { %1999 = vst.msk [vmem:[#allocation3 + $0x218] sm:$0xff] %vm1229_vm5, %v1995_v51  ;;  %1396 = vrot.lane.b32.xlu0 %v5234_v32, %s7051_s24  ;;  %v2132_v51 = vld [vmem:[#allocation3 + $0xa0] sm:$0xff] }
 0x230   : > { %1970 = vrot.lane.b32.xlu1 %v5254_v38, %s7113_s16 }
 0x231   : > { %v2005_v52 = vpop.permute.xlu0 %2004 }
 0x232   : > { %2010 = vst.msk [vmem:[#allocation3 + $0x228] sm:$0xff] %vm1229_vm5, %v2005_v52  ;;  %v1715_v53 = vpop.permute.xlu1 %1714  ;;  %v4414_v52 = vpack.c.bf16 %v2134_v48, %v2132_v51 }
 0x233   : > { %1719 = vst.msk [vmem:[#allocation3 + $0x238] sm:$0xff] %vm944_vm4, %v1715_v53  ;;  %1123 = vrot.lane.b32.xlu0 %v5234_v32, %s7111_s14  ;;  %v2137_v53 = vld [vmem:[#allocation3 + $0xc8] sm:$0xff] }
 0x234   : > { %1113 = vrot.lane.b32.xlu1 %v5254_v38, %s7051_s24 }
 0x235   : > { %v1725_v54 = vpop.permute.xlu0 %1724 }
 0x236   : > { %1730 = vst.msk [vmem:[#allocation3 + $0x248] sm:$0xff] %vm944_vm4, %v1725_v54  ;;  %v2007_v56 = vpop.permute.xlu1 %2006 }
 0x237   : > { %2011 = vst.msk [vmem:[#allocation3 + $0x238] sm:$0xff] %vm1229_vm5, %v2007_v56  ;;  %1408 = vrot.lane.b32.xlu0 %v5234_v32, %s4857_s29  ;;  %v4416_v56 = vpack.c.bf16 %v2139_v50, %v2137_v53 }
 0x238   : > { %1398 = vrot.lane.b32.xlu1 %v5254_v38, %s7051_s24  ;;  %s7118_s24 = smov 64  }
 0x239   : > { %v1813_v57 = vpop.permute.xlu0 %1812 }
 0x23a   : > { %1818 = vst.msk [vmem:[#allocation3 + $0x28] sm:$0xff] %vm1229_vm5, %v1813_v57  ;;  %v1727_v58 = vpop.permute.xlu1 %1726 }
 0x23b   : > { %1731 = vst.msk [vmem:[#allocation3 + $0x258] sm:$0xff] %vm944_vm4, %v1727_v58  ;;  %1135 = vrot.lane.b32.xlu0 %v5234_v32, %s4858_s30 }
 0x23c   : > { %1125 = vrot.lane.b32.xlu1 %v5254_v38, %s7111_s14 }
 0x23d   : > { %v1533_v60 = vpop.permute.xlu0 %1532 }
 0x23e   : > { %1538 = vst.msk [vmem:[#allocation3 + $0x48] sm:$0xff] %vm944_vm4, %v1533_v60  ;;  %v1523_v61 = vpop.permute.xlu1 %1522  ;;  %v2143_v60 = vld [vmem:[#allocation3 + $0xf8] sm:$0xff] }
 0x23f   : > { %1527 = vst.msk [vmem:[#allocation3 + $0x38] sm:$0xff] %vm944_vm4, %v1523_v61  ;;  %1420 = vrot.lane.b32.xlu0 %v5234_v32, %s4858_s30 }
 0x240   : > { %1410 = vrot.lane.b32.xlu1 %v5254_v38, %s4857_s29 }
 0x241   : > { %v1825_v62 = vpop.permute.xlu0 %1824  ;;  %v2117_v55 = vld [vmem:[#allocation3 + $0x28] sm:$0xff] }
 0x242   : > { %1830 = vst.msk [vmem:[#allocation3 + $0x48] sm:$0xff] %vm1229_vm5, %v1825_v62  ;;  %v1815_v63 = vpop.permute.xlu1 %1814  ;;  %v2141_v62 = vld [vmem:[#allocation3 + $0xe8] sm:$0xff] }
 0x243   : > { %1819 = vst.msk [vmem:[#allocation3 + $0x38] sm:$0xff] %vm1229_vm5, %v1815_v63  ;;  %1147 = vrot.lane.b32.xlu0 %v5234_v32, %s4857_s29 }
 0x244   : > { %1137 = vrot.lane.b32.xlu1 %v5254_v38, %s4858_s30 }
 0x245   : > { %v1545_v1 = vpop.permute.xlu0 %1544 }
 0x246   : > { %1550 = vst.msk [vmem:[#allocation3 + $0x68] sm:$0xff] %vm944_vm4, %v1545_v1  ;;  %v1535_v2 = vpop.permute.xlu1 %1534  ;;  %v4420_v1 = vpack.c.bf16 %v2143_v60, %v2141_v62  ;;  %v2160_v60 = vld [vmem:[#allocation3 + $0x180] sm:$0xff] }
 0x247   : > { %1539 = vst.msk [vmem:[#allocation3 + $0x58] sm:$0xff] %vm944_vm4, %v1535_v2  ;;  %2016 = vrot.lane.b32.xlu0 %v5232_v30, %s4865_s13 }
 0x248   : > { %1422 = vrot.lane.b32.xlu1 %v5254_v38, %s4858_s30  ;;  %s4866_s30 = smov 110  }
 0x249   : > { %v1837_v3 = vpop.permute.xlu0 %1836  ;;  %v2121_v15 = vld [vmem:[#allocation3 + $0x48] sm:$0xff] }
 0x24a   : > { %1842 = vst.msk [vmem:[#allocation3 + $0x68] sm:$0xff] %vm1229_vm5, %v1837_v3  ;;  %v1827_v5 = vpop.permute.xlu1 %1826  ;;  %v2119_v6 = vld [vmem:[#allocation3 + $0x38] sm:$0xff] }
 0x24b   : > { %1831 = vst.msk [vmem:[#allocation3 + $0x58] sm:$0xff] %vm1229_vm5, %v1827_v5  ;;  %1432 = vrot.lane.b32.xlu0 %v5234_v32, %s7112_s15  ;;  %v4396_v7 = vpack.c.bf16 %v2119_v6, %v2117_v55 }
 0x24c   : > { %1149 = vrot.lane.b32.xlu1 %v5254_v38, %s4857_s29  ;;  %s7115_s29 = smov 112  }
 0x24d   : > { %v1557_v10 = vpop.permute.xlu0 %1556  ;;  %4397 = vmatprep.subr.bf16.mxu0 %v4396_v7 }
 0x24e   : > { %1562 = vst.msk [vmem:[#allocation3 + $0x88] sm:$0xff] %vm944_vm4, %v1557_v10  ;;  %v1547_v11 = vpop.permute.xlu1 %1546  ;;  %4399 = vmatpush1.bf16.msra.mxu0 %v4398_v9  ;;  %v4424_v9 = vpack.c.bf16 %v2147_v4, %v2145_v8 }
 0x24f   : > { %1551 = vst.msk [vmem:[#allocation3 + $0x78] sm:$0xff] %vm944_vm4, %v1547_v11  ;;  %1736 = vrot.lane.b32.xlu0 %v5232_v30, %s4866_s30 }
 0x250   : > { %2018 = vrot.lane.b32.xlu1 %v5248_v37, %s4865_s13 }
 0x251   : > { %v1849_v12 = vpop.permute.xlu0 %1848  ;;  %v2125_v25 = vld [vmem:[#allocation3 + $0x68] sm:$0xff] }
 0x252   : > { %1854 = vst.msk [vmem:[#allocation3 + $0x88] sm:$0xff] %vm1229_vm5, %v1849_v12  ;;  %v1839_v14 = vpop.permute.xlu1 %1838  ;;  %v2123_v16 = vld [vmem:[#allocation3 + $0x58] sm:$0xff] }
 0x253   : > { %1843 = vst.msk [vmem:[#allocation3 + $0x78] sm:$0xff] %vm1229_vm5, %v1839_v14  ;;  %1159 = vrot.lane.b32.xlu0 %v5234_v32, %s7113_s16  ;;  %v4400_v17 = vpack.c.bf16 %v2123_v16, %v2121_v15 }
 0x254   : > { %1434 = vrot.lane.b32.xlu1 %v5254_v38, %s7112_s15  ;;  %s7116_s15 = smov 111  }
 0x255   : > { %v1004_v20 = vpop.permute.xlu0 %1003  ;;  %4401 = vmatprep.subr.bf16.mxu0 %v4400_v17 }
 0x256   : > { %1009 = vst.msk [vmem:[#allocation3 + $0xc0] sm:$0xff] %vm944_vm4, %v1004_v20  ;;  %v1559_v21 = vpop.permute.xlu1 %1558  ;;  %4403 = vmatpush1.bf16.msra.mxu0 %v4402_v19  ;;  %v4428_v19 = vpack.c.bf16 %v2151_v13, %v2149_v18  ;;  %v2447_v18 = vld [vmem:[%s7117_s4] sm:$0xff] }
 0x257   : > { %1563 = vst.msk [vmem:[#allocation3 + $0x98] sm:$0xff] %vm944_vm4, %v1559_v21  ;;  %2028 = vrot.lane.b32.xlu0 %v5232_v30, %s4866_s30 }
 0x258   : > { %1738 = vrot.lane.b32.xlu1 %v5248_v37, %s4866_s30 }
 0x259   : > { %v1289_v22 = vpop.permute.xlu0 %1288  ;;  %v2129_v39 = vld [vmem:[#allocation3 + $0x88] sm:$0xff] }
 0x25a   : > { %1294 = vst.msk [vmem:[#allocation3 + $0xc0] sm:$0xff] %vm1229_vm5, %v1289_v22  ;;  %v1851_v24 = vpop.permute.xlu1 %1850  ;;  %v2127_v26 = vld [vmem:[#allocation3 + $0x78] sm:$0xff] }
 0x25b   : > { %1855 = vst.msk [vmem:[#allocation3 + $0x98] sm:$0xff] %vm1229_vm5, %v1851_v24  ;;  %1444 = vrot.lane.b32.xlu0 %v5234_v32, %s7113_s16  ;;  %v4404_v27 = vpack.c.bf16 %v2127_v26, %v2125_v25 }
 0x25c   : > { %1161 = vrot.lane.b32.xlu1 %v5254_v38, %s7113_s16 }
 0x25d   : > { %v1016_v31 = vpop.permute.xlu0 %1015  ;;  %4405 = vmatprep.subr.bf16.mxu0 %v4404_v27 }
 0x25e   : > { %1021 = vst.msk [vmem:[#allocation3 + $0xe0] sm:$0xff] %vm944_vm4, %v1016_v31  ;;  %v1006_v33 = vpop.permute.xlu1 %1005  ;;  %4407 = vmatpush1.bf16.msra.mxu0 %v4406_v29  ;;  %v2154_v31 = vld [vmem:[#allocation3 + $0x150] sm:$0xff] }
 0x25f   : > { %1010 = vst.msk [vmem:[#allocation3 + $0xd0] sm:$0xff] %vm944_vm4, %v1006_v33  ;;  %1748 = vrot.lane.b32.xlu0 %v5234_v32, %s7115_s29 }
 0x260   : > { %2030 = vrot.lane.b32.xlu1 %v5248_v37, %s4866_s30 }
 0x261   : > { %v1301_v34 = vpop.permute.xlu0 %1300  ;;  %v2136_v58 = vld [vmem:[#allocation3 + $0xc0] sm:$0xff] }
 0x262   : > { %1306 = vst.msk [vmem:[#allocation3 + $0xe0] sm:$0xff] %vm1229_vm5, %v1301_v34  ;;  %v1291_v36 = vpop.permute.xlu1 %1290  ;;  %v2131_v40 = vld [vmem:[#allocation3 + $0x98] sm:$0xff] }
 0x263   : > { %1295 = vst.msk [vmem:[#allocation3 + $0xd0] sm:$0xff] %vm1229_vm5, %v1291_v36  ;;  %1171 = vrot.lane.b32.xlu0 %v5232_v30, %s7115_s29  ;;  %v4408_v42 = vpack.c.bf16 %v2131_v40, %v2129_v39  ;;  %v2152_v39 = vld [vmem:[#allocation3 + $0x140] sm:$0xff] }
 0x264   : > { %1446 = vrot.lane.b32.xlu1 %v5254_v38, %s7113_s16  ;;  %v4434_v40 = vpack.c.bf16 %v2154_v31, %v2152_v39  ;;  %v2100_v39 = vld [vmem:[%s7114_s3 + $0x20] sm:$0xff]  ;;  %s7053_s16 = smov 32  }
 0x265   : > { %v1028_v46 = vpop.permute.xlu0 %1027  ;;  %4409 = vmatprep.subr.bf16.mxu0 %v4408_v42 }
 0x266   : > { %1033 = vst.msk [vmem:[#allocation3 + $0x100] sm:$0xff] %vm944_vm4, %v1028_v46  ;;  %v1018_v49 = vpop.permute.xlu1 %1017  ;;  %4411 = vmatpush1.bf16.msra.mxu0 %v4410_v44  ;;  %v2158_v44 = vld [vmem:[#allocation3 + $0x170] sm:$0xff] }
 0x267   : > { %1022 = vst.msk [vmem:[#allocation3 + $0xf0] sm:$0xff] %vm944_vm4, %v1018_v49  ;;  %2040 = vrot.lane.b32.xlu0 %v5234_v32, %s7115_s29  ;;  %4413 = vmatprep.subr.bf16.mxu0 %v4412_v47  ;;  %v2156_v49 = vld [vmem:[#allocation3 + $0x160] sm:$0xff] }
 0x268   : > { %1750 = vrot.lane.b32.xlu1 %v5254_v38, %s7115_s29  ;;  %v4438_v50 = vpack.c.bf16 %v2158_v44, %v2156_v49 }
 0x269   : > { %v1313_v54 = vpop.permute.xlu0 %1312  ;;  %v2140_v55 = vld [vmem:[#allocation3 + $0xe0] sm:$0xff] }
 0x26a   : > { %1318 = vst.msk [vmem:[#allocation3 + $0x100] sm:$0xff] %vm1229_vm5, %v1313_v54  ;;  %v1303_v57 = vpop.permute.xlu1 %1302  ;;  %4415 = vmatpush1.bf16.msra.mxu0 %v4414_v52  ;;  %v2138_v59 = vld [vmem:[#allocation3 + $0xd0] sm:$0xff] }
 0x26b   : > { %1307 = vst.msk [vmem:[#allocation3 + $0xf0] sm:$0xff] %vm1229_vm5, %v1303_v57  ;;  %1456 = vrot.lane.b32.xlu0 %v5232_v30, %s7115_s29  ;;  %4417 = vmatprep.subr.bf16.mxu0 %v4416_v56  ;;  %v4418_v61 = vpack.c.bf16 %v2138_v59, %v2136_v58  ;;  %v2162_v54 = vld [vmem:[#allocation3 + $0x190] sm:$0xff] }
 0x26c   : > { %1173 = vrot.lane.b32.xlu1 %v5248_v37, %s7115_s29 }
 0x26d   : > { %v1040_v63 = vpop.permute.xlu0 %1039 }
 0x26e   : > { %1045 = vst.msk [vmem:[#allocation3 + $0x120] sm:$0xff] %vm944_vm4, %v1040_v63  ;;  %v1030_v2 = vpop.permute.xlu1 %1029  ;;  %4419 = vmatpush1.bf16.msra.mxu0 %v4418_v61  ;;  %v4442_v61 = vpack.c.bf16 %v2162_v54, %v2160_v60 }
 0x26f   : > { %1034 = vst.msk [vmem:[#allocation3 + $0x110] sm:$0xff] %vm944_vm4, %v1030_v2  ;;  %1760 = vrot.lane.b32.xlu0 %v5234_v32, %s7049_s12  ;;  %4421 = vmatprep.subr.bf16.mxu0 %v4420_v1  ;;  %v2166_v2 = vld [vmem:[#allocation3 + $0x1b0] sm:$0xff] }
 0x270   : > { %2042 = vrot.lane.b32.xlu1 %v5254_v38, %s7115_s29 }
 0x271   : > { %v1325_v3 = vpop.permute.xlu0 %1324  ;;  %v2144_v15 = vld [vmem:[#allocation3 + $0x100] sm:$0xff] }
 0x272   : > { %1330 = vst.msk [vmem:[#allocation3 + $0x120] sm:$0xff] %vm1229_vm5, %v1325_v3  ;;  %v1315_v5 = vpop.permute.xlu1 %1314  ;;  %v2142_v6 = vld [vmem:[#allocation3 + $0xf0] sm:$0xff] }
 0x273   : > { %1319 = vst.msk [vmem:[#allocation3 + $0x110] sm:$0xff] %vm1229_vm5, %v1315_v5  ;;  %1183 = vrot.lane.b32.xlu0 %v5232_v30, %s7049_s12  ;;  %v4422_v7 = vpack.c.bf16 %v2142_v6, %v2140_v55  ;;  %v2164_v6 = vld [vmem:[#allocation3 + $0x1a0] sm:$0xff] }
 0x274   : > { %1458 = vrot.lane.b32.xlu1 %v5248_v37, %s7115_s29 }
 0x275   : > { %v1629_v10 = vpop.permute.xlu0 %1628  ;;  %4423 = vmatpush1.bf16.msra.mxu0 %v4422_v7  ;;  %v4446_v7 = vpack.c.bf16 %v2166_v2, %v2164_v6 }
 0x276   : > { %1634 = vst.msk [vmem:[#allocation3 + $0x148] sm:$0xff] %vm944_vm4, %v1629_v10  ;;  %v1042_v11 = vpop.permute.xlu1 %1041  ;;  %4425 = vmatprep.subr.bf16.mxu0 %v4424_v9 }
 0x277   : > { %1046 = vst.msk [vmem:[#allocation3 + $0x130] sm:$0xff] %vm944_vm4, %v1042_v11  ;;  %2052 = vrot.lane.b32.xlu0 %v5234_v32, %s4863_s22  ;;  %v2170_v11 = vld [vmem:[#allocation3 + $0x1d0] sm:$0xff] }
 0x278   : > { %1762 = vrot.lane.b32.xlu1 %v5254_v38, %s7049_s12 }
 0x279   : > { %v1921_v12 = vpop.permute.xlu0 %1920  ;;  %v2148_v24 = vld [vmem:[#allocation3 + $0x120] sm:$0xff] }
 0x27a   : > { %1926 = vst.msk [vmem:[#allocation3 + $0x148] sm:$0xff] %vm1229_vm5, %v1921_v12  ;;  %v1327_v14 = vpop.permute.xlu1 %1326  ;;  %v2146_v16 = vld [vmem:[#allocation3 + $0x110] sm:$0xff] }
 0x27b   : > { %1331 = vst.msk [vmem:[#allocation3 + $0x130] sm:$0xff] %vm1229_vm5, %v1327_v14  ;;  %1468 = vrot.lane.b32.xlu0 %v5232_v30, %s4863_s22  ;;  %v4426_v17 = vpack.c.bf16 %v2146_v16, %v2144_v15  ;;  %v2175_v15 = vld [vmem:[#allocation3 + $0x1f8] sm:$0xff] }
 0x27c   : > { %1185 = vrot.lane.b32.xlu1 %v5248_v37, %s7049_s12  ;;  %s7130_s12 = smov 8  }
 0x27d   : > { %v1641_v20 = vpop.permute.xlu0 %1640  ;;  %4427 = vmatpush1.bf16.msra.mxu0 %v4426_v17  ;;  %v2168_v17 = vld [vmem:[#allocation3 + $0x1c0] sm:$0xff] }
 0x27e   : > { %1646 = vst.msk [vmem:[#allocation3 + $0x168] sm:$0xff] %vm944_vm4, %v1641_v20  ;;  %v1631_v21 = vpop.permute.xlu1 %1630  ;;  %4429 = vmatprep.subr.bf16.mxu0 %v4428_v19  ;;  %v2173_v19 = vld [vmem:[#allocation3 + $0x1e8] sm:$0xff] }
 0x27f   : > { %1635 = vst.msk [vmem:[#allocation3 + $0x158] sm:$0xff] %vm944_vm4, %v1631_v21  ;;  %1772 = vrot.lane.b32.xlu0 %v5234_v32, %s7116_s15  ;;  %v4452_v21 = vpack.c.bf16 %v2175_v15, %v2173_v19 }
 0x280   : > { %2054 = vrot.lane.b32.xlu1 %v5254_v38, %s4863_s22 }
 0x281   : > { %v1933_v22 = vpop.permute.xlu0 %1932  ;;  %v2153_v34 = vld [vmem:[#allocation3 + $0x148] sm:$0xff] }
 0x282   : > { %1938 = vst.msk [vmem:[#allocation3 + $0x168] sm:$0xff] %vm1229_vm5, %v1933_v22  ;;  %v1923_v23 = vpop.permute.xlu1 %1922  ;;  %v2150_v25 = vld [vmem:[#allocation3 + $0x130] sm:$0xff] }
 0x283   : > { %1927 = vst.msk [vmem:[#allocation3 + $0x158] sm:$0xff] %vm1229_vm5, %v1923_v23  ;;  %1195 = vrot.lane.b32.xlu0 %v5232_v30, %s7116_s15  ;;  %v4430_v26 = vpack.c.bf16 %v2150_v25, %v2148_v24  ;;  %v2179_v24 = vld [vmem:[#allocation3 + $0x218] sm:$0xff] }
 0x284   : > { %1470 = vrot.lane.b32.xlu1 %v5248_v37, %s4863_s22 }
 0x285   : > { %v1653_v27 = vpop.permute.xlu0 %1652  ;;  %4431 = vmatpush1.bf16.msra.mxu0 %v4430_v26 }
 0x286   : > { %1658 = vst.msk [vmem:[#allocation3 + $0x188] sm:$0xff] %vm944_vm4, %v1653_v27  ;;  %v1643_v28 = vpop.permute.xlu1 %1642 }
 0x287   : > { %1647 = vst.msk [vmem:[#allocation3 + $0x178] sm:$0xff] %vm944_vm4, %v1643_v28  ;;  %2064 = vrot.lane.b32.xlu0 %v5234_v32, %s7116_s15 }
 0x288   : > { %1774 = vrot.lane.b32.xlu1 %v5254_v38, %s7116_s15 }
 0x289   : > { %v1945_v29 = vpop.permute.xlu0 %1944  ;;  %v2157_v46 = vld [vmem:[#allocation3 + $0x168] sm:$0xff] }
 0x28a   : > { %1950 = vst.msk [vmem:[#allocation3 + $0x188] sm:$0xff] %vm1229_vm5, %v1945_v29  ;;  %v1935_v33 = vpop.permute.xlu1 %1934  ;;  %v2155_v35 = vld [vmem:[#allocation3 + $0x158] sm:$0xff]  ;;  %v2177_v29 = vld [vmem:[#allocation3 + $0x208] sm:$0xff] }
 0x28b   : > { %1939 = vst.msk [vmem:[#allocation3 + $0x178] sm:$0xff] %vm1229_vm5, %v1935_v33  ;;  %1480 = vrot.lane.b32.xlu0 %v5232_v30, %s7116_s15  ;;  %v4432_v36 = vpack.c.bf16 %v2155_v35, %v2153_v34  ;;  %v2096_v33 = vld [vmem:[%s7114_s3] sm:$0xff]  ;;  %v2101_v35 = vld [vmem:[%s7114_s3 + $0x28] sm:$0xff] }
 0x28c   : > { %1197 = vrot.lane.b32.xlu1 %v5248_v37, %s7116_s15 }
 0x28d   : > { %v1665_v41 = vpop.permute.xlu0 %1664  ;;  %4433 = vmatprep.subr.bf16.mxu0 %v4432_v36 }
 0x28e   : > { %1670 = vst.msk [vmem:[#allocation3 + $0x1a8] sm:$0xff] %vm944_vm4, %v1665_v41  ;;  %v1655_v42 = vpop.permute.xlu1 %1654  ;;  %4435 = vmatpush1.bf16.msra.mxu0 %v4434_v40 }
 0x28f   : > { %1659 = vst.msk [vmem:[#allocation3 + $0x198] sm:$0xff] %vm944_vm4, %v1655_v42  ;;  %1784 = vrot.lane.b32.xlu0 %v5234_v32, %s4863_s22 }
 0x290   : > { %2066 = vrot.lane.b32.xlu1 %v5254_v38, %s7116_s15 }
 0x291   : > { %v1957_v43 = vpop.permute.xlu0 %1956  ;;  %v2161_v57 = vld [vmem:[#allocation3 + $0x188] sm:$0xff] }
 0x292   : > { %1962 = vst.msk [vmem:[#allocation3 + $0x1a8] sm:$0xff] %vm1229_vm5, %v1957_v43  ;;  %v1947_v45 = vpop.permute.xlu1 %1946  ;;  %v2159_v47 = vld [vmem:[#allocation3 + $0x178] sm:$0xff]  ;;  %v2105_v43 = vld [vmem:[%s7114_s3 + $0x48] sm:$0xff] }
 0x293   : > { %1951 = vst.msk [vmem:[#allocation3 + $0x198] sm:$0xff] %vm1229_vm5, %v1947_v45  ;;  %1207 = vrot.lane.b32.xlu0 %v5232_v30, %s4863_s22  ;;  %v4436_v48 = vpack.c.bf16 %v2159_v47, %v2157_v46  ;;  %v2181_v45 = vld [vmem:[#allocation3 + $0x228] sm:$0xff] }
 0x294   : > { %1482 = vrot.lane.b32.xlu1 %v5248_v37, %s7116_s15  ;;  %s7056_s15 = smov 40  }
 0x295   : > { %v1677_v51 = vpop.permute.xlu0 %1676  ;;  %4437 = vmatprep.subr.bf16.mxu0 %v4436_v48  ;;  %v2104_v48 = vld [vmem:[%s7114_s3 + $0x40] sm:$0xff] }
 0x296   : > { %1682 = vst.msk [vmem:[#allocation3 + $0x1c8] sm:$0xff] %vm944_vm4, %v1677_v51  ;;  %v1667_v52 = vpop.permute.xlu1 %1666  ;;  %4439 = vmatpush1.bf16.msra.mxu0 %v4438_v50  ;;  %v2109_v50 = vld [vmem:[%s7114_s3 + $0x68] sm:$0xff] }
 0x297   : > { %1671 = vst.msk [vmem:[#allocation3 + $0x1b8] sm:$0xff] %vm944_vm4, %v1667_v52  ;;  %2076 = vrot.lane.b32.xlu0 %v5234_v32, %s4865_s13  ;;  %v2448_v51 = vld [vmem:[%s7117_s4 + $0x8] sm:$0xff] }
 0x298   : > { %1786 = vrot.lane.b32.xlu1 %v5254_v38, %s4863_s22 }
 0x299   : > { %v1969_v53 = vpop.permute.xlu0 %1968  ;;  %v2165_v4 = vld [vmem:[#allocation3 + $0x1a8] sm:$0xff] }
 0x29a   : > { %1974 = vst.msk [vmem:[#allocation3 + $0x1c8] sm:$0xff] %vm1229_vm5, %v1969_v53  ;;  %v1959_v56 = vpop.permute.xlu1 %1958  ;;  %v2163_v58 = vld [vmem:[#allocation3 + $0x198] sm:$0xff]  ;;  %v2108_v53 = vld [vmem:[%s7114_s3 + $0x60] sm:$0xff] }
 0x29b   : > { %1963 = vst.msk [vmem:[#allocation3 + $0x1b8] sm:$0xff] %vm1229_vm5, %v1959_v56  ;;  %1492 = vrot.lane.b32.xlu0 %v5232_v30, %s4865_s13  ;;  %v4440_v59 = vpack.c.bf16 %v2163_v58, %v2161_v57  ;;  %v2099_v58 = vld [vmem:[%s7114_s3 + $0x18] sm:$0xff] }
 0x29c   : > { %1209 = vrot.lane.b32.xlu1 %v5248_v37, %s4863_s22  ;;  %s7054_s22 = smov 80  }
 0x29d   : > { %v1112_v62 = vpop.permute.xlu0 %1111  ;;  %4441 = vmatprep.subr.bf16.mxu0 %v4440_v59 }
 0x29e   : > { %1117 = vst.msk [vmem:[#allocation3 + $0x1e0] sm:$0xff] %vm944_vm4, %v1112_v62  ;;  %v1679_v63 = vpop.permute.xlu1 %1678  ;;  %4443 = vmatpush1.bf16.msra.mxu0 %v4442_v61 }
 0x29f   : > { %1683 = vst.msk [vmem:[#allocation3 + $0x1d8] sm:$0xff] %vm944_vm4, %v1679_v63  ;;  %1796 = vrot.lane.b32.xlu0 %v5234_v32, %s4866_s30 }
 0x2a0   : > { %2078 = vrot.lane.b32.xlu1 %v5254_v38, %s4865_s13 }
 0x2a1   : > { %v1397_v1 = vpop.permute.xlu0 %1396  ;;  %v2169_v13 = vld [vmem:[#allocation3 + $0x1c8] sm:$0xff] }
 0x2a2   : > { %1402 = vst.msk [vmem:[#allocation3 + $0x1e0] sm:$0xff] %vm1229_vm5, %v1397_v1  ;;  %v1971_v3 = vpop.permute.xlu1 %1970  ;;  %v2167_v5 = vld [vmem:[#allocation3 + $0x1b8] sm:$0xff] }
 0x2a3   : > { %1975 = vst.msk [vmem:[#allocation3 + $0x1d8] sm:$0xff] %vm1229_vm5, %v1971_v3  ;;  %1219 = vrot.lane.b32.xlu0 %v5232_v30, %s4866_s30  ;;  %v4444_v55 = vpack.c.bf16 %v2167_v5, %v2165_v4 }
 0x2a4   : > { %1494 = vrot.lane.b32.xlu1 %v5248_v37, %s4865_s13  ;;  %s7121_s13 = smov 120  }
 0x2a5   : > { %v1124_v8 = vpop.permute.xlu0 %1123  ;;  %4445 = vmatprep.subr.bf16.mxu0 %v4444_v55 }
 0x2a6   : > { %1129 = vst.msk [vmem:[#allocation3 + $0x200] sm:$0xff] %vm944_vm4, %v1124_v8  ;;  %v1114_v9 = vpop.permute.xlu1 %1113  ;;  %4447 = vmatpush1.bf16.msra.mxu0 %v4446_v7 }
 0x2a7   : > { %1118 = vst.msk [vmem:[#allocation3 + $0x1f0] sm:$0xff] %vm944_vm4, %v1114_v9  ;;  %2088 = vrot.lane.b32.xlu0 %v5234_v32, %s4866_s30  ;;  %v4450_v32 = vpack.c.bf16 %v2170_v11, %v2168_v17 }
 0x2a8   : > { %1798 = vrot.lane.b32.xlu1 %v5254_v38, %s4866_s30 }
 0x2a9   : > { %v1409_v10 = vpop.permute.xlu0 %1408  ;;  %v2172_v26 = vld [vmem:[#allocation3 + $0x1e0] sm:$0xff] }
 0x2aa   : > { %1414 = vst.msk [vmem:[#allocation3 + $0x200] sm:$0xff] %vm1229_vm5, %v1409_v10  ;;  %v1399_v12 = vpop.permute.xlu1 %1398  ;;  %v2171_v14 = vld [vmem:[#allocation3 + $0x1d8] sm:$0xff] }
 0x2ab   : > { %1403 = vst.msk [vmem:[#allocation3 + $0x1f0] sm:$0xff] %vm1229_vm5, %v1399_v12  ;;  %1504 = vrot.lane.b32.xlu0 %v5232_v30, %s4866_s30  ;;  %v4448_v16 = vpack.c.bf16 %v2171_v14, %v2169_v13  ;;  %v2449_v30 = vld [vmem:[%s7117_s4 + $0x10] sm:$0xff] }
 0x2ac   : > { %1221 = vrot.lane.b32.xlu1 %v5248_v37, %s4866_s30 }
 0x2ad   : > { %v1136_v20 = vpop.permute.xlu0 %1135  ;;  %4449 = vmatprep.subr.bf16.mxu0 %v4448_v16 }
 0x2ae   : > { %1141 = vst.msk [vmem:[#allocation3 + $0x220] sm:$0xff] %vm944_vm4, %v1136_v20  ;;  %v1126_v22 = vpop.permute.xlu1 %1125  ;;  %4451 = vmatpush1.bf16.msra.mxu0 %v4450_v32 }
 0x2af   : > { %1130 = vst.msk [vmem:[#allocation3 + $0x210] sm:$0xff] %vm944_vm4, %v1126_v22  ;;  %2453 = vperm.xlu0 %4781, %v2447_v18   ;;  %4453 = vmatprep.subr.bf16.mxu0 %v4452_v21 }
 0x2b0   : > { %2090 = vrot.lane.b32.xlu1 %v5254_v38, %s4866_s30  ;;  %v4456_v38 = vpack.c.bf16 %v2179_v24, %v2177_v29 }
 0x2b1   : > { %v1421_v23 = vpop.permute.xlu0 %1420  ;;  %v2176_v41 = vld [vmem:[#allocation3 + $0x200] sm:$0xff] }
 0x2b2   : > { %1426 = vst.msk [vmem:[#allocation3 + $0x220] sm:$0xff] %vm1229_vm5, %v1421_v23  ;;  %v1411_v25 = vpop.permute.xlu1 %1410  ;;  %v2174_v27 = vld [vmem:[#allocation3 + $0x1f0] sm:$0xff] }
 0x2b3   : > { %1415 = vst.msk [vmem:[#allocation3 + $0x210] sm:$0xff] %vm1229_vm5, %v1411_v25  ;;  %2463 = vperm.xlu0 %4781, %v2449_v30   ;;  %v4454_v28 = vpack.c.bf16 %v2174_v27, %v2172_v26 }
 0x2b4   : > { %1506 = vrot.lane.b32.xlu1 %v5248_v37, %s4866_s30  ;;  %v2183_v37 = vld [vmem:[#allocation3 + $0x238] sm:$0xff]  ;;  %s7122_s30 = smov 48  }
 0x2b5   : > { %v1148_v31 = vpop.permute.xlu0 %1147  ;;  %4455 = vmatpush1.bf16.msra.mxu0 %v4454_v28  ;;  %v4460_v46 = vpack.c.bf16 %v2183_v37, %v2181_v45 }
 0x2b6   : > { %1153 = vst.msk [vmem:[#allocation3 + $0x240] sm:$0xff] %vm944_vm4, %v1148_v31  ;;  %v1138_v34 = vpop.permute.xlu1 %1137  ;;  %4457 = vmatprep.subr.bf16.mxu0 %v4456_v38 }
 0x2b7   : > { %1142 = vst.msk [vmem:[#allocation3 + $0x230] sm:$0xff] %vm944_vm4, %v1138_v34 }
 0x2b8   : > { %2290 = vmatmul.mubr.f32.vlgmr.msra.gmra.mrb[8].mxu0 %v2096_v33  ;;  %2458 = vperm.xlu1 %4782, %v2448_v51  }
 0x2b9   : > { %v2017_v36 = vpop.permute.xlu0 %2016  ;;  %2295 = vmatprep.mubr.f32.mxu0 %v2101_v35  ;;  %v2180_v56 = vld [vmem:[#allocation3 + $0x220] sm:$0xff] }
 0x2ba   : > { %2022 = vst.msk [vmem:[#allocation3 + $0x248] sm:$0xff] %vm1229_vm5, %v2017_v36  ;;  %v1423_v40 = vpop.permute.xlu1 %1422  ;;  %v2178_v42 = vld [vmem:[#allocation3 + $0x210] sm:$0xff] }
 0x2bb   : > { %1427 = vst.msk [vmem:[#allocation3 + $0x230] sm:$0xff] %vm1229_vm5, %v1423_v40  ;;  %v4458_v44 = vpack.c.bf16 %v2178_v42, %v2176_v41 }
 0x2bc   : > { %2296 = vmatmul.mubr.f32.gmra.mrb[10].mxu0 %v2100_v39 }
 0x2bd   : > { %v1433_v47 = vpop.permute.xlu0 %1432  ;;  %4459 = vmatpush1.bf16.msra.mxu0 %v4458_v44  ;;  %2301 = vmatprep.mubr.f32.mxu0 %v2105_v43 }
 0x2be   : > { %1438 = vst.msk [vmem:[#allocation3 + $0x240] sm:$0xff] %vm1229_vm5, %v1433_v47  ;;  %v1150_v49 = vpop.permute.xlu1 %1149  ;;  %4461 = vmatprep.subr.bf16.mxu0 %v4460_v46 }
 0x2bf   : > { %1154 = vst.msk [vmem:[#allocation3 + $0x250] sm:$0xff] %vm944_vm4, %v1150_v49 }
 0x2c0   : > { %2302 = vmatmul.mubr.f32.gmra.mrb[12].mxu0 %v2104_v48 }
 0x2c1   : > { %v1737_v52 = vpop.permute.xlu0 %1736  ;;  %2307 = vmatprep.mubr.f32.mxu0 %v2109_v50  ;;  %v2185_v1 = vld [vmem:[#allocation3 + $0x248] sm:$0xff] }
 0x2c2   : > { %1742 = vst.msk [vmem:[#allocation3 + $0x268] sm:$0xff] %vm944_vm4, %v1737_v52  ;;  %v2019_v54 = vpop.permute.xlu1 %2018  ;;  %v2182_v57 = vld [vmem:[#allocation3 + $0x230] sm:$0xff] }
 0x2c3   : > { %2023 = vst.msk [vmem:[#allocation3 + $0x258] sm:$0xff] %vm1229_vm5, %v2019_v54  ;;  %v4462_v59 = vpack.c.bf16 %v2182_v57, %v2180_v56 }
 0x2c4   : > { %2308 = vmatmul.mubr.f32.gmra.mrb[14].mxu0 %v2108_v53 }
 0x2c5   : > { %v1160_v60 = vpop.permute.xlu0 %1159  ;;  %4463 = vmatpush1.bf16.msra.mxu0 %v4462_v59  ;;  %3988 = vmatprep.mubr.msk.f32.mxu0 %vm2212_vm6, %v2099_v58  ;;  %v2184_v55 = vld [vmem:[#allocation3 + $0x240] sm:$0xff] }
 0x2c6   : > { %1165 = vst.msk [vmem:[#allocation3 + $0x260] sm:$0xff] %vm944_vm4, %v1160_v60  ;;  %v1435_v61 = vpop.permute.xlu1 %1434 }
 0x2c7   : > { %1439 = vst.msk [vmem:[#allocation3 + $0x250] sm:$0xff] %vm1229_vm5, %v1435_v61 }
 0x2c9   : > { %v2029_v62 = vpop.permute.xlu0 %2028 }
 0x2ca   : > { %2034 = vst.msk [vmem:[#allocation3 + $0x268] sm:$0xff] %vm1229_vm5, %v2029_v62  ;;  %v1739_v63 = vpop.permute.xlu1 %1738  ;;  %v2187_v2 = vld [vmem:[#allocation3 + $0x258] sm:$0xff] }
 0x2cb   : > { %1743 = vst.msk [vmem:[#allocation3 + $0x278] sm:$0xff] %vm944_vm4, %v1739_v63  ;;  %v4464_v3 = vpack.c.bf16 %v2187_v2, %v2185_v1 }
 0x2cd   : > { %v1445_v4 = vpop.permute.xlu0 %1444  ;;  %4465 = vmatprep.subr.bf16.mxu0 %v4464_v3 }
 0x2ce   : > { %1450 = vst.msk [vmem:[#allocation3 + $0x260] sm:$0xff] %vm1229_vm5, %v1445_v4  ;;  %v1162_v5 = vpop.permute.xlu1 %1161  ;;  %v2186_v6 = vld [vmem:[#allocation3 + $0x250] sm:$0xff] }
 0x2cf   : > { %1166 = vst.msk [vmem:[#allocation3 + $0x270] sm:$0xff] %vm944_vm4, %v1162_v5  ;;  %v4466_v7 = vpack.c.bf16 %v2186_v6, %v2184_v55 }
 0x2d1   : > { %v1749_v8 = vpop.permute.xlu0 %1748  ;;  %4467 = vmatpush1.bf16.msra.mxu0 %v4466_v7  ;;  %v2189_v14 = vld [vmem:[#allocation3 + $0x268] sm:$0xff] }
 0x2d2   : > { %1754 = vst.msk [vmem:[#allocation3 + $0x288] sm:$0xff] %vm944_vm4, %v1749_v8  ;;  %v2031_v9 = vpop.permute.xlu1 %2030 }
 0x2d3   : > { %2035 = vst.msk [vmem:[#allocation3 + $0x278] sm:$0xff] %vm1229_vm5, %v2031_v9 }
 0x2d5   : > { %v1172_v10 = vpop.permute.xlu0 %1171  ;;  %v2188_v18 = vld [vmem:[#allocation3 + $0x260] sm:$0xff] }
 0x2d6   : > { %1177 = vst.msk [vmem:[#allocation3 + $0x280] sm:$0xff] %vm944_vm4, %v1172_v10  ;;  %v1447_v11 = vpop.permute.xlu1 %1446 }
 0x2d7   : > { %1451 = vst.msk [vmem:[#allocation3 + $0x270] sm:$0xff] %vm1229_vm5, %v1447_v11 }
 0x2d9   : > { %v2041_v12 = vpop.permute.xlu0 %2040 }
 0x2da   : > { %2046 = vst.msk [vmem:[#allocation3 + $0x288] sm:$0xff] %vm1229_vm5, %v2041_v12  ;;  %v1751_v13 = vpop.permute.xlu1 %1750  ;;  %v2191_v15 = vld [vmem:[#allocation3 + $0x278] sm:$0xff] }
 0x2db   : > { %1755 = vst.msk [vmem:[#allocation3 + $0x298] sm:$0xff] %vm944_vm4, %v1751_v13  ;;  %v4468_v16 = vpack.c.bf16 %v2191_v15, %v2189_v14 }
 0x2dd   : > { %v1457_v17 = vpop.permute.xlu0 %1456  ;;  %4469 = vmatprep.subr.bf16.mxu0 %v4468_v16 }
 0x2de   : > { %1462 = vst.msk [vmem:[#allocation3 + $0x280] sm:$0xff] %vm1229_vm5, %v1457_v17  ;;  %v1174_v32 = vpop.permute.xlu1 %1173  ;;  %v2190_v19 = vld [vmem:[#allocation3 + $0x270] sm:$0xff] }
 0x2df   : > { %1178 = vst.msk [vmem:[#allocation3 + $0x290] sm:$0xff] %vm944_vm4, %v1174_v32  ;;  %v4470_v20 = vpack.c.bf16 %v2190_v19, %v2188_v18 }
 0x2e1   : > { %v1761_v21 = vpop.permute.xlu0 %1760  ;;  %4471 = vmatpush1.bf16.msra.mxu0 %v4470_v20  ;;  %v2193_v26 = vld [vmem:[#allocation3 + $0x288] sm:$0xff] }
 0x2e2   : > { %1766 = vst.msk [vmem:[#allocation3 + $0x2a8] sm:$0xff] %vm944_vm4, %v1761_v21  ;;  %v2043_v22 = vpop.permute.xlu1 %2042 }
 0x2e3   : > { %2047 = vst.msk [vmem:[#allocation3 + $0x298] sm:$0xff] %vm1229_vm5, %v2043_v22  ;;  %v2098_v22 = vld [vmem:[%s7114_s3 + $0x10] sm:$0xff] }
 0x2e5   : > { %v1184_v30 = vpop.permute.xlu0 %1183  ;;  %v2192_v31 = vld [vmem:[#allocation3 + $0x280] sm:$0xff] }
 0x2e6   : > { %1189 = vst.msk [vmem:[#allocation3 + $0x2a0] sm:$0xff] %vm944_vm4, %v1184_v30  ;;  %v1459_v23 = vpop.permute.xlu1 %1458  ;;  %v2103_v30 = vld [vmem:[%s7114_s3 + $0x38] sm:$0xff] }
 0x2e7   : > { %1463 = vst.msk [vmem:[#allocation3 + $0x290] sm:$0xff] %vm1229_vm5, %v1459_v23  ;;  %v2102_v23 = vld [vmem:[%s7114_s3 + $0x30] sm:$0xff] }
 0x2e9   : > { %v2053_v24 = vpop.permute.xlu0 %2052 }
 0x2ea   : > { %2058 = vst.msk [vmem:[#allocation3 + $0x2a8] sm:$0xff] %vm1229_vm5, %v2053_v24  ;;  %v1763_v25 = vpop.permute.xlu1 %1762  ;;  %v2195_v27 = vld [vmem:[#allocation3 + $0x298] sm:$0xff] }
 0x2eb   : > { %1767 = vst.msk [vmem:[#allocation3 + $0x2b8] sm:$0xff] %vm944_vm4, %v1763_v25  ;;  %v4472_v28 = vpack.c.bf16 %v2195_v27, %v2193_v26  ;;  %v2107_v24 = vld [vmem:[%s7114_s3 + $0x58] sm:$0xff]  ;;  %v2106_v25 = vld [vmem:[%s7114_s3 + $0x50] sm:$0xff] }
 0x2ec   : > { %v2111_v26 = vld [vmem:[%s7114_s3 + $0x78] sm:$0xff]  ;;  %v2110_v27 = vld [vmem:[%s7114_s3 + $0x70] sm:$0xff]  ;;  %s7123_s3 = smov 40  }
 0x2ed   : > { %v1469_v29 = vpop.permute.xlu0 %1468  ;;  %4473 = vmatprep.subr.bf16.mxu0 %v4472_v28 }
 0x2ee   : > { %1474 = vst.msk [vmem:[#allocation3 + $0x2a0] sm:$0xff] %vm1229_vm5, %v1469_v29  ;;  %v1186_v38 = vpop.permute.xlu1 %1185  ;;  %v2194_v33 = vld [vmem:[#allocation3 + $0x290] sm:$0xff] }
 0x2ef   : > { %1190 = vst.msk [vmem:[#allocation3 + $0x2b0] sm:$0xff] %vm944_vm4, %v1186_v38  ;;  %v4474_v34 = vpack.c.bf16 %v2194_v33, %v2192_v31 }
 0x2f1   : > { %v1773_v35 = vpop.permute.xlu0 %1772  ;;  %4475 = vmatpush1.bf16.msra.mxu0 %v4474_v34  ;;  %v2197_v42 = vld [vmem:[#allocation3 + $0x2a8] sm:$0xff] }
 0x2f2   : > { %1778 = vst.msk [vmem:[#allocation3 + $0x2c8] sm:$0xff] %vm944_vm4, %v1773_v35  ;;  %v2055_v36 = vpop.permute.xlu1 %2054  ;;  %v2450_v35 = vld [vmem:[%s7117_s4 + $0x18] sm:$0xff]  ;;  %s4876_s4 = smov 16  }
 0x2f3   : > { %2059 = vst.msk [vmem:[#allocation3 + $0x2b8] sm:$0xff] %vm1229_vm5, %v2055_v36 }
 0x2f5   : > { %v1196_v37 = vpop.permute.xlu0 %1195  ;;  %v2196_v47 = vld [vmem:[#allocation3 + $0x2a0] sm:$0xff] }
 0x2f6   : > { %1201 = vst.msk [vmem:[#allocation3 + $0x2c0] sm:$0xff] %vm944_vm4, %v1196_v37  ;;  %v1471_v39 = vpop.permute.xlu1 %1470 }
 0x2f7   : > { %1475 = vst.msk [vmem:[#allocation3 + $0x2b0] sm:$0xff] %vm1229_vm5, %v1471_v39 }
 0x2f9   : > { %v2065_v40 = vpop.permute.xlu0 %2064 }
 0x2fa   : > { %2070 = vst.msk [vmem:[#allocation3 + $0x2c8] sm:$0xff] %vm1229_vm5, %v2065_v40  ;;  %v1775_v41 = vpop.permute.xlu1 %1774  ;;  %v2199_v43 = vld [vmem:[#allocation3 + $0x2b8] sm:$0xff] }
 0x2fb   : > { %1779 = vst.msk [vmem:[#allocation3 + $0x2d8] sm:$0xff] %vm944_vm4, %v1775_v41  ;;  %v4476_v44 = vpack.c.bf16 %v2199_v43, %v2197_v42 }
 0x2fd   : > { %v1481_v45 = vpop.permute.xlu0 %1480  ;;  %4477 = vmatprep.subr.bf16.mxu0 %v4476_v44 }
 0x2fe   : > { %1486 = vst.msk [vmem:[#allocation3 + $0x2c0] sm:$0xff] %vm1229_vm5, %v1481_v45  ;;  %v1198_v46 = vpop.permute.xlu1 %1197  ;;  %v2198_v48 = vld [vmem:[#allocation3 + $0x2b0] sm:$0xff] }
 0x2ff   : > { %1202 = vst.msk [vmem:[#allocation3 + $0x2d0] sm:$0xff] %vm944_vm4, %v1198_v46  ;;  %v4478_v49 = vpack.c.bf16 %v2198_v48, %v2196_v47 }
 0x301   : > { %v1785_v50 = vpop.permute.xlu0 %1784  ;;  %4479 = vmatpush1.bf16.msra.mxu0 %v4478_v49  ;;  %v2201_v57 = vld [vmem:[#allocation3 + $0x2c8] sm:$0xff]  ;;  %v2485_v49 = vlaneseq }
 0x302   : > { %1790 = vst.msk [vmem:[#allocation3 + $0x2e8] sm:$0xff] %vm944_vm4, %v1785_v50  ;;  %v2067_v51 = vpop.permute.xlu1 %2066  ;;  %v4867_v50 = vmov 1966171168  }
 0x303   : > { %2071 = vst.msk [vmem:[#allocation3 + $0x2d8] sm:$0xff] %vm1229_vm5, %v2067_v51  ;;  %v2500_v51 = vunpack.c.l.s4 %v4867_v50  ;;  %vm5914_vm8 = vcmp.lt.s32.totalorder %v2485_v49, 40  ;;  %vm6186_vm9 = vcmp.ge.s32.totalorder %v2485_v49, 40  ;;  %vm6191_vm10 = vcmp.lt.s32.totalorder %v2485_v49, 80 }
 0x304   : > { %vm7063_vm11 = vmand %vm6186_vm9, %vm6191_vm10  ;;  %vm6200_vm12 = vcmp.ge.s32.totalorder %v2485_v49, 80  ;;  %vm6205_vm13 = vcmp.lt.s32.totalorder %v2485_v49, 120  ;;  %vm6210_vm14 = vcmp.ge.s32.totalorder %v2485_v49, 120  ;;  %vm6215_vm15 = vcmp.lt.s32.totalorder %v2485_v49, 160 }
 0x305   : > { %v1208_v52 = vpop.permute.xlu0 %1207  ;;  %v2200_v62 = vld [vmem:[#allocation3 + $0x2c0] sm:$0xff]  ;;  %vm7062_vm1 = vmand %vm6200_vm12, %vm6205_vm13  ;;  %vm6233_vm3 = vcmp.ge.s32.totalorder %v2485_v49, 32 }
 0x306   : > { %1213 = vst.msk [vmem:[#allocation3 + $0x2e0] sm:$0xff] %vm944_vm4, %v1208_v52  ;;  %v1483_v53 = vpop.permute.xlu1 %1482  ;;  %vm7066_vm2 = vmand %vm6210_vm14, %vm6215_vm15 }
 0x307   : > { %1487 = vst.msk [vmem:[#allocation3 + $0x2d0] sm:$0xff] %vm1229_vm5, %v1483_v53 }
 0x309   : > { %v2077_v54 = vpop.permute.xlu0 %2076 }
 0x30a   : > { %2082 = vst.msk [vmem:[#allocation3 + $0x2e8] sm:$0xff] %vm1229_vm5, %v2077_v54  ;;  %v1787_v56 = vpop.permute.xlu1 %1786  ;;  %v2203_v58 = vld [vmem:[#allocation3 + $0x2d8] sm:$0xff] }
 0x30b   : > { %1791 = vst.msk [vmem:[#allocation3 + $0x2f8] sm:$0xff] %vm944_vm4, %v1787_v56  ;;  %v4480_v59 = vpack.c.bf16 %v2203_v58, %v2201_v57  ;;  %v2501_v58 = vunpack.c.0.s8 %v2500_v51  ;;  %v3162_v51 = vld [vmem:[%s7028_s5 + $0x18] sm:$0xff] }
 0x30d   : > { %v1493_v60 = vpop.permute.xlu0 %1492  ;;  %4481 = vmatprep.subr.bf16.mxu0 %v4480_v59  ;;  %v5908_v59 = vshrl.u32 %v2485_v49, 7 }
 0x30e   : > { %1498 = vst.msk [vmem:[#allocation3 + $0x2e0] sm:$0xff] %vm1229_vm5, %v1493_v60  ;;  %v1210_v61 = vpop.permute.xlu1 %1209  ;;  %v2202_v63 = vld [vmem:[#allocation3 + $0x2d0] sm:$0xff] }
 0x30f   : > { %1214 = vst.msk [vmem:[#allocation3 + $0x2f0] sm:$0xff] %vm944_vm4, %v1210_v61  ;;  %v4482_v1 = vpack.c.bf16 %v2202_v63, %v2200_v62 }
 0x311   : > { %v1797_v2 = vpop.permute.xlu0 %1796  ;;  %4483 = vmatpush1.bf16.msra.mxu0 %v4482_v1  ;;  %v2205_v7 = vld [vmem:[#allocation3 + $0x2e8] sm:$0xff] }
 0x312   : > { %1802 = vst.msk [vmem:[#allocation3 + $0x308] sm:$0xff] %vm944_vm4, %v1797_v2  ;;  %v2079_v3 = vpop.permute.xlu1 %2078  ;;  %v5911_v2 = vsub.s32 %v2501_v58, %v5908_v59 }
 0x313   : > { %2083 = vst.msk [vmem:[#allocation3 + $0x2f8] sm:$0xff] %vm1229_vm5, %v2079_v3 }
 0x315   : > { %v1220_v4 = vpop.permute.xlu0 %1219  ;;  %v2204_v12 = vld [vmem:[#allocation3 + $0x2e0] sm:$0xff] }
 0x316   : > { %1225 = vst.msk [vmem:[#allocation3 + $0x300] sm:$0xff] %vm944_vm4, %v1220_v4  ;;  %v1495_v5 = vpop.permute.xlu1 %1494 }
 0x317   : > { %1499 = vst.msk [vmem:[#allocation3 + $0x2f0] sm:$0xff] %vm1229_vm5, %v1495_v5 }
 0x319   : > { %v2089_v55 = vpop.permute.xlu0 %2088 }
 0x31a   : > { %2094 = vst.msk [vmem:[#allocation3 + $0x308] sm:$0xff] %vm1229_vm5, %v2089_v55  ;;  %v1799_v6 = vpop.permute.xlu1 %1798  ;;  %v2207_v8 = vld [vmem:[#allocation3 + $0x2f8] sm:$0xff] }
 0x31b   : > { %1803 = vst.msk [vmem:[#allocation3 + $0x318] sm:$0xff] %vm944_vm4, %v1799_v6  ;;  %v4484_v9 = vpack.c.bf16 %v2207_v8, %v2205_v7 }
 0x31d   : > { %v1505_v10 = vpop.permute.xlu0 %1504  ;;  %4485 = vmatprep.subr.bf16.mxu0 %v4484_v9 }
 0x31e   : > { %1510 = vst.msk [vmem:[#allocation3 + $0x300] sm:$0xff] %vm1229_vm5, %v1505_v10  ;;  %v1222_v11 = vpop.permute.xlu1 %1221  ;;  %v2206_v13 = vld [vmem:[#allocation3 + $0x2f0] sm:$0xff] }
 0x31f   : > { %1226 = vst.msk [vmem:[#allocation3 + $0x310] sm:$0xff] %vm944_vm4, %v1222_v11  ;;  %v4486_v14 = vpack.c.bf16 %v2206_v13, %v2204_v12  ;;  %vm6238_vm4 = vcmp.lt.s32.totalorder %v2485_v49, 72 }
 0x321   : > { %4487 = vmatpush1.bf16.msra.mxu0 %v4486_v14  ;;  %v2209_v17 = vld [vmem:[#allocation3 + $0x308] sm:$0xff] }
 0x322   : > { %v2091_v15 = vpop.permute.xlu1 %2090 }
 0x323   : > { %2095 = vst.msk [vmem:[#allocation3 + $0x318] sm:$0xff] %vm1229_vm5, %v2091_v15 }
 0x325   : > { %v2208_v19 = vld [vmem:[#allocation3 + $0x300] sm:$0xff] }
 0x326   : > { %v1507_v16 = vpop.permute.xlu1 %1506 }
 0x327   : > { %1511 = vst.msk [vmem:[#allocation3 + $0x310] sm:$0xff] %vm1229_vm5, %v1507_v16  ;;  %vm6243_vm5 = vcmp.ge.s32.totalorder %v2485_v49, 72 }
 0x32a   : > { %v2211_v32 = vld [vmem:[#allocation3 + $0x318] sm:$0xff] }
 0x32b   : > { %v4488_v18 = vpack.c.bf16 %v2211_v32, %v2209_v17 }
 0x32d   : > { %4489 = vmatprep.subr.bf16.mxu0 %v4488_v18 }
 0x32e   : > { %v2210_v20 = vld [vmem:[#allocation3 + $0x310] sm:$0xff]  ;;  %v2454_v39 = vpop.permute.xlu0 %2453 }
 0x32f   : > { %v4490_v21 = vpack.c.bf16 %v2210_v20, %v2208_v19 }
 0x331   : > { %4491 = vmatpush1.bf16.msra.mxu0 %v4490_v21 }
 0x332   : > { %v2464_v41 = vpop.permute.xlu0 %2463 }
 0x334   : > { %2379 = vmatmul.mubr.f32.vlgmr.msra.gmra.mrb[8].mxu0 %v2098_v22 }
 0x335   : > { %3989 = vmatprep.mubr.msk.f32.mxu0 %vm2212_vm6, %v2103_v30 }
 0x337   : > { %v2459_v40 = vpop.permute.xlu1 %2458 }
 0x338   : > { %2385 = vmatmul.mubr.f32.gmra.mrb[10].mxu0 %v2102_v23 }
 0x339   : > { %3990 = vmatprep.mubr.msk.f32.mxu0 %vm2212_vm6, %v2107_v24 }
 0x33c   : > { %2391 = vmatmul.mubr.f32.gmra.mrb[12].mxu0 %v2106_v25 }
 0x33d   : > { %3991 = vmatprep.mubr.msk.f32.mxu0 %vm2212_vm6, %v2111_v26  ;;  %vm6248_vm6 = vcmp.lt.s32.totalorder %v2485_v49, 112 }
 0x340   : > { %2397 = vmatmul.mubr.f32.gmra.mrb[14].mxu0 %v2110_v27  ;;  %v3175_v27 = vld [vmem:[%s7028_s5 + $0x80] sm:$0xff] }
 0x407   : > { %v2380_v28 = vpop.f32.mrb[8].mxu0 }
 0x408   : > { %2407 = vrot.lane.b32.xlu1 %v2380_v28, %s7118_s24  ;;  %v2382_v29 = vpop.f32.mrb[9].mxu0 }
 0x409   : > { %2427 = vrot.lane.b32.xlu0 %v2382_v29, %s7118_s24 }
 0x40b   : > { %v2386_v38 = vpop.f32.mrb[10].mxu0 }
 0x40c   : > { %2409 = vrot.lane.b32.xlu1 %v2386_v38, %s7118_s24  ;;  %v2388_v31 = vpop.f32.mrb[11].mxu0 }
 0x40f   : > { %v2392_v33 = vpop.f32.mrb[12].mxu0 }
 0x410   : > { %2429 = vrot.lane.b32.xlu1 %v2388_v31, %s7118_s24  ;;  %2411 = vrot.lane.b32.xlu0 %v2392_v33, %s7118_s24  ;;  %v2394_v34 = vpop.f32.mrb[13].mxu0 }
 0x413   : > { %v5897_v36 = vpop.f32.mrb[14].mxu0 }
 0x414   : > { %2468 = vperm.xlu1 %4782, %v2450_v35   ;;  %2431 = vrot.lane.b32.xlu0 %v2394_v34, %s7118_s24  ;;  %v5900_v37 = vpop.f32.mrb[15].mxu0  ;;  %v3159_v35 = vld [vmem:[%s7028_s5] sm:$0xff] }
 0x418   : > { %2413 = vrot.lane.b32.xlu0 %v5897_v36, %s7118_s24  ;;  %2433 = vrot.lane.b32.xlu1 %v5900_v37, %s7118_s24 }
 0x47a   : > { %v2408_v42 = vpop.permute.xlu1 %2407 }
 0x47b   : > { %v2419_v43 = vmax.f32 %v2380_v28, %v2408_v42  ;;  %v2428_v44 = vpop.permute.xlu0 %2427  ;;  %v3176_v28 = vld [vmem:[%s7028_s5 + $0x88] sm:$0xff]  ;;  %v3178_v42 = vld [vmem:[%s7028_s5 + $0x98] sm:$0xff] }
 0x47c   : > { %v2439_v45 = vmax.f32 %v2382_v29, %v2428_v44 }
 0x47e   : > { %v2443_v46 = vmax.f32 %v2419_v43, %v2439_v45  ;;  %v2410_v47 = vpop.permute.xlu1 %2409 }
 0x47f   : > { %v2420_v56 = vmax.f32 %v2386_v38, %v2410_v47 }
 0x480   : > { %v2471_v48 = vadd.f32 %v2454_v39, %v2443_v46 }
 0x482   : > { %v2475_v52 = vmax.f32 %v2471_v48, 0.0  ;;  %v2430_v53 = vpop.permute.xlu1 %2429  ;;  %v2412_v54 = vpop.permute.xlu0 %2411  ;;  %v3161_v48 = vld [vmem:[%s7028_s5 + $0x10] sm:$0xff] }
 0x483   : > { %v2440_v57 = vmax.f32 %v2388_v31, %v2430_v53  ;;  %v2421_v63 = vmax.f32 %v2392_v33, %v2412_v54  ;;  %v4492_v31 = vpack.c.bf16 %v3176_v28, %v3175_v27  ;;  %v4498_v54 = vpack.c.bf16 %v3162_v51, %v3161_v48  ;;  %v3305_v28 = vld [vmem:[%s7028_s5 + $0x490] sm:$0xff]  ;;  %v3291_v48 = vld [vmem:[%s7028_s5 + $0x420] sm:$0xff] }
 0x484   : > { %2480 = vst.msk [vmem:[#allocation4] sm:$0xff] %vm2479_vm7, %v2475_v52 }
 0x485   : > { %v2444_v60 = vmax.f32 %v2420_v56, %v2440_v57  ;;  %4493 = vmatprep.subr.bf16.mxu1 %v4492_v31  ;;  %v3179_v56 = vld [vmem:[%s7028_s5 + $0xa0] sm:$0xff]  ;;  %v3180_v57 = vld [vmem:[%s7028_s5 + $0xa8] sm:$0xff] }
 0x486   : > { %v2432_v61 = vpop.permute.xlu0 %2431 }
 0x487   : > { %v2472_v62 = vadd.f32 %v2459_v40, %v2444_v60  ;;  %v2441_v1 = vmax.f32 %v2394_v34, %v2432_v61  ;;  %v4500_v60 = vpack.c.bf16 %v3180_v57, %v3179_v56  ;;  %v3188_v57 = vld [vmem:[%s7028_s5 + $0xe8] sm:$0xff] }
 0x489   : > { %v2476_v3 = vmax.f32 %v2472_v62, 0.0  ;;  %v2445_v4 = vmax.f32 %v2421_v63, %v2441_v1  ;;  %v3163_v63 = vld [vmem:[%s7028_s5 + $0x20] sm:$0xff]  ;;  %v3164_v1 = vld [vmem:[%s7028_s5 + $0x28] sm:$0xff] }
 0x48a   : > { %v2414_v19 = vpop.permute.xlu0 %2413 }
 0x48b   : > { %2481 = vst.msk [vmem:[#allocation4 + $0x8] sm:$0xff] %vm2479_vm7, %v2476_v3  ;;  %v2473_v55 = vadd.f32 %v2464_v41, %v2445_v4  ;;  %v3994_v6 = vld.sshfl [vmem:[#allocation4 + $0x3] sm:$0x1 pattern:$0x75316420]  ;;  %v2422_v24 = vmax.f32 %v5897_v36, %v2414_v19  ;;  %v3160_v36 = vld [vmem:[%s7028_s5 + $0x8] sm:$0xff] }
 0x48c   : > { %v2484_v7 = vld [vmem:[#allocation4] sm:$0x1]  ;;  %v2551_v8 = vrot.slane %v3994_v6, %v5911_v2  ;;  %v3992_v9 = vld.sshfl [vmem:[#allocation4 + $0x1] sm:$0x1 pattern:$0x75316420]  ;;  %v4494_v40 = vpack.c.bf16 %v3160_v36, %v3159_v35 }
 0x48d   : > { %2489 = vst.msk [vmem:[#allocation5] sm:$0x1] %vm5914_vm8, %v2484_v7  ;;  %v2477_v10 = vmax.f32 %v2473_v55, 0.0  ;;  %v2505_v11 = vrot.slane %v3992_v9, %v5911_v2  ;;  %v3177_v41 = vld [vmem:[%s7028_s5 + $0x90] sm:$0xff]  ;;  %v4502_v55 = vpack.c.bf16 %v3164_v1, %v3163_v63  ;;  %v3182_v6 = vld [vmem:[%s7028_s5 + $0xb8] sm:$0xff] }
 0x48e   : > { %v3993_v12 = vld.sshfl [vmem:[#allocation4 + $0x2] sm:$0x1 pattern:$0x75316420]  ;;  %2552 = vrot.lane.b32.xlu0 %v2551_v8, %s7121_s13  ;;  %v4496_v45 = vpack.c.bf16 %v3178_v42, %v3177_v41  ;;  %4495 = vmatpush3.bf16.msra.mxu1 %v4494_v40  ;;  %v3181_v3 = vld [vmem:[%s7028_s5 + $0xb0] sm:$0xff]  ;;  %v3166_v9 = vld [vmem:[%s7028_s5 + $0x38] sm:$0xff] }
 0x48f   : > { %v3997_v13 = vld.sshfl [vmem:[#allocation4 + $0x6] sm:$0x1 pattern:$0x75316420]  ;;  %2482 = vst.msk [vmem:[#allocation4 + $0x10] sm:$0xff] %vm2479_vm7, %v2477_v10  ;;  %2506 = vrot.lane.b32.xlu1 %v2505_v11, %s7056_s15  ;;  %v2528_v14 = vrot.slane %v3993_v12, %v5911_v2  ;;  %s7058_s15 = smov 8   ;;  %v4504_v7 = vpack.c.bf16 %v3182_v6, %v3181_v3 }
 0x490   : > { %v2623_v15 = vrot.slane %v3997_v13, %v5911_v2  ;;  %v3995_v16 = vld.sshfl [vmem:[#allocation4 + $0x4] sm:$0x1 pattern:$0x75316420]  ;;  %4497 = vmatprep.subr.bf16.mxu1 %v4496_v45  ;;  %v3165_v8 = vld [vmem:[%s7028_s5 + $0x30] sm:$0xff]  ;;  %v3304_v12 = vld [vmem:[%s7028_s5 + $0x488] sm:$0xff] }
 0x491   : > { %v3996_v17 = vld.sshfl [vmem:[#allocation4 + $0x5] sm:$0x1 pattern:$0x75316420]  ;;  %v2577_v18 = vrot.slane %v3995_v16, %v5911_v2  ;;  %v4506_v11 = vpack.c.bf16 %v3166_v9, %v3165_v8  ;;  %v3288_v16 = vld [vmem:[%s7028_s5 + $0x408] sm:$0xff]  ;;  %v3185_v36 = vld [vmem:[%s7028_s5 + $0xd0] sm:$0xff] }
 0x492   : > { %2529 = vrot.lane.b32.xlu0 %v2528_v14, %s7054_s22  ;;  %v2600_v20 = vrot.slane %v3996_v17, %v5911_v2  ;;  %v3998_v21 = vld.sshfl [vmem:[#allocation4 + $0x7] sm:$0x1 pattern:$0x75316420]  ;;  %4499 = vmatpush3.bf16.msra.mxu1 %v4498_v54  ;;  %v3170_v42 = vld [vmem:[%s7028_s5 + $0x58] sm:$0xff]  ;;  %v3309_v1 = vld [vmem:[%s7028_s5 + $0x4b0] sm:$0xff] }
 0x493   : > { %2624 = vrot.lane.b32.xlu1 %v2623_v15, %s7115_s29  ;;  %v2469_v32 = vpop.permute.xlu1 %2468  ;;  %v4004_v22 = vld.sshfl [vmem:[#allocation4 + $0xd] sm:$0x1 pattern:$0x75316420]  ;;  %v2649_v26 = vrot.slane %v3998_v21, %v5911_v2  ;;  %4501 = vmatprep.subr.bf16.mxu1 %v4500_v60  ;;  %v3303_v10 = vld [vmem:[%s7028_s5 + $0x480] sm:$0xff]  ;;  %v3310_v3 = vld [vmem:[%s7028_s5 + $0x4b8] sm:$0xff] }
 0x494   : > { %v2793_v29 = vrot.slane %v4004_v22, %v5911_v2  ;;  %v4000_v38 = vld.sshfl [vmem:[#allocation4 + $0x9] sm:$0x1 pattern:$0x75316420]  ;;  %v3287_v13 = vld [vmem:[%s7028_s5 + $0x400] sm:$0xff]  ;;  %v4620_v15 = vpack.c.bf16 %v3304_v12, %v3303_v10  ;;  %v3294_v6 = vld [vmem:[%s7028_s5 + $0x438] sm:$0xff] }
 0x495   : > { %v4005_v34 = vld.sshfl [vmem:[#allocation4 + $0xe] sm:$0x1 pattern:$0x75316420]  ;;  %v2695_v39 = vrot.slane %v4000_v38, %v5911_v2  ;;  %v3183_v17 = vld [vmem:[%s7028_s5 + $0xc0] sm:$0xff]  ;;  %v4622_v19 = vpack.c.bf16 %v3288_v16, %v3287_v13  ;;  %v3190_v8 = vld [vmem:[%s7028_s5 + $0xf8] sm:$0xff] }
 0x496   : > { %2578 = vrot.lane.b32.xlu0 %v2577_v18, %s7053_s16  ;;  %v2847_v30 = vld [vmem:[#allocation4 + $0x10] sm:$0x1]  ;;  %v2816_v43 = vrot.slane %v4005_v34, %v5911_v2  ;;  %v3999_v44 = vld.sshfl [vmem:[#allocation4 + $0x8] sm:$0x1 pattern:$0x75316420]  ;;  %4503 = vmatpush3.bf16.msra.mxu1 %v4502_v55  ;;  %v4632_v55 = vpack.c.bf16 %v3310_v3, %v3309_v1 }
 0x497   : > { %2601 = vrot.lane.b32.xlu1 %v2600_v20, %s7055_s25  ;;  %v2434_v23 = vpop.permute.xlu1 %2433  ;;  %2848 = vst.msk [vmem:[#allocation5 + $0x5] sm:$0x1] %vm5914_vm8, %v2847_v30  ;;  %s7057_s25 = smov 24   ;;  %v2672_v50 = vrot.slane %v3999_v44, %v5911_v2  ;;  %s7060_s16 = smov 96   ;;  %4505 = vmatprep.subr.bf16.mxu1 %v4504_v7  ;;  %v3184_v20 = vld [vmem:[%s7028_s5 + $0xc8] sm:$0xff]  ;;  %v3290_v34 = vld [vmem:[%s7028_s5 + $0x418] sm:$0xff] }
 0x498   : > { %v2442_v25 = vmax.f32 %v5900_v37, %v2434_v23  ;;  %v4009_v47 = vld.sshfl [vmem:[#allocation4 + $0x13] sm:$0x1 pattern:$0x75316420]  ;;  %4621 = vmatprep.subr.bf16.mxu0 %v4620_v15  ;;  %v4508_v22 = vpack.c.bf16 %v3184_v20, %v3183_v17  ;;  %v3167_v23 = vld [vmem:[%s7028_s5 + $0x40] sm:$0xff]  ;;  %v3172_v60 = vld [vmem:[%s7028_s5 + $0x68] sm:$0xff] }
 0x499   : > { %v2904_v52 = vrot.slane %v4009_v47, %v5911_v2  ;;  %v4003_v53 = vld.sshfl [vmem:[#allocation4 + $0xc] sm:$0x1 pattern:$0x75316420]  ;;  %4623 = vmatpush3.bf16.msra.mxu0 %v4622_v19  ;;  %v3189_v7 = vld [vmem:[%s7028_s5 + $0xf0] sm:$0xff]  ;;  %v3174_v13 = vld [vmem:[%s7028_s5 + $0x78] sm:$0xff] }
 0x49a   : > { %v2446_v33 = vmax.f32 %v2422_v24, %v2442_v25  ;;  %2650 = vrot.lane.b32.xlu0 %v2649_v26, %s7057_s25  ;;  %v4007_v58 = vld.sshfl [vmem:[#allocation4 + $0x11] sm:$0x1 pattern:$0x75316420]  ;;  %v2767_v62 = vrot.slane %v4003_v53, %v5911_v2  ;;  %4507 = vmatpush3.bf16.msra.mxu1 %v4506_v11  ;;  %v3168_v24 = vld [vmem:[%s7028_s5 + $0x48] sm:$0xff]  ;;  %v3187_v53 = vld [vmem:[%s7028_s5 + $0xe0] sm:$0xff]  ;;  %v4520_v11 = vpack.c.bf16 %v3190_v8, %v3189_v7 }
 0x49b   : > { %2794 = vrot.lane.b32.xlu1 %v2793_v29, %s7058_s15  ;;  %v4001_v61 = vld.sshfl [vmem:[#allocation4 + $0xa] sm:$0x1 pattern:$0x75316420]  ;;  %v2864_v4 = vrot.slane %v4007_v58, %v5911_v2  ;;  %4509 = vmatprep.subr.bf16.mxu1 %v4508_v22  ;;  %v4510_v27 = vpack.c.bf16 %v3168_v24, %v3167_v23  ;;  %v3306_v29 = vld [vmem:[%s7028_s5 + $0x498] sm:$0xff]  ;;  %v3171_v58 = vld [vmem:[%s7028_s5 + $0x60] sm:$0xff] }
 0x49c   : > { %v2474_v37 = vadd.f32 %v2469_v32, %v2446_v33  ;;  %v4008_v5 = vld.sshfl [vmem:[#allocation4 + $0x12] sm:$0x1 pattern:$0x75316420]  ;;  %v2721_v14 = vrot.slane %v4001_v61, %v5911_v2  ;;  %v4624_v31 = vpack.c.bf16 %v3306_v29, %v3305_v28  ;;  %v3308_v47 = vld [vmem:[%s7028_s5 + $0x4a8] sm:$0xff]  ;;  %v4518_v63 = vpack.c.bf16 %v3172_v60, %v3171_v58  ;;  %s7127_s25 = smov 104  }
 0x49d   : > { %v2884_v32 = vrot.slane %v4008_v5, %v5911_v2  ;;  %v4002_v18 = vld.sshfl [vmem:[#allocation4 + $0xb] sm:$0x1 pattern:$0x75316420]  ;;  %v3289_v33 = vld [vmem:[%s7028_s5 + $0x410] sm:$0xff]  ;;  %s7128_s15 = smov 72  }
 0x49e   : > { %v2478_v46 = vmax.f32 %v2474_v37, 0.0  ;;  %2696 = vrot.lane.b32.xlu0 %v2695_v39, %s7059_s0  ;;  %v4012_v21 = vld.sshfl [vmem:[#allocation4 + $0x16] sm:$0x1 pattern:$0x75316420]  ;;  %v2744_v30 = vrot.slane %v4002_v18, %v5911_v2  ;;  %4511 = vmatpush3.bf16.msra.mxu1 %v4510_v27  ;;  %v4626_v35 = vpack.c.bf16 %v3290_v34, %v3289_v33  ;;  %v3186_v37 = vld [vmem:[%s7028_s5 + $0xd8] sm:$0xff] }
 0x49f   : > { %2817 = vrot.lane.b32.xlu1 %v2816_v43, %s7122_s30  ;;  %v2966_v25 = vrot.slane %v4012_v21, %v5911_v2  ;;  %v4013_v26 = vld.sshfl [vmem:[#allocation4 + $0x17] sm:$0x1 pattern:$0x75316420]  ;;  %4625 = vmatprep.subr.bf16.mxu0 %v4624_v31  ;;  %v4512_v41 = vpack.c.bf16 %v3186_v37, %v3185_v36  ;;  %v3307_v43 = vld [vmem:[%s7028_s5 + $0x4a0] sm:$0xff]  ;;  %v3312_v17 = vld [vmem:[%s7028_s5 + $0x4c8] sm:$0xff] }
 0x4a0   : > { %2483 = vst.msk [vmem:[#allocation4 + $0x18] sm:$0xff] %vm2479_vm7, %v2478_v46  ;;  %v4010_v38 = vld.sshfl [vmem:[#allocation4 + $0x14] sm:$0x1 pattern:$0x75316420]  ;;  %v2988_v40 = vrot.slane %v4013_v26, %v5911_v2  ;;  %4627 = vmatpush3.bf16.msra.mxu0 %v4626_v35  ;;  %v4628_v51 = vpack.c.bf16 %v3308_v47, %v3307_v43  ;;  %v3296_v18 = vld [vmem:[%s7028_s5 + $0x448] sm:$0xff] }
 0x4a1   : > { %v3169_v39 = vld [vmem:[%s7028_s5 + $0x50] sm:$0xff]  ;;  %v2926_v44 = vrot.slane %v4010_v38, %v5911_v2  ;;  %4513 = vmatprep.subr.bf16.mxu1 %v4512_v41  ;;  %v4006_v9 = vld.sshfl [vmem:[#allocation4 + $0xf] sm:$0x1 pattern:$0x75316420]  ;;  %v3314_v27 = vld [vmem:[%s7028_s5 + $0x4d8] sm:$0xff] }
 0x4a2   : > { %2673 = vrot.lane.b32.xlu0 %v2672_v50, %s7118_s24  ;;  %v4514_v46 = vpack.c.bf16 %v3170_v42, %v3169_v39  ;;  %v4011_v50 = vld.sshfl [vmem:[#allocation4 + $0x15] sm:$0x1 pattern:$0x75316420]  ;;  %4629 = vmatprep.subr.bf16.mxu0 %v4628_v51  ;;  %v2839_v19 = vrot.slane %v4006_v9, %v5911_v2  ;;  %v3208_v23 = vld [vmem:[%s7028_s5 + $0x188] sm:$0xff]  ;;  %v3298_v29 = vld [vmem:[%s7028_s5 + $0x458] sm:$0xff] }
 0x4a3   : > { %2905 = vrot.lane.b32.xlu1 %v2904_v52, %s7121_s13  ;;  %v3292_v52 = vld [vmem:[%s7028_s5 + $0x428] sm:$0xff]  ;;  %v2946_v5 = vrot.slane %v4011_v50, %v5911_v2  ;;  %v3173_v12 = vld [vmem:[%s7028_s5 + $0x70] sm:$0xff]  ;;  %s7129_s0 = smov 96   ;;  %v3315_v37 = vld [vmem:[%s7028_s5 + $0x4e0] sm:$0xff]  ;;  %v7147_v7 = vmov 0  ;;  %v7149_v8 = vmov 0 }
 0x4a4   : > { %4515 = vmatpush3.bf16.msra.mxu1 %v4514_v46  ;;  %v4630_v56 = vpack.c.bf16 %v3292_v52, %v3291_v48  ;;  %v4522_v16 = vpack.c.bf16 %v3174_v13, %v3173_v12  ;;  %v3313_v26 = vld [vmem:[%s7028_s5 + $0x4d0] sm:$0xff]  ;;  %v3316_v39 = vld [vmem:[%s7028_s5 + $0x4e8] sm:$0xff]  ;;  %v3318_v50 = vld [vmem:[%s7028_s5 + $0x4f8] sm:$0xff]  ;;  %v7148_v7 = vsel %vm6243_vm5, 4294967295, %v7147_v7  ;;  %v7150_v8 = vsel %vm6248_vm6, 4294967295, %v7149_v8 }
 0x4a5   : > { %v3297_v28 = vld [vmem:[%s7028_s5 + $0x450] sm:$0xff]  ;;  %v4640_v33 = vpack.c.bf16 %v3314_v27, %v3313_v26  ;;  %v4644_v41 = vpack.c.bf16 %v3316_v39, %v3315_v37  ;;  %v3300_v42 = vld [vmem:[%s7028_s5 + $0x468] sm:$0xff]  ;;  %vm6259_vm7 = vcmp.ge.s32.totalorder %v2485_v49, 112  ;;  %vm6264_vm8 = vcmp.lt.s32.totalorder %v2485_v49, 152 }
 0x4a6   : > { %2768 = vrot.lane.b32.xlu0 %v2767_v62, %s7060_s16  ;;  %s7124_s16 = smov 80   ;;  %v4516_v62 = vpack.c.bf16 %v3188_v57, %v3187_v53  ;;  %4631 = vmatpush3.bf16.msra.mxu0 %v4630_v56  ;;  %v4642_v36 = vpack.c.bf16 %v3298_v29, %v3297_v28  ;;  %v3317_v48 = vld [vmem:[%s7028_s5 + $0x4f0] sm:$0xff]  ;;  %v3302_v53 = vld [vmem:[%s7028_s5 + $0x478] sm:$0xff]  ;;  %v7153_v12 = vmov 0  ;;  %v7168_v29 = vmov 0  ;;  %v3204_v58 = vld [vmem:[%s7028_s5 + $0x168] sm:$0xff] }
 0x4a7   : > { %2865 = vrot.lane.b32.xlu1 %v2864_v4, %s7123_s3  ;;  %v4015_v45 = vld.sshfl [vmem:[#allocation4 + $0x19] sm:$0x1 pattern:$0x75316420]  ;;  %v3293_v4 = vld [vmem:[%s7028_s5 + $0x430] sm:$0xff]  ;;  %4633 = vmatprep.subr.bf16.mxu0 %v4632_v55  ;;  %v4648_v52 = vpack.c.bf16 %v3318_v50, %v3317_v48  ;;  %v7145_v55 = vmov 0 }
 0x4a8   : > { %v4014_v54 = vld.sshfl [vmem:[#allocation4 + $0x18] sm:$0x1 pattern:$0x75316420]  ;;  %v3028_v61 = vrot.slane %v4015_v45, %v5911_v2  ;;  %4517 = vmatprep.subr.bf16.mxu1 %v4516_v62  ;;  %v4634_v10 = vpack.c.bf16 %v3294_v6, %v3293_v4  ;;  %v3301_v51 = vld [vmem:[%s7028_s5 + $0x470] sm:$0xff]  ;;  %v7146_v55 = vsel %vm6238_vm4, 4294967295, %v7145_v55 }
 0x4a9   : > { %4519 = vmatpush3.bf16.msra.mxu1 %v4518_v63  ;;  %v3008_v15 = vrot.slane %v4014_v54, %v5911_v2  ;;  %v4018_v20 = vld.sshfl [vmem:[#allocation4 + $0x1c] sm:$0x1 pattern:$0x75316420]  ;;  %v4650_v57 = vpack.c.bf16 %v3302_v53, %v3301_v51  ;;  %v7154_v12 = vsel %vm6264_vm8, 4294967295, %v7153_v12 }
 0x4aa   : > { %2722 = vrot.lane.b32.xlu0 %v2721_v14, %s4876_s4  ;;  %v3311_v14 = vld [vmem:[%s7028_s5 + $0x4c0] sm:$0xff]  ;;  %4521 = vmatprep.subr.bf16.mxu1 %v4520_v11  ;;  %v4016_v24 = vld.sshfl [vmem:[#allocation4 + $0x1a] sm:$0x1 pattern:$0x75316420]  ;;  %v3090_v38 = vrot.slane %v4018_v20, %v5911_v2  ;;  %v7151_v11 = vmov 0 }
 0x4ab   : > { %2885 = vrot.lane.b32.xlu1 %v2884_v32, %s7124_s16  ;;  %s7126_s16 = smov 32   ;;  %v3295_v32 = vld [vmem:[%s7028_s5 + $0x440] sm:$0xff]  ;;  %4635 = vmatpush3.bf16.msra.mxu0 %v4634_v10  ;;  %v4636_v21 = vpack.c.bf16 %v3312_v17, %v3311_v14  ;;  %v4019_v31 = vld.sshfl [vmem:[#allocation4 + $0x1d] sm:$0x1 pattern:$0x75316420]  ;;  %v3050_v34 = vrot.slane %v4016_v24, %v5911_v2 }
 0x4ac   : > { %v4638_v22 = vpack.c.bf16 %v3296_v18, %v3295_v32  ;;  %v4017_v35 = vld.sshfl [vmem:[#allocation4 + $0x1b] sm:$0x1 pattern:$0x75316420]  ;;  %v3112_v45 = vrot.slane %v4019_v31, %v5911_v2  ;;  %v7152_v11 = vsel %vm6259_vm7, 4294967295, %v7151_v11  ;;  %v7155_v14 = vmov 0 }
 0x4ad   : > { %4523 = vmatpush3.bf16.msra.mxu1 %v4522_v16  ;;  %4637 = vmatprep.subr.bf16.mxu0 %v4636_v21  ;;  %v3070_v43 = vrot.slane %v4017_v35, %v5911_v2  ;;  %v4020_v46 = vld.sshfl [vmem:[#allocation4 + $0x1e] sm:$0x1 pattern:$0x75316420]  ;;  %v7160_v20 = vmov 0  ;;  %v7162_v21 = vmov 0 }
 0x4ae   : > { %2745 = vrot.lane.b32.xlu0 %v2744_v30, %s7111_s14  ;;  %v3207_v30 = vld [vmem:[%s7028_s5 + $0x180] sm:$0xff]  ;;  %v3132_v54 = vrot.slane %v4020_v46, %v5911_v2  ;;  %v7189_v46 = vmov 0 }
 0x4af   : > { %2967 = vrot.lane.b32.xlu1 %v2966_v25, %s7115_s29  ;;  %v4524_v25 = vpack.c.bf16 %v3208_v23, %v3207_v30  ;;  %4639 = vmatpush3.bf16.msra.mxu0 %v4638_v22  ;;  %v7164_v30 = vmov 0  ;;  %v7166_v23 = vmov 0  ;;  %v3215_v35 = vld [vmem:[%s7028_s5 + $0x1c0] sm:$0xff] }
 0x4b0   : > { %4641 = vmatprep.subr.bf16.mxu0 %v4640_v33 }
 0x4b1   : > { %4525 = vmatprep.subr.bf16.mxu1 %v4524_v25 }
 0x4b2   : > { %2989 = vrot.lane.b32.xlu0 %v2988_v40, %s7125_s2  ;;  %s4877_s2 = smov 88   ;;  %v3299_v40 = vld [vmem:[%s7028_s5 + $0x460] sm:$0xff] }
 0x4b3   : > { %2927 = vrot.lane.b32.xlu1 %v2926_v44, %s7126_s16  ;;  %v4021_v44 = vld.sshfl [vmem:[#allocation4 + $0x1f] sm:$0x1 pattern:$0x75316420]  ;;  %4643 = vmatpush3.bf16.msra.mxu0 %v4642_v36  ;;  %v4646_v47 = vpack.c.bf16 %v3300_v42, %v3299_v40  ;;  %v3216_v36 = vld [vmem:[%s7028_s5 + $0x1c8] sm:$0xff] }
 0x4b4   : > { %4645 = vmatprep.subr.bf16.mxu0 %v4644_v41  ;;  %v3152_v56 = vrot.slane %v4021_v44, %v5911_v2  ;;  %v7135_v2 = vmov 0  ;;  %v7183_v44 = vmov 0 }
 0x4b5   : > { %v7136_v2 = vsel %vm6200_vm12, 4294967295, %v7135_v2  ;;  %vm6287_vm12 = vcmp.lt.s32.totalorder %v2485_v49, 64 }
 0x4b6   : > { %3029 = vrot.lane.b32.xlu0 %v3028_v61, %s7127_s25  ;;  %v7137_v61 = vmov 0 }
 0x4b7   : > { %2947 = vrot.lane.b32.xlu1 %v2946_v5, %s7128_s15  ;;  %4647 = vmatpush3.bf16.msra.mxu0 %v4646_v47  ;;  %v7138_v61 = vsel %vm6205_vm13, 4294967295, %v7137_v61  ;;  %v7143_v5 = vmov 0  ;;  %vm6282_vm13 = vcmp.ge.s32.totalorder %v2485_v49, 24  ;;  %v7191_v47 = vmov 0  ;;  %s4022_s15 = sshll.u32 %s4962_s21, 4  ;;  %s4880_s21 = smov [#allocation6]  }
 0x4b8   : > { %4649 = vmatprep.subr.bf16.mxu0 %v4648_v52  ;;  %v7144_v5 = vsel %vm6233_vm3, 4294967295, %v7143_v5  ;;  %v7156_v14 = vsel %vm6282_vm13, 4294967295, %v7155_v14 }
 0x4ba   : > { %3009 = vrot.lane.b32.xlu0 %v3008_v15, %s7118_s24  ;;  %v7157_v15 = vmov 0 }
 0x4bb   : > { %2840 = vrot.lane.b32.xlu1 %v2839_v19, %s4877_s2  ;;  %4651 = vmatpush3.bf16.msra.mxu0 %v4650_v57  ;;  %v7158_v15 = vsel %vm6287_vm12, 4294967295, %v7157_v15  ;;  %v3203_v57 = vld [vmem:[%s7028_s5 + $0x160] sm:$0xff] }
 0x4be   : > { %3091 = vrot.lane.b32.xlu0 %v3090_v38, %s7129_s0  ;;  %v7170_v38 = vmov 0  ;;  %s6981_s0 = scalar_lea.hbm %s7034_s11, %s4022_s15 }
 0x4bf   : > { %3051 = vrot.lane.b32.xlu1 %v3050_v34, %s4876_s4 }
 0x4c2   : > { %3071 = vrot.lane.b32.xlu0 %v3070_v43, %s7111_s14  ;;  %v7181_v43 = vmov 0 }
 0x4c3   : > { %3113 = vrot.lane.b32.xlu1 %v3112_v45, %s7130_s12  ;;  %s4787_s12 = sshll.u32 %s4880_s21, 4  ;;  %s4788_s12 = int_to_ptr.vmem [resolvable:$false] %s4787_s12 }
 0x4c4   : > { %s4789_s1 = scalar_lea.vmem %s4788_s12, 32 }
 0x4c6   : > { %3133 = vrot.lane.b32.xlu0 %v3132_v54, %s7122_s30  ;;  %s377_s30 = sand.u32 1, %s4837_s18  }
 0x4c7   : > { %3153 = vrot.lane.b32.xlu1 %v3152_v56, %s4877_s2  ;;  %s378_s29 = scalar_lea.vmem [#allocation6], %s377_s30  ;;  %s3900_s13 = scalar_lea.sflag [#allocation7], %s377_s30 }
 0x4c8   : > { %s3912_s16 = sshll.u32 %s378_s29, 4  ;;  %s6983_s16 = int_to_ptr.vmem [resolvable:$true] %s3912_s16 }
 0x4c9   : > { %s4783_s22 = scalar_lea.vmem %s6983_s16, 16  ;;  %p4790_p0 = scmp.lt.s32.totalorder %s6983_s16, %s4788_s12 }
 0x4ca   : > { %p4784_p11 = scmp.ne.s32.totalorder %s6983_s16, %s4783_s22  ;;  %p4791_p1 = scmp.lt.s32.totalorder %s4789_s1, %s4783_s22 }
 0x4cc   : > { %p4785_p12 = pnand %p4784_p11, %p4979_p5  ;;  %p4792_p2 = por %p4791_p1, %p4790_p0 }
 0x4ce   : > { %p4786_p13 = pneg %p4785_p12 }
 0x4d0   : > { %p4793_p3 = pnand %p4792_p2, %p4786_p13 }
 0x500   : > { %v2553_v62 = vpop.permute.xlu0 %2552 }
 0x501   : > { %v2554_v3 = vrot.slane %v2553_v62, 7  ;;  %v2507_v4 = vpop.permute.xlu1 %2506 }
 0x502   : > { %2512 = vst.msk [vmem:[#allocation5] sm:$0x1] %vm7063_vm11, %v2507_v4  ;;  %vm7068_vm11 = vmand %vm6243_vm5, %vm6248_vm6  ;;  %vm7186_vm6 = vnez %v7136_v2  ;;  %vm7187_vm5 = vnez %v7138_v61 }
 0x503   : > { %v2556_v9 = vsel %vm7061_vm0, %v2554_v3, %v2553_v62  ;;  %vm7070_vm0 = vmand %vm6233_vm3, %vm6238_vm4  ;;  %vm6429_vm3 = vcmp.lt.s32.totalorder %v2485_v49, 88 }
 0x504   : > { %v2530_v6 = vpop.permute.xlu0 %2529  ;;  %vm7159_vm4 = vmand %vm6259_vm7, %vm6264_vm8  ;;  %vm6360_vm8 = vcmp.ge.s32.totalorder %v2485_v49, 16  ;;  %vm7093_vm7 = vcmask 785408   ;;  %v7192_v47 = vsel %vm6429_vm3, 4294967295, %v7191_v47 }
 0x505   : > { %2535 = vst.msk [vmem:[#allocation5] sm:$0x1] %vm7062_vm1, %v2530_v6  ;;  %v2625_v10 = vpop.permute.xlu1 %2624  ;;  %vm7069_vm1 = vcmask 916480   ;;  %v7169_v29 = vsel %vm6360_vm8, 4294967295, %v7168_v29  ;;  %v3191_v6 = vld [vmem:[%s7028_s5 + $0x100] sm:$0xff] }
 0x506   : > { %v2626_v13 = vrot.slane %v2625_v10, 7  ;;  %2561 = vst.msk [vmem:[#allocation5] sm:$0x3] %vm7066_vm2, %v2556_v9  ;;  %vm7071_vm2 = vmand %vm6282_vm13, %vm6287_vm12  ;;  %v3336_v9 = vsub.s32 3, %v5908_v59 }
 0x508   : > { %v2579_v16 = vpop.permute.xlu0 %2578  ;;  %v2628_v32 = vsel %vm7069_vm1, %v2626_v13, %v2625_v10  ;;  %vm6326_vm1 = vcmp.lt.s32.totalorder %v2485_v49, 104  ;;  %v3209_v10 = vld [vmem:[%s7028_s5 + $0x190] sm:$0xff] }
 0x509   : > { %2584 = vst.msk [vmem:[#allocation5 + $0x1] sm:$0x1] %vm7070_vm0, %v2579_v16  ;;  %v2602_v17 = vpop.permute.xlu1 %2601  ;;  %v7163_v21 = vsel %vm6326_vm1, 4294967295, %v7162_v21  ;;  %vm6336_vm0 = vcmp.lt.s32.totalorder %v2485_v49, 144 }
 0x50a   : > { %2607 = vst.msk [vmem:[#allocation5 + $0x1] sm:$0x1] %vm7068_vm11, %v2602_v17  ;;  %vm6321_vm11 = vcmp.ge.s32.totalorder %v2485_v49, 64  ;;  %v7167_v23 = vsel %vm6336_vm0, 4294967295, %v7166_v23 }
 0x50b   : > { %2633 = vst.msk [vmem:[#allocation5 + $0x1] sm:$0x3] %vm7159_vm4, %v2628_v32  ;;  %v7161_v20 = vsel %vm6321_vm11, 4294967295, %v7160_v20  ;;  %vm6331_vm4 = vcmp.ge.s32.totalorder %v2485_v49, 104  ;;  %vm7076_vm12 = vmand %vm6321_vm11, %vm6326_vm1  ;;  %vm6389_vm1 = vcmp.ge.s32.totalorder %v2485_v49, 96  ;;  %vm7185_vm11 = vcmask 982016  }
 0x50c   : > { %v2651_v18 = vpop.permute.xlu0 %2650  ;;  %v7165_v30 = vsel %vm6331_vm4, 4294967295, %v7164_v30  ;;  %vm7077_vm13 = vmand %vm6331_vm4, %vm6336_vm0  ;;  %vm6379_vm0 = vcmp.ge.s32.totalorder %v2485_v49, 56  ;;  %vm6384_vm4 = vcmp.lt.s32.totalorder %v2485_v49, 96 }
 0x50d   : > { %2656 = vst.msk [vmem:[#allocation5 + $0x2] sm:$0x1] %vm7071_vm2, %v2651_v18  ;;  %v2795_v19 = vpop.permute.xlu1 %2794  ;;  %vm7075_vm2 = vcmask 850944   ;;  %v3193_v18 = vld [vmem:[%s7028_s5 + $0x110] sm:$0xff] }
 0x510   : > { %v2697_v22 = vpop.permute.xlu0 %2696 }
 0x511   : > { %v2698_v24 = vrot.slane %v2697_v22, 7  ;;  %v2818_v25 = vpop.permute.xlu1 %2817 }
 0x513   : > { %v2700_v27 = vsel %vm7075_vm2, %v2698_v24, %v2697_v22  ;;  %vm6365_vm2 = vcmp.lt.s32.totalorder %v2485_v49, 56  ;;  %v3211_v22 = vld [vmem:[%s7028_s5 + $0x1a0] sm:$0xff] }
 0x514   : > { %v2674_v26 = vpop.permute.xlu0 %2673  ;;  %v7171_v38 = vsel %vm6365_vm2, 4294967295, %v7170_v38 }
 0x515   : > { %2679 = vst.msk [vmem:[#allocation5 + $0x2] sm:$0x1] %vm7076_vm12, %v2674_v26  ;;  %v2906_v28 = vpop.permute.xlu1 %2905  ;;  %vm7172_vm12 = vmand %vm6186_vm9, %vm6191_vm10  ;;  %vm6394_vm9 = vcmp.lt.s32.totalorder %v2485_v49, 136  ;;  %vm6404_vm10 = vcmp.ge.s32.totalorder %v2485_v49, 8  ;;  %v3195_v26 = vld [vmem:[%s7028_s5 + $0x120] sm:$0xff] }
 0x516   : > { %2705 = vst.msk [vmem:[#allocation5 + $0x2] sm:$0x3] %vm7077_vm13, %v2700_v27  ;;  %v2907_v34 = vrot.slane %v2906_v28, 7  ;;  %vm7086_vm13 = vmand %vm6360_vm8, %vm6365_vm2  ;;  %v7182_v43 = vsel %vm6404_vm10, 4294967295, %v7181_v43  ;;  %vm6424_vm8 = vcmp.ge.s32.totalorder %v2485_v49, 48  ;;  %v3196_v27 = vld [vmem:[%s7028_s5 + $0x128] sm:$0xff] }
 0x517   : > { %vm7188_vm2 = vmand %vm7186_vm6, %vm7187_vm5  ;;  %v7190_v46 = vsel %vm6424_vm8, 4294967295, %v7189_v46  ;;  %vm7195_vm6 = vnez %v7146_v55  ;;  %v3324_v55 = vsub.s32 0, %v5908_v59 }
 0x518   : > { %v2769_v31 = vpop.permute.xlu0 %2768  ;;  %v2908_v45 = vsel %vm7185_vm11, %v2907_v34, %v2906_v28  ;;  %vm7193_vm11 = vmand %vm6210_vm14, %vm6215_vm15  ;;  %vm7194_vm15 = vnez %v7144_v5  ;;  %v3328_v5 = vsub.s32 1, %v5908_v59  ;;  %v3213_v28 = vld [vmem:[%s7028_s5 + $0x1b0] sm:$0xff]  ;;  %v3198_v34 = vld [vmem:[%s7028_s5 + $0x138] sm:$0xff] }
 0x519   : > { %v2866_v33 = vpop.permute.xlu1 %2865  ;;  %v2770_v41 = vrot.slane %v2769_v31, 7  ;;  %vm7091_vm14 = vmand %vm6424_vm8, %vm6429_vm3 }
 0x51a   : > { %2868 = vst.msk [vmem:[#allocation5 + $0x5] sm:$0x1] %vm7172_vm12, %v2866_v33  ;;  %vm6409_vm12 = vcmp.lt.s32.totalorder %v2485_v49, 48  ;;  %v3197_v33 = vld [vmem:[%s7028_s5 + $0x130] sm:$0xff] }
 0x51b   : > { %v7184_v44 = vsel %vm6409_vm12, 4294967295, %v7183_v44  ;;  %vm7090_vm5 = vmand %vm6404_vm10, %vm6409_vm12  ;;  %v2772_v50 = vsel %vm7093_vm7, %v2770_v41, %v2769_v31  ;;  %vm7206_vm7 = vnez %v7154_v12  ;;  %vm7208_vm12 = vnez %v7156_v14 }
 0x51c   : > { %v2723_v37 = vpop.permute.xlu0 %2722  ;;  %v4538_v41 = vpack.c.bf16 %v3198_v34, %v3197_v33  ;;  %v3231_v33 = vld [vmem:[%s7028_s5 + $0x240] sm:$0xff]  ;;  %v3232_v34 = vld [vmem:[%s7028_s5 + $0x248] sm:$0xff] }
 0x51d   : > { %2728 = vst.msk [vmem:[#allocation5 + $0x3] sm:$0x1] %vm7086_vm13, %v2723_v37  ;;  %v2886_v42 = vpop.permute.xlu1 %2885  ;;  %vm7092_vm13 = vmand %vm6379_vm0, %vm6384_vm4 }
 0x51e   : > { %2888 = vst.msk [vmem:[#allocation5 + $0x5] sm:$0x1] %vm7188_vm2, %v2886_v42  ;;  %vm7089_vm2 = vmand %vm6389_vm1, %vm6394_vm9  ;;  %v4540_v42 = vpack.c.bf16 %v3216_v36, %v3215_v35  ;;  %v3249_v35 = vld [vmem:[%s7028_s5 + $0x2d0] sm:$0xff]  ;;  %v3250_v36 = vld [vmem:[%s7028_s5 + $0x2d8] sm:$0xff] }
 0x51f   : > { %2910 = vst.msk [vmem:[#allocation5 + $0x5] sm:$0x3] %vm7193_vm11, %v2908_v45  ;;  %vm7196_vm11 = vmand %vm7194_vm15, %vm7195_vm6  ;;  %vm7203_vm15 = vnez %v7150_v8  ;;  %v3217_v45 = vld [vmem:[%s7028_s5 + $0x1d0] sm:$0xff] }
 0x520   : > { %v2746_v48 = vpop.permute.xlu0 %2745 }
 0x521   : > { %2751 = vst.msk [vmem:[#allocation5 + $0x3] sm:$0x1] %vm7092_vm13, %v2746_v48  ;;  %v2968_v51 = vpop.permute.xlu1 %2967  ;;  %vm7202_vm13 = vnez %v7148_v7  ;;  %v3192_v7 = vld [vmem:[%s7028_s5 + $0x108] sm:$0xff] }
 0x522   : > { %2777 = vst.msk [vmem:[#allocation5 + $0x3] sm:$0x3] %vm7089_vm2, %v2772_v50  ;;  %v2969_v54 = vrot.slane %v2968_v51, 7  ;;  %vm6477_vm2 = vcmp.ge.s32.totalorder %v2485_v49, 88  ;;  %vm7204_vm6 = vmand %vm7202_vm13, %vm7203_vm15  ;;  %vm7211_vm13 = vcmask 850944   ;;  %vm7212_vm15 = vnez %v7161_v20  ;;  %v3201_v50 = vld [vmem:[%s7028_s5 + $0x150] sm:$0xff] }
 0x523   : > { %2800 = vst.msk [vmem:[#allocation5 + $0x4] sm:$0x1] %vm7090_vm5, %v2795_v19  ;;  %vm6482_vm5 = vcmp.lt.s32.totalorder %v2485_v49, 128  ;;  %v4526_v17 = vpack.c.bf16 %v3192_v7, %v3191_v6  ;;  %v3194_v19 = vld [vmem:[%s7028_s5 + $0x118] sm:$0xff]  ;;  %v3223_v6 = vld [vmem:[%s7028_s5 + $0x200] sm:$0xff]  ;;  %v3224_v7 = vld [vmem:[%s7028_s5 + $0x208] sm:$0xff] }
 0x524   : > { %v2990_v52 = vpop.permute.xlu0 %2989  ;;  %2823 = vst.msk [vmem:[#allocation5 + $0x4] sm:$0x1] %vm7091_vm14, %v2818_v25  ;;  %vm7201_vm14 = vcmask 916480   ;;  %v4530_v24 = vpack.c.bf16 %v3194_v19, %v3193_v18  ;;  %v3244_v18 = vld [vmem:[%s7028_s5 + $0x2a8] sm:$0xff] }
 0x525   : > { %v2928_v53 = vpop.permute.xlu1 %2927  ;;  %v2970_v61 = vsel %vm7201_vm14, %v2969_v54, %v2968_v51  ;;  %vm7209_vm14 = vnez %v7158_v15  ;;  %v3202_v51 = vld [vmem:[%s7028_s5 + $0x158] sm:$0xff] }
 0x526   : > { %2930 = vst.msk [vmem:[#allocation5 + $0x6] sm:$0x1] %vm7196_vm11, %v2928_v53  ;;  %vm7205_vm11 = vnez %v7152_v11  ;;  %vm7210_vm10 = vmand %vm7208_vm12, %vm7209_vm14  ;;  %vm7219_vm12 = vnez %v7169_v29  ;;  %vm7220_vm14 = vnez %v7171_v38  ;;  %v3210_v11 = vld [vmem:[%s7028_s5 + $0x198] sm:$0xff]  ;;  %v4534_v38 = vpack.c.bf16 %v3196_v27, %v3195_v26  ;;  %v3220_v53 = vld [vmem:[%s7028_s5 + $0x1e8] sm:$0xff] }
 0x527   : > { %vm7207_vm3 = vmand %vm7205_vm11, %vm7206_vm7  ;;  %vm7216_vm11 = vnez %v7167_v23  ;;  %v4528_v32 = vpack.c.bf16 %v3210_v11, %v3209_v10  ;;  %v3214_v29 = vld [vmem:[%s7028_s5 + $0x1b8] sm:$0xff]  ;;  %v4546_v54 = vpack.c.bf16 %v3202_v51, %v3201_v50  ;;  %v4558_v11 = vpack.c.bf16 %v3224_v7, %v3223_v6  ;;  %v3229_v26 = vld [vmem:[%s7028_s5 + $0x230] sm:$0xff] }
 0x528   : > { %v3030_v56 = vpop.permute.xlu0 %3029  ;;  %v4536_v31 = vpack.c.bf16 %v3214_v29, %v3213_v28  ;;  %v3242_v10 = vld [vmem:[%s7028_s5 + $0x298] sm:$0xff]  ;;  %v3247_v28 = vld [vmem:[%s7028_s5 + $0x2c0] sm:$0xff]  ;;  %v3248_v29 = vld [vmem:[%s7028_s5 + $0x2c8] sm:$0xff] }
 0x529   : > { %v3031_v60 = vrot.slane %v3030_v56, 7  ;;  %v2948_v2 = vpop.permute.xlu1 %2947  ;;  %v3230_v27 = vld [vmem:[%s7028_s5 + $0x238] sm:$0xff] }
 0x52a   : > { %2950 = vst.msk [vmem:[#allocation5 + $0x6] sm:$0x1] %vm7204_vm6, %v2948_v2  ;;  %vm7213_vm6 = vnez %v7163_v21  ;;  %v3222_v2 = vld [vmem:[%s7028_s5 + $0x1f8] sm:$0xff] }
 0x52b   : > { %2972 = vst.msk [vmem:[#allocation5 + $0x6] sm:$0x3] %vm7207_vm3, %v2970_v61  ;;  %v3032_v62 = vsel %vm7211_vm13, %v3031_v60, %v3030_v56  ;;  %vm7214_vm7 = vmand %vm7212_vm15, %vm7213_vm6  ;;  %vm7215_vm3 = vnez %v7165_v30  ;;  %v3212_v30 = vld [vmem:[%s7028_s5 + $0x1a8] sm:$0xff]  ;;  %v3221_v60 = vld [vmem:[%s7028_s5 + $0x1f0] sm:$0xff]  ;;  %v4550_v61 = vpack.c.bf16 %v3204_v58, %v3203_v57 }
 0x52c   : > { %2992 = vst.msk [vmem:[#allocation5 + $0x7] sm:$0x1] %vm7210_vm10, %v2990_v52  ;;  %v3010_v49 = vpop.permute.xlu0 %3009  ;;  %vm7217_vm8 = vmand %vm7215_vm3, %vm7216_vm11  ;;  %vm7226_vm3 = vnez %v7184_v44  ;;  %v4532_v25 = vpack.c.bf16 %v3212_v30, %v3211_v22  ;;  %v3200_v44 = vld [vmem:[%s7028_s5 + $0x148] sm:$0xff]  ;;  %v3219_v52 = vld [vmem:[%s7028_s5 + $0x1e0] sm:$0xff] }
 0x52d   : > { %3012 = vst.msk [vmem:[#allocation5 + $0x7] sm:$0x1] %vm7214_vm7, %v3010_v49  ;;  %v2841_v63 = vpop.permute.xlu1 %2840  ;;  %vm7218_vm10 = vmand %vm6477_vm2, %vm6482_vm5  ;;  %vm7225_vm7 = vnez %v7182_v43  ;;  %v3199_v43 = vld [vmem:[%s7028_s5 + $0x140] sm:$0xff]  ;;  %v4548_v56 = vpack.c.bf16 %v3220_v53, %v3219_v52  ;;  %v4552_v49 = vpack.c.bf16 %v3222_v2, %v3221_v60  ;;  %v3228_v22 = vld [vmem:[%s7028_s5 + $0x228] sm:$0xff]  ;;  %v3340_v60 = vsub.s32 4, %v5908_v59 }
 0x52e   : > { %3034 = vst.msk [vmem:[#allocation5 + $0x7] sm:$0x3] %vm7217_vm8, %v3032_v62  ;;  %vm7221_vm13 = vmand %vm7219_vm12, %vm7220_vm14  ;;  %vm7222_vm8 = vcmask 785408   ;;  %v3205_v62 = vld [vmem:[%s7028_s5 + $0x170] sm:$0xff]  ;;  %v3254_v50 = vld [vmem:[%s7028_s5 + $0x2f8] sm:$0xff]  ;;  %vm4879_vm2 = vmmov 0  }
 0x52f   : > { %2846 = vst.msk [vmem:[#allocation5 + $0x4] sm:$0x1] %vm7218_vm10, %v2841_v63  ;;  %vm7223_vm15 = vmand %vm6379_vm0, %vm6384_vm4  ;;  %vm7229_vm4 = vnez %v7192_v47  ;;  %v4542_v47 = vpack.c.bf16 %v3200_v44, %v3199_v43  ;;  %v3206_v63 = vld [vmem:[%s7028_s5 + $0x178] sm:$0xff]  ;;  %v3245_v30 = vld [vmem:[%s7028_s5 + $0x2b0] sm:$0xff] }
 0x530   : > { %v3092_v1 = vpop.permute.xlu0 %3091  ;;  %vm7224_vm6 = vmand %vm6389_vm1, %vm6394_vm9  ;;  %vm7228_vm1 = vnez %v7190_v46  ;;  %v3218_v46 = vld [vmem:[%s7028_s5 + $0x1d8] sm:$0xff]  ;;  %v3252_v43 = vld [vmem:[%s7028_s5 + $0x2e8] sm:$0xff] }
 0x531   : > { %v3093_v3 = vrot.slane %v3092_v1, 7  ;;  %v3052_v4 = vpop.permute.xlu1 %3051  ;;  %vm7227_vm0 = vmand %vm7225_vm7, %vm7226_vm3  ;;  %v4544_v48 = vpack.c.bf16 %v3218_v46, %v3217_v45  ;;  %v3235_v46 = vld [vmem:[%s7028_s5 + $0x260] sm:$0xff]  ;;  %v3237_v53 = vld [vmem:[%s7028_s5 + $0x270] sm:$0xff] }
 0x532   : > { %3054 = vst.msk [vmem:[#allocation5 + $0x8] sm:$0x1] %vm7221_vm13, %v3052_v4  ;;  %vm7230_vm9 = vmand %vm7228_vm1, %vm7229_vm4  ;;  %v4554_v4 = vpack.c.bf16 %v3206_v63, %v3205_v62  ;;  %v3272_v57 = vld [vmem:[%s7028_s5 + $0x388] sm:$0xff]  ;;  %v3352_v62 = vsub.s32 7, %v5908_v59  ;;  %v3273_v63 = vld [vmem:[%s7028_s5 + $0x390] sm:$0xff] }
 0x533   : > { %v3094_v12 = vsel %vm7222_vm8, %v3093_v3, %v3092_v1  ;;  %vm7231_vm11 = vmmov %vm7218_vm10  ;;  %v3239_v1 = vld [vmem:[%s7028_s5 + $0x280] sm:$0xff]  ;;  %v3240_v3 = vld [vmem:[%s7028_s5 + $0x288] sm:$0xff] }
 0x534   : > { %v3072_v8 = vpop.permute.xlu0 %3071  ;;  %v3258_v6 = vld [vmem:[%s7028_s5 + $0x318] sm:$0xff] }
 0x535   : > { %3074 = vst.msk [vmem:[#allocation5 + $0x8] sm:$0x1] %vm7223_vm15, %v3072_v8  ;;  %v3114_v13 = vpop.permute.xlu1 %3113  ;;  %v3344_v8 = vsub.s32 5, %v5908_v59 }
 0x536   : > { %v6548_v14 = vld [vmem:[#allocation5] sm:$0xff]  ;;  %3096 = vst.msk [vmem:[#allocation5 + $0x8] sm:$0x3] %vm7224_vm6, %v3094_v12 }
 0x537   : > { %v3329_v15 = vrot.slane %v6548_v14, %v3328_v5  ;;  %v3325_v16 = vrot.slane %v6548_v14, %v3324_v55  ;;  %3116 = vst.msk [vmem:[#allocation5 + $0x9] sm:$0x1] %vm7227_vm0, %v3114_v13  ;;  %v3337_v21 = vrot.slane %v6548_v14, %v3336_v9  ;;  %v3241_v9 = vld [vmem:[%s7028_s5 + $0x290] sm:$0xff]  ;;  %v3353_v7 = vrot.slane %v6548_v14, %v3352_v62 }
 0x538   : > { %v3134_v20 = vpop.permute.xlu0 %3133  ;;  %v4560_v13 = vpack.c.bf16 %v3242_v10, %v3241_v9  ;;  %v3276_v9 = vld [vmem:[%s7028_s5 + $0x3a8] sm:$0xff] }
 0x539   : > { %3436 = vmatprep.mubr.f32.mxu1 %v3329_v15  ;;  %3136 = vst.msk [vmem:[#allocation5 + $0x9] sm:$0x1] %vm7230_vm9, %v3134_v20  ;;  %v3154_v23 = vpop.permute.xlu1 %3153  ;;  %v3225_v15 = vld [vmem:[%s7028_s5 + $0x210] sm:$0xff] }
 0x53a   : > { %3437 = vmatmul.mubr.f32.vlgmr.msra.gmra.mrb[8].mxu1 %v3325_v16  ;;  %3156 = vst.msk [vmem:[#allocation5 + $0x9] sm:$0x1] %vm7231_vm11, %v3154_v23  ;;  %v3226_v16 = vld [vmem:[%s7028_s5 + $0x218] sm:$0xff] }
 0x53b   : > { %4527 = vmatpush3.bf16.msra.mxu1 %v4526_v17  ;;  %3506 = vmatprep.mubr.f32.mxu1 %v3337_v21  ;;  %v3345_v17 = vrot.slane %v6548_v14, %v3344_v8  ;;  %v4562_v19 = vpack.c.bf16 %v3226_v16, %v3225_v15  ;;  %v3227_v21 = vld [vmem:[%s7028_s5 + $0x220] sm:$0xff]  ;;  %v3246_v23 = vld [vmem:[%s7028_s5 + $0x2b8] sm:$0xff]  ;;  %v3277_v15 = vld [vmem:[%s7028_s5 + $0x3b0] sm:$0xff] }
 0x53c   : > { %4529 = vmatprep.subr.bf16.mxu1 %v4528_v32  ;;  %v3243_v32 = vld [vmem:[%s7028_s5 + $0x2a0] sm:$0xff]  ;;  %v3278_v16 = vld [vmem:[%s7028_s5 + $0x3b8] sm:$0xff] }
 0x53d   : > { %v4564_v20 = vpack.c.bf16 %v3244_v18, %v3243_v32  ;;  %v3275_v8 = vld [vmem:[%s7028_s5 + $0x3a0] sm:$0xff]  ;;  %v4600_v32 = vpack.c.bf16 %v3278_v16, %v3277_v15  ;;  %v3261_v18 = vld [vmem:[%s7028_s5 + $0x330] sm:$0xff]  ;;  %v3816_v16 = vld [vmem:[%s7032_s9 + $0x28] sm:$0xff] }
 0x53e   : > { %v3815_v15 = vld [vmem:[%s7032_s9 + $0x20] sm:$0xff] }
 0x53f   : > { %4531 = vmatpush3.bf16.msra.mxu1 %v4530_v24  ;;  %v4566_v24 = vpack.c.bf16 %v3228_v22, %v3227_v21  ;;  %v3280_v21 = vld [vmem:[%s7028_s5 + $0x3c8] sm:$0xff] }
 0x540   : > { %4533 = vmatprep.subr.bf16.mxu1 %v4532_v25  ;;  %v4568_v25 = vpack.c.bf16 %v3246_v23, %v3245_v30  ;;  %v3263_v23 = vld [vmem:[%s7028_s5 + $0x340] sm:$0xff] }
 0x541   : > { %v3158_v37 = vld [vmem:[#allocation5 + $0x8] sm:$0x3] }
 0x542   : > { %v3357_v39 = vrot.slane %v3158_v37, %v3324_v55  ;;  %v3361_v40 = vrot.slane %v3158_v37, %v3328_v5  ;;  %v3332_v5 = vsub.s32 2, %v5908_v59  ;;  %v4556_v55 = vpack.c.bf16 %v3240_v3, %v3239_v1  ;;  %v3274_v1 = vld [vmem:[%s7028_s5 + $0x398] sm:$0xff] }
 0x543   : > { %4535 = vmatpush3.bf16.msra.mxu1 %v4534_v38  ;;  %v4570_v38 = vpack.c.bf16 %v3230_v27, %v3229_v26  ;;  %v4574_v37 = vpack.c.bf16 %v3232_v34, %v3231_v33  ;;  %v3282_v26 = vld [vmem:[%s7028_s5 + $0x3d8] sm:$0xff]  ;;  %v3284_v33 = vld [vmem:[%s7028_s5 + $0x3e8] sm:$0xff] }
 0x544   : > { %4537 = vmatprep.subr.bf16.mxu1 %v4536_v31  ;;  %3716 = vmatprep.mubr.f32.mxu0 %v3361_v40  ;;  %v3333_v12 = vrot.slane %v6548_v14, %v3332_v5  ;;  %v4572_v31 = vpack.c.bf16 %v3248_v29, %v3247_v28  ;;  %v3233_v40 = vld [vmem:[%s7028_s5 + $0x250] sm:$0xff]  ;;  %v4592_v5 = vpack.c.bf16 %v3274_v1, %v3273_v63  ;;  %v3734_v1 = vld [vmem:[%s7030_s7 + $0x58] sm:$0xff] }
 0x545   : > { %3717 = vmatmul.mubr.f32.vlgmr.msra.gmra.mrb[16].mxu0 %v3357_v39  ;;  %v4576_v39 = vpack.c.bf16 %v3250_v36, %v3249_v35  ;;  %v3265_v29 = vld [vmem:[%s7028_s5 + $0x350] sm:$0xff]  ;;  %v3267_v36 = vld [vmem:[%s7028_s5 + $0x360] sm:$0xff] }
 0x546   : > { %v3733_v63 = vld [vmem:[%s7030_s7 + $0x50] sm:$0xff]  ;;  %4301 = vmatprep.mubr.msk.f32.mxu0 %vm4879_vm2, %v4847_v0 }
 0x547   : > { %4539 = vmatpush3.bf16.msra.mxu1 %v4538_v41  ;;  %v3234_v41 = vld [vmem:[%s7028_s5 + $0x258] sm:$0xff] }
 0x548   : > { %4541 = vmatprep.subr.bf16.mxu1 %v4540_v42  ;;  %v3251_v42 = vld [vmem:[%s7028_s5 + $0x2e0] sm:$0xff]  ;;  %v4578_v44 = vpack.c.bf16 %v3234_v41, %v3233_v40  ;;  %v3286_v40 = vld [vmem:[%s7028_s5 + $0x3f8] sm:$0xff] }
 0x549   : > { %v4580_v45 = vpack.c.bf16 %v3252_v43, %v3251_v42  ;;  %v3269_v43 = vld [vmem:[%s7028_s5 + $0x370] sm:$0xff] }
 0x54b   : > { %4543 = vmatpush3.bf16.msra.mxu1 %v4542_v47  ;;  %v3236_v47 = vld [vmem:[%s7028_s5 + $0x268] sm:$0xff] }
 0x54c   : > { %4545 = vmatprep.subr.bf16.mxu1 %v4544_v48  ;;  %v3253_v48 = vld [vmem:[%s7028_s5 + $0x2f0] sm:$0xff]  ;;  %v4582_v51 = vpack.c.bf16 %v3236_v47, %v3235_v46  ;;  %v3348_v46 = vsub.s32 6, %v5908_v59 }
 0x54d   : > { %v4584_v52 = vpack.c.bf16 %v3254_v50, %v3253_v48  ;;  %v3723_v48 = vld [vmem:[%s7030_s7] sm:$0xff]  ;;  %v3724_v50 = vld [vmem:[%s7030_s7 + $0x8] sm:$0xff] }
 0x54e   : > { %v3349_v47 = vrot.slane %v6548_v14, %v3348_v46  ;;  %v4653_v59 = vpack.c.bf16 %v3724_v50, %v3723_v48 }
 0x54f   : > { %4547 = vmatpush3.bf16.msra.mxu1 %v4546_v54  ;;  %v3238_v54 = vld [vmem:[%s7028_s5 + $0x278] sm:$0xff] }
 0x550   : > { %4549 = vmatprep.subr.bf16.mxu1 %v4548_v56  ;;  %v3271_v56 = vld [vmem:[%s7028_s5 + $0x380] sm:$0xff]  ;;  %v4586_v58 = vpack.c.bf16 %v3238_v54, %v3237_v53 }
 0x551   : > { %v4588_v2 = vpack.c.bf16 %v3272_v57, %v3271_v56  ;;  %v3727_v54 = vld [vmem:[%s7030_s7 + $0x20] sm:$0xff]  ;;  %v3728_v56 = vld [vmem:[%s7030_s7 + $0x28] sm:$0xff] }
 0x552   : > { %v4659_v57 = vpack.c.bf16 %v3728_v56, %v3727_v54  ;;  %v3739_v54 = vld [vmem:[%s7031_s8] sm:$0x1] }
 0x553   : > { %4551 = vmatpush3.bf16.msra.mxu1 %v4550_v61  ;;  %v3255_v61 = vld [vmem:[%s7028_s5 + $0x300] sm:$0xff] }
 0x554   : > { %4553 = vmatprep.subr.bf16.mxu1 %v4552_v49  ;;  %v3256_v49 = vld [vmem:[%s7028_s5 + $0x308] sm:$0xff] }
 0x555   : > { %v4590_v3 = vpack.c.bf16 %v3256_v49, %v3255_v61  ;;  %v3731_v61 = vld [vmem:[%s7030_s7 + $0x40] sm:$0xff]  ;;  %v3732_v49 = vld [vmem:[%s7030_s7 + $0x48] sm:$0xff] }
 0x556   : > { %v4665_v62 = vpack.c.bf16 %v3732_v49, %v3731_v61 }
 0x557   : > { %4555 = vmatpush3.bf16.msra.mxu1 %v4554_v4  ;;  %v3341_v4 = vrot.slane %v6548_v14, %v3340_v60  ;;  %v3726_v14 = vld [vmem:[%s7030_s7 + $0x18] sm:$0xff] }
 0x558   : > { %4557 = vmatprep.subr.bf16.mxu1 %v4556_v55  ;;  %v3257_v55 = vld [vmem:[%s7028_s5 + $0x310] sm:$0xff]  ;;  %v3730_v60 = vld [vmem:[%s7030_s7 + $0x38] sm:$0xff] }
 0x559   : > { %v4594_v10 = vpack.c.bf16 %v3258_v6, %v3257_v55  ;;  %v3737_v55 = vld [vmem:[%s7030_s7 + $0x70] sm:$0xff] }
 0x55a   : > { %3507 = vmatmul.mubr.f32.vlgmr.msra.gmra.mrb[10].mxu1 %v3333_v12  ;;  %v3259_v12 = vld [vmem:[%s7028_s5 + $0x320] sm:$0xff] }
 0x55b   : > { %4559 = vmatpush3.bf16.msra.mxu1 %v4558_v11  ;;  %3576 = vmatprep.mubr.f32.mxu1 %v3345_v17  ;;  %v4596_v11 = vpack.c.bf16 %v3276_v9, %v3275_v8  ;;  %v3811_v8 = vld [vmem:[%s7032_s9] sm:$0xff]  ;;  %v3812_v9 = vld [vmem:[%s7032_s9 + $0x8] sm:$0xff] }
 0x55c   : > { %4561 = vmatprep.subr.bf16.mxu1 %v4560_v13  ;;  %v3260_v13 = vld [vmem:[%s7028_s5 + $0x328] sm:$0xff] }
 0x55d   : > { %v4598_v17 = vpack.c.bf16 %v3260_v13, %v3259_v12  ;;  %v4677_v12 = vpack.c.bf16 %v3812_v9, %v3811_v8  ;;  %v3814_v13 = vld [vmem:[%s7032_s9 + $0x18] sm:$0xff] }
 0x55f   : > { %4563 = vmatpush3.bf16.msra.mxu1 %v4562_v19  ;;  %v3262_v19 = vld [vmem:[%s7028_s5 + $0x338] sm:$0xff] }
 0x560   : > { %4565 = vmatprep.subr.bf16.mxu1 %v4564_v20  ;;  %v3279_v20 = vld [vmem:[%s7028_s5 + $0x3c0] sm:$0xff]  ;;  %v4602_v22 = vpack.c.bf16 %v3262_v19, %v3261_v18  ;;  %v3818_v18 = vld [vmem:[%s7032_s9 + $0x38] sm:$0xff] }
 0x561   : > { %v4604_v30 = vpack.c.bf16 %v3280_v21, %v3279_v20  ;;  %v3819_v20 = vld [vmem:[%s7032_s9 + $0x40] sm:$0xff]  ;;  %v3820_v21 = vld [vmem:[%s7032_s9 + $0x48] sm:$0xff] }
 0x563   : > { %4567 = vmatpush3.bf16.msra.mxu1 %v4566_v24  ;;  %v3264_v24 = vld [vmem:[%s7028_s5 + $0x348] sm:$0xff] }
 0x564   : > { %4569 = vmatprep.subr.bf16.mxu1 %v4568_v25  ;;  %v3281_v25 = vld [vmem:[%s7028_s5 + $0x3d0] sm:$0xff]  ;;  %v4606_v27 = vpack.c.bf16 %v3264_v24, %v3263_v23  ;;  %v3822_v23 = vld [vmem:[%s7032_s9 + $0x58] sm:$0xff] }
 0x565   : > { %v4608_v28 = vpack.c.bf16 %v3282_v26, %v3281_v25  ;;  %v3823_v25 = vld [vmem:[%s7032_s9 + $0x60] sm:$0xff]  ;;  %v3824_v26 = vld [vmem:[%s7032_s9 + $0x68] sm:$0xff] }
 0x567   : > { %4571 = vmatpush3.bf16.msra.mxu1 %v4570_v38  ;;  %v3266_v38 = vld [vmem:[%s7028_s5 + $0x358] sm:$0xff] }
 0x568   : > { %4573 = vmatprep.subr.bf16.mxu1 %v4572_v31  ;;  %v3283_v31 = vld [vmem:[%s7028_s5 + $0x3e0] sm:$0xff]  ;;  %v4610_v34 = vpack.c.bf16 %v3266_v38, %v3265_v29  ;;  %v4695_v29 = vpack.c.bf16 %v3824_v26, %v3823_v25 }
 0x569   : > { %v4612_v35 = vpack.c.bf16 %v3284_v33, %v3283_v31 }
 0x56b   : > { %4575 = vmatpush3.bf16.msra.mxu1 %v4574_v37  ;;  %v3268_v37 = vld [vmem:[%s7028_s5 + $0x368] sm:$0xff] }
 0x56c   : > { %4577 = vmatprep.subr.bf16.mxu1 %v4576_v39  ;;  %v3285_v39 = vld [vmem:[%s7028_s5 + $0x3f0] sm:$0xff]  ;;  %v4614_v41 = vpack.c.bf16 %v3268_v37, %v3267_v36 }
 0x56d   : > { %v4616_v42 = vpack.c.bf16 %v3286_v40, %v3285_v39 }
 0x56f   : > { %4579 = vmatpush3.bf16.msra.mxu1 %v4578_v44  ;;  %v3270_v44 = vld [vmem:[%s7028_s5 + $0x378] sm:$0xff] }
 0x570   : > { %4581 = vmatprep.subr.bf16.mxu1 %v4580_v45  ;;  %v4618_v45 = vpack.c.bf16 %v3270_v44, %v3269_v43 }
 0x573   : > { %4583 = vmatpush3.bf16.msra.mxu1 %v4582_v51  ;;  %v3725_v51 = vld [vmem:[%s7030_s7 + $0x10] sm:$0xff] }
 0x574   : > { %4585 = vmatprep.subr.bf16.mxu1 %v4584_v52  ;;  %v4878_v52 = vmov 0.0|0.0   ;;  %v4656_v53 = vpack.c.bf16 %v3726_v14, %v3725_v51  ;;  %v3826_v14 = vld [vmem:[%s7032_s9 + $0x78] sm:$0xff] }
 0x575   : > { %4676 = vmatprep.subr.bf16.mxu0 %v4878_v52 }
 0x576   : > { %4678 = vmatpush3.bf16.msra.mxu0 %v4677_v12 }
 0x577   : > { %4587 = vmatpush3.bf16.msra.mxu1 %v4586_v58  ;;  %v3729_v58 = vld [vmem:[%s7030_s7 + $0x30] sm:$0xff]  ;;  %4679 = vmatprep.subr.bf16.mxu0 %v4878_v52 }
 0x578   : > { %4589 = vmatprep.subr.bf16.mxu1 %v4588_v2  ;;  %v4662_v2 = vpack.c.bf16 %v3730_v60, %v3729_v58 }
 0x57a   : > { %3577 = vmatmul.mubr.f32.vlgmr.msra.gmra.mrb[12].mxu1 %v3341_v4  ;;  %v3735_v4 = vld [vmem:[%s7030_s7 + $0x60] sm:$0xff] }
 0x57b   : > { %4591 = vmatpush3.bf16.msra.mxu1 %v4590_v3  ;;  %3646 = vmatprep.mubr.f32.mxu1 %v3353_v7  ;;  %v4668_v3 = vpack.c.bf16 %v3734_v1, %v3733_v63  ;;  %v3738_v7 = vld [vmem:[%s7030_s7 + $0x78] sm:$0xff] }
 0x57c   : > { %4593 = vmatprep.subr.bf16.mxu1 %v4592_v5  ;;  %v3736_v5 = vld [vmem:[%s7030_s7 + $0x68] sm:$0xff] }
 0x57d   : > { %v4671_v6 = vpack.c.bf16 %v3736_v5, %v3735_v4 }
 0x57f   : > { %4595 = vmatpush3.bf16.msra.mxu1 %v4594_v10  ;;  %v3813_v10 = vld [vmem:[%s7032_s9 + $0x10] sm:$0xff] }
 0x580   : > { %4597 = vmatprep.subr.bf16.mxu1 %v4596_v11  ;;  %v4674_v11 = vpack.c.bf16 %v3738_v7, %v3737_v55 }
 0x583   : > { %4599 = vmatpush3.bf16.msra.mxu1 %v4598_v17  ;;  %v4683_v17 = vpack.c.bf16 %v3816_v16, %v3815_v15 }
 0x584   : > { %4601 = vmatprep.subr.bf16.mxu1 %v4600_v32  ;;  %v3817_v32 = vld [vmem:[%s7032_s9 + $0x30] sm:$0xff] }
 0x585   : > { %v4686_v19 = vpack.c.bf16 %v3818_v18, %v3817_v32 }
 0x587   : > { %4603 = vmatpush3.bf16.msra.mxu1 %v4602_v22  ;;  %v4689_v22 = vpack.c.bf16 %v3820_v21, %v3819_v20 }
 0x588   : > { %4605 = vmatprep.subr.bf16.mxu1 %v4604_v30  ;;  %v3821_v30 = vld [vmem:[%s7032_s9 + $0x50] sm:$0xff] }
 0x589   : > { %v4692_v24 = vpack.c.bf16 %v3822_v23, %v3821_v30 }
 0x58b   : > { %4607 = vmatpush3.bf16.msra.mxu1 %v4606_v27 }
 0x58c   : > { %4609 = vmatprep.subr.bf16.mxu1 %v4608_v28 }
 0x58f   : > { %4611 = vmatpush3.bf16.msra.mxu1 %v4610_v34 }
 0x590   : > { %4613 = vmatprep.subr.bf16.mxu1 %v4612_v35  ;;  %v3319_v35 = vld [vmem:[%s7029_s6] sm:$0x1] }
 0x593   : > { %4615 = vmatpush3.bf16.msra.mxu1 %v4614_v41 }
 0x594   : > { %4617 = vmatprep.subr.bf16.mxu1 %v4616_v42 }
 0x597   : > { %4619 = vmatpush3.bf16.msra.mxu1 %v4618_v45 }
 0x598   : > { %4652 = vmatprep.subr.bf16.mxu1 %v4878_v52 }
 0x59a   : > { %3647 = vmatmul.mubr.f32.vlgmr.msra.gmra.mrb[14].mxu1 %v3349_v47 }
 0x59b   : > { %4654 = vmatpush3.bf16.msra.mxu1 %v4653_v59  ;;  %4266 = vmatprep.mubr.msk.f32.mxu1 %vm4879_vm2, %v4847_v0  ;;  %v4680_v0 = vpack.c.bf16 %v3814_v13, %v3813_v10  ;;  %v3825_v59 = vld [vmem:[%s7032_s9 + $0x70] sm:$0xff] }
 0x59c   : > { %4655 = vmatprep.subr.bf16.mxu1 %v4878_v52 }
 0x59d   : > { %4681 = vmatpush3.bf16.msra.mxu0 %v4680_v0 }
 0x59e   : > { %4682 = vmatprep.subr.bf16.mxu0 %v4878_v52 }
 0x59f   : > { %4657 = vmatpush3.bf16.msra.mxu1 %v4656_v53  ;;  %v4698_v53 = vpack.c.bf16 %v3826_v14, %v3825_v59 }
 0x5a0   : > { %4658 = vmatprep.subr.bf16.mxu1 %v4878_v52 }
 0x5a1   : > { %4684 = vmatpush3.bf16.msra.mxu0 %v4683_v17 }
 0x5a2   : > { %4685 = vmatprep.subr.bf16.mxu0 %v4878_v52 }
 0x5a3   : > { %4660 = vmatpush3.bf16.msra.mxu1 %v4659_v57 }
 0x5a4   : > { %4661 = vmatprep.subr.bf16.mxu1 %v4878_v52 }
 0x5a5   : > { %4687 = vmatpush3.bf16.msra.mxu0 %v4686_v19 }
 0x5a6   : > { %4688 = vmatprep.subr.bf16.mxu0 %v4878_v52 }
 0x5a7   : > { %4663 = vmatpush3.bf16.msra.mxu1 %v4662_v2  ;;  %v3827_v2 = vld [vmem:[%s7033_s10] sm:$0x1] }
 0x5a8   : > { %4664 = vmatprep.subr.bf16.mxu1 %v4878_v52 }
 0x5a9   : > { %4690 = vmatpush3.bf16.msra.mxu0 %v4689_v22 }
 0x5aa   : > { %4691 = vmatprep.subr.bf16.mxu0 %v4878_v52 }
 0x5ab   : > { %4666 = vmatpush3.bf16.msra.mxu1 %v4665_v62 }
 0x5ac   : > { %4667 = vmatprep.subr.bf16.mxu1 %v4878_v52 }
 0x5ad   : > { %4693 = vmatpush3.bf16.msra.mxu0 %v4692_v24 }
 0x5ae   : > { %4694 = vmatprep.subr.bf16.mxu0 %v4878_v52 }
 0x5af   : > { %4669 = vmatpush3.bf16.msra.mxu1 %v4668_v3 }
 0x5b0   : > { %4670 = vmatprep.subr.bf16.mxu1 %v4878_v52 }
 0x5b1   : > { %4696 = vmatpush3.bf16.msra.mxu0 %v4695_v29 }
 0x5b2   : > { %4697 = vmatprep.subr.bf16.mxu0 %v4878_v52 }
 0x5b3   : > { %4672 = vmatpush3.bf16.msra.mxu1 %v4671_v6 }
 0x5b4   : > { %4673 = vmatprep.subr.bf16.mxu1 %v4878_v52 }
 0x5b5   : > { %4699 = vmatpush3.bf16.msra.mxu0 %v4698_v53 }
 0x5b7   : > { %4675 = vmatpush3.bf16.msra.mxu1 %v4674_v11 }
 0x60d   : > { %v4057_v27 = vpop.f32.mrb[8].mxu1 }
 0x60e   : > { %v4058_v28 = vpop.f32.mrb[9].mxu1 }
 0x60f   : > { %v4059_v38 = vadd.f32 %v4058_v28, %v4057_v27 }
 0x611   : > { %v3439_v39 = vadd.f32 %v4059_v38, %v3319_v35 }
 0x618   : > { %v4197_v31 = vpop.f32.mrb[16].mxu0 }
 0x619   : > { %v4198_v33 = vpop.f32.mrb[17].mxu0 }
 0x61a   : > { %v4199_v34 = vadd.f32 %v4198_v33, %v4197_v31 }
 0x62d   : > { %v4092_v36 = vpop.f32.mrb[10].mxu1 }
 0x62e   : > { %v4093_v37 = vpop.f32.mrb[11].mxu1 }
 0x62f   : > { %v4094_v40 = vadd.f32 %v4093_v37, %v4092_v36 }
 0x631   : > { %v3509_v41 = vadd.f32 %v4094_v40, %v3439_v39 }
 0x64d   : > { %v4127_v42 = vpop.f32.mrb[12].mxu1 }
 0x64e   : > { %v4128_v43 = vpop.f32.mrb[13].mxu1 }
 0x64f   : > { %v4129_v44 = vadd.f32 %v4128_v43, %v4127_v42 }
 0x651   : > { %v3579_v45 = vadd.f32 %v4129_v44, %v3509_v41 }
 0x66d   : > { %v4162_v46 = vpop.f32.mrb[14].mxu1 }
 0x66e   : > { %v4163_v47 = vpop.f32.mrb[15].mxu1 }
 0x66f   : > { %v4164_v48 = vadd.f32 %v4163_v47, %v4162_v46 }
 0x671   : > { %v3649_v50 = vadd.f32 %v4164_v48, %v3579_v45 }
 0x673   : > { %v3719_v51 = vadd.f32 %v4199_v34, %v3649_v50 }
 0x675   : > { %v3722_v52 = vmax.f32 %v3719_v51, 0.0 }
 0x677   : > { %4267 = vmatmul.mubr.f32.vlgmr.msra.gmra.mrb[16].mxu1 %v3722_v52 }
 0x74a   : > { %v3806_v56 = vpop.f32.mrb[16].mxu1 }
 0x74b   : > { %v3807_v57 = vadd.f32 %v3806_v56, %v3739_v54  ;;  %v4268_v58 = vpop.f32.mrb[17].mxu1 }
 0x74d   : > { %v3810_v60 = vmax.f32 %v3807_v57, 0.0 }
 0x74f   : > { %4302 = vmatmul.mubr.f32.vlgmr.msra.gmra.mrb[18].mxu0 %v3810_v60 }
 0x822   : > { %v3894_v61 = vpop.f32.mrb[18].mxu0 }
 0x823   : > { %v3895_v49 = vadd.f32 %v3894_v61, %v3827_v2  ;;  %v4303_v62 = vpop.f32.mrb[19].mxu0 }
 0x825   : > { %3898 = vst [vmem:[%s378_s29] sm:$0x1] %v3895_v49 }
 0x826   : > { %4796 = shalt.err (!%p4793_p3)
}
 0x827   : > { %s4797_s3 = scalar_lea.hbm %s6981_s0, 16  ;;  %s4801_s2 = scalar_lea.hbm %s7034_s11, 32 }
 0x828   : > { %p4798_p4 = scmp.ne.s32.totalorder %s6981_s0, %s4797_s3  ;;  %p4802_p9 = scmp.lt.u32.totalorder %s6981_s0, %s7034_s11 }
 0x829   : > { %p4803_p10 = scmp.lt.u32.totalorder %s4801_s2, %s4797_s3  ;;  %p4805_p12 = scmp.lt.u32.totalorder %s4797_s3, %s6981_s0 }
 0x82a   : > { %p4799_p7 = pnand %p4798_p4, %p4979_p5 }
 0x82b   : > { %p4804_p11 = por %p4803_p10, %p4802_p9 }
 0x82c   : > { %p4800_p8 = pneg %p4799_p7 }
 0x82d   : > { %p4806_p13 = por %p4805_p12, %p4804_p11 }
 0x82f   : > { %p4807_p0 = pnand %p4806_p13, %p4800_p8 }
 0x831   : > { %4810 = shalt.err (!%p4807_p0)
}
 0x832   : > { %4709 = dma.vmem_to_hbm [thread:$0]  (%p4979_p5), %s6983_s16, 16, %s6981_s0, %s3900_s13  }
 0x833 PF: > { %p4715_p1 = scmp.ge.s32.totalorder %s4845_s20, 2  ;;  %s3924_s29 = sand.u32 1, %s4833_s17  }
 0x834   : > { %s3925_s24 = scalar_lea.sflag [#allocation7], %s3924_s29 }
 0x835   : > { %p4712_p2 = pnand %p4715_p1, %p4983_p6 }
 0x837   : > { %4828 = dma.done.wait (!%p4712_p2), %s3925_s24, 16  }
 0x838   : > { %4830 = vsyncadd (!%p4712_p2), %s3925_s24, 4294967280  ;;  %p21_p3 = scmp.ge.s32.totalorder %s4966_s23, 4   ;;  %s7232_s17 = smov %s4837_s18 }
 0x839   : > { %s7233_s18 = smov %s4841_s19  ;;  %s7234_s19 = smov %s4977_s26 }
 0x83a   : > { %s7235_s20 = smov %s4966_s23  ;;  %23 = sbr.rel (!%p21_p3) target bundleno = 9 (0x9), region = 99 }
 0x841   :  { %3929 = vsyncpa [#allocation7], 1 }
 0x842   :  { %3931 = vsyncpa [#allocation7 + $0x1], 1 }

</bundles_post_ra>
